<compile_context>
chip_gen: v6e
topology: v6e:2x2x1
jax: 0.10.0
libtpu: 0.0.40
codegen_flags: <defaults>
</compile_context>

<pallas_src>
import math
import functools

import jax
import jax.numpy as jnp
from jax.experimental import pallas as pl
from jax.experimental.pallas import tpu as pltpu

NEG_INF = -1e9     # additive value for masked logits (matches reference)
M_INIT = -1e30     # running-max initializer (finite: avoids inf-inf edge cases)


def _round_up(v, m):
    return ((v + m - 1) // m) * m


def _pad_to(a, shape):
    pads = [(0, t - s) for s, t in zip(a.shape, shape)]
    return jnp.pad(a, pads)


def _attn_residual_bn_kernel(*refs, seq_len, block_k, has_mask, needs_kpad_mask):
    """Flash-attention over pre-projected q/k/v + fused out-proj/residual/BN."""
    # ---- unpack refs: q, k, v, colors, [mask], x_res, wo, bo, bn_s, bn_b ----
    q_ref, k_ref, v_ref, colors_ref = refs[:4]
    i = 4
    mask_ref = None
    if has_mask:
        mask_ref = refs[i]
        i += 1
    x_ref, wo_ref, bo_ref, bn_scale_ref, bn_shift_ref = refs[i:i + 5]
    i += 5
    o_ref = refs[i]
    i += 1
    m_ref, l_ref, acc_ref = refs[i:i + 3]        # (H,TQ,1),(H,TQ,1),(H,TQ,dh)

    ki = pl.program_id(2)
    nk = pl.num_programs(2)

    # ---- per (batch, q-tile) init of the online-softmax state ---------------
    @pl.when(ki == 0)
    def _init():
        m_ref[...] = jnp.full(m_ref.shape, M_INIT, jnp.float32)
        l_ref[...] = jnp.zeros(l_ref.shape, jnp.float32)
        acc_ref[...] = jnp.zeros(acc_ref.shape, jnp.float32)

    # ---- additive attention-logit bias for this (q-tile, k-tile) ------------
    bias = colors_ref[0].astype(jnp.float32)                      # (TQ, TK)
    if has_mask:
        bias = bias + jnp.where(mask_ref[0] > 0, 0.0, NEG_INF)
    if needs_kpad_mask:
        kpos = ki * block_k + jax.lax.broadcasted_iota(jnp.int32, bias.shape, 1)
        bias = jnp.where(kpos < seq_len, bias, NEG_INF)

    # ---- head-batched online softmax (no per-head Python loop) --------------
    q = q_ref[0]                                   # (H, TQ, dh) bf16, pre-scaled
    k = k_ref[0]                                   # (H, TK, dh) bf16
    v = v_ref[0]                                   # (H, TK, dh) bf16
    s = jnp.einsum("hqd,hkd->hqk", q, k,
                   preferred_element_type=jnp.float32)            # (H, TQ, TK)
    s = s + bias[None, :, :]

    m_prev = m_ref[...]
    m_new = jnp.maximum(m_prev, jnp.max(s, axis=-1, keepdims=True))
    alpha = jnp.exp(m_prev - m_new)
    p = jnp.exp(s - m_new)                                         # f32
    l_ref[...] = alpha * l_ref[...] + jnp.sum(p, axis=-1, keepdims=True)
    acc_ref[...] = alpha * acc_ref[...] + jnp.einsum(
        "hqk,hkd->hqd", p.astype(v.dtype), v,                      # bf16 MXU feed
        preferred_element_type=jnp.float32)
    m_ref[...] = m_new

    # ---- finalize: normalize, out-projection, GATE residual, BN -------------
    @pl.when(ki == nk - 1)
    def _finalize():
        num_heads = acc_ref.shape[0]
        # TODO(synk): GATE is an external module; modeled as a residual add.
        out = x_ref[0].astype(jnp.float32) + bo_ref[...]           # (TQ, D_pad)
        # cold path (once per q-tile): per-head out-projection, accumulated.
        for h in range(num_heads):
            inv_l = 1.0 / l_ref[h]                                 # exact recip
            ctx = (acc_ref[h] * inv_l).astype(jnp.bfloat16)        # (TQ, dh)
            out = out + jnp.dot(ctx, wo_ref[h],
                                preferred_element_type=jnp.float32)
        # TODO(synk): BN modeled as inference-mode BatchNorm over features,
        # folded to a per-channel affine in the wrapper.
        out = out * bn_scale_ref[...] + bn_shift_ref[...]
        o_ref[0] = out.astype(o_ref.dtype)


def residual_block_bn(x, colors, params, bn_params, mask=None, *,
                      num_heads, eps=1e-5, block_q=512, block_k=256,
                      vmem_limit_bytes=None):
    """ResidualBlock_BN.forward: BN(GATE(x, MHA(x, colors, mask)))."""
    B, S, D = x.shape
    assert D % num_heads == 0
    dh = D // num_heads
    d_pad = _round_up(D, 128)                      # lane-dense model dim

    tile_q = _round_up(min(block_q, S), 128)
    tile_k = _round_up(min(block_k, S), 128)
    s_pad_q = _round_up(S, tile_q)
    s_pad_k = _round_up(S, tile_k)
    n_q = s_pad_q // tile_q
    n_k = s_pad_k // tile_k

    wq, wk, wv, wo, bq, bk, bv, bo = params
    gamma, beta, mean, var = bn_params

    # -- hoisted Q/K/V projections: once per call, plain XLA, softmax scale
    #    folded into Q, stored bf16 in a per-head (B, H, S, dh) layout ---------
    xf = x.astype(jnp.float32)
    scale = 1.0 / math.sqrt(dh)
    qp = (xf @ wq + bq) * scale
    kp = xf @ wk + bk
    vp = xf @ wv + bv

    def to_heads(a, s_pad):
        a = a.reshape(B, S, num_heads, dh).transpose(0, 2, 1, 3)   # (B,H,S,dh)
        return _pad_to(a, (B, num_heads, s_pad, dh)).astype(jnp.bfloat16)

    q_h = to_heads(qp, s_pad_q)
    k_h = to_heads(kp, s_pad_k)
    v_h = to_heads(vp, s_pad_k)

    # -- out-projection weight, per-head rows, unpadded head_dim, bf16 --------
    wo_h = _pad_to(wo.reshape(num_heads, dh, D),
                   (num_heads, dh, d_pad)).astype(jnp.bfloat16)
    bo_p = _pad_to(bo.reshape(1, D).astype(jnp.float32), (1, d_pad))

    # -- fold inference BatchNorm into per-channel (scale, shift) -------------
    inv_std = 1.0 / jnp.sqrt(var.astype(jnp.float32) + eps)
    bn_scale = (gamma.astype(jnp.float32) * inv_std).reshape(1, D)
    bn_shift = (beta.astype(jnp.float32)
                - mean.astype(jnp.float32) * gamma.astype(jnp.float32)
                * inv_std).reshape(1, D)
    bn_scale_p = _pad_to(bn_scale, (1, d_pad))
    bn_shift_p = _pad_to(bn_shift, (1, d_pad))

    # -- pad activations / bias streams ----------------------------------------
    x_p = _pad_to(x, (B, s_pad_q, d_pad))                          # residual
    colors_p = _pad_to(colors.astype(jnp.bfloat16), (B, s_pad_q, s_pad_k))
    has_mask = mask is not None

    q_spec = pl.BlockSpec((1, num_heads, tile_q, dh), lambda b, qi, ki: (b, 0, qi, 0))
    kv_spec = pl.BlockSpec((1, num_heads, tile_k, dh), lambda b, qi, ki: (b, 0, ki, 0))
    score_spec = pl.BlockSpec((1, tile_q, tile_k), lambda b, qi, ki: (b, qi, ki))
    xres_spec = pl.BlockSpec((1, tile_q, d_pad), lambda b, qi, ki: (b, qi, 0))

    def const_spec(shape):                         # whole-array, grid-invariant
        return pl.BlockSpec(shape, lambda b, qi, ki, _n=len(shape): (0,) * _n)

    inputs = [q_h, k_h, v_h, colors_p]
    in_specs = [q_spec, kv_spec, kv_spec, score_spec]
    if has_mask:
        inputs.append(_pad_to(mask.astype(jnp.int8), (B, s_pad_q, s_pad_k)))
        in_specs.append(score_spec)
    inputs += [x_p, wo_h, bo_p, bn_scale_p, bn_shift_p]
    in_specs += [xres_spec,
                 const_spec((num_heads, dh, d_pad)),
                 const_spec((1, d_pad)), const_spec((1, d_pad)),
                 const_spec((1, d_pad))]

    kernel = functools.partial(
        _attn_residual_bn_kernel,
        seq_len=S, block_k=tile_k, has_mask=has_mask,
        needs_kpad_mask=(s_pad_k != S))

    out_p = pl.pallas_call(
        kernel,
        out_shape=jax.ShapeDtypeStruct((B, s_pad_q, d_pad), x.dtype),
        grid_spec=pltpu.PrefetchScalarGridSpec(
            num_scalar_prefetch=0,
            grid=(B, n_q, n_k),
            in_specs=in_specs,
            out_specs=pl.BlockSpec((1, tile_q, d_pad),
                                   lambda b, qi, ki: (b, qi, 0)),
            scratch_shapes=[
                pltpu.VMEM((num_heads, tile_q, 1), jnp.float32),    # running m
                pltpu.VMEM((num_heads, tile_q, 1), jnp.float32),    # running l
                pltpu.VMEM((num_heads, tile_q, dh), jnp.float32),   # ctx acc
            ]),
        compiler_params=pltpu.CompilerParams(
            dimension_semantics=("parallel", "parallel", "arbitrary"),
            vmem_limit_bytes=vmem_limit_bytes),
    )(*inputs)

    return out_p[:, :S, :D]


def _reference(x, colors, params, bn_params, mask, num_heads, eps=1e-5):
    """Pure-JAX reference: BN(x + MHA(x, colors, mask))."""
    wq, wk, wv, wo, bq, bk, bv, bo = params
    gamma, beta, mean, var = bn_params
    B, S, D = x.shape
    dh = D // num_heads
    xf = x.astype(jnp.float32)
    q = xf @ wq + bq
    k = xf @ wk + bk
    v = xf @ wv + bv
    q = q.reshape(B, S, num_heads, dh).transpose(0, 2, 1, 3)
    k = k.reshape(B, S, num_heads, dh).transpose(0, 2, 1, 3)
    v = v.reshape(B, S, num_heads, dh).transpose(0, 2, 1, 3)
    s = jnp.einsum("bhqd,bhkd->bhqk", q, k) / math.sqrt(dh)
    s = s + colors.astype(jnp.float32)[:, None, :, :]
    if mask is not None:
        s = s + jnp.where(mask, 0.0, NEG_INF)[:, None, :, :]
    p = jax.nn.softmax(s, axis=-1)
    ctx = jnp.einsum("bhqk,bhkd->bhqd", p, v)
    ctx = ctx.transpose(0, 2, 1, 3).reshape(B, S, D)
    mha = ctx @ wo + bo
    z = xf + mha                                          # GATE: residual add
    zn = (z - mean) / jnp.sqrt(var + eps) * gamma + beta  # BN (inference)
    return zn.astype(x.dtype)


if __name__ == "__main__":
    B, S, D, H = 2, 8, 32, 4

    key = jax.random.PRNGKey(0)
    keys = jax.random.split(key, 16)
    x = jax.random.normal(keys[0], (B, S, D), jnp.float32)
    colors = 0.1 * jax.random.normal(keys[1], (B, S, S), jnp.float32)

    scl = 1.0 / math.sqrt(D)
    params = (
        scl * jax.random.normal(keys[2], (D, D), jnp.float32),   # Wq
        scl * jax.random.normal(keys[3], (D, D), jnp.float32),   # Wk
        scl * jax.random.normal(keys[4], (D, D), jnp.float32),   # Wv
        scl * jax.random.normal(keys[5], (D, D), jnp.float32),   # Wo
        0.01 * jax.random.normal(keys[6], (D,), jnp.float32),    # bq
        0.01 * jax.random.normal(keys[7], (D,), jnp.float32),    # bk
        0.01 * jax.random.normal(keys[8], (D,), jnp.float32),    # bv
        0.01 * jax.random.normal(keys[9], (D,), jnp.float32),    # bo
    )
    bn_params = (
        1.0 + 0.1 * jax.random.normal(keys[10], (D,), jnp.float32),          # gamma
        0.1 * jax.random.normal(keys[11], (D,), jnp.float32),                # beta
        0.1 * jax.random.normal(keys[12], (D,), jnp.float32),                # mean
        1.0 + 0.1 * jnp.abs(jax.random.normal(keys[13], (D,), jnp.float32)), # var
    )

    # Tolerance reflects bf16 MXU operands (q/k/v/p/ctx/Wo) with f32
    # accumulation; the finalize reciprocal is exact.
    TOL = 3e-2

    # mask=None branch of the forward
    out = residual_block_bn(x, colors, params, bn_params, mask=None, num_heads=H)
    out = jax.block_until_ready(out)
    ref = _reference(x, colors, params, bn_params, None, H)
    assert out.shape == (B, S, D)
    assert jnp.allclose(out, ref, atol=TOL, rtol=TOL), (
        f"no-mask mismatch, max abs err {jnp.max(jnp.abs(out - ref))}")

    # masked branch of the forward
    mask = jax.random.bernoulli(keys[14], 0.8, (B, S, S))
    mask = mask | jnp.eye(S, dtype=bool)[None]     # keep >=1 valid key per row
    out_m = residual_block_bn(x, colors, params, bn_params, mask=mask, num_heads=H)
    out_m = jax.block_until_ready(out_m)
    ref_m = _reference(x, colors, params, bn_params, mask, H)
    assert jnp.allclose(out_m, ref_m, atol=TOL, rtol=TOL), (
        f"mask mismatch, max abs err {jnp.max(jnp.abs(out_m - ref_m))}")

    print("KERNEL_OK")
</pallas_src>

<mosaic_0001>
module attributes {stable_mosaic.version = 11 : i64} {
  func.func @_attn_residual_bn_kernel(%arg0: i32, %arg1: i32, %arg2: i32, %arg3: memref<1x4x128x8xbf16, #tpu.memory_space<vmem>>, %arg4: memref<1x4x128x8xbf16, #tpu.memory_space<vmem>>, %arg5: memref<1x4x128x8xbf16, #tpu.memory_space<vmem>>, %arg6: memref<1x128x128xbf16, #tpu.memory_space<vmem>>, %arg7: memref<1x128x128xf32, #tpu.memory_space<vmem>>, %arg8: memref<4x8x128xbf16, #tpu.memory_space<vmem>>, %arg9: memref<1x128xf32, #tpu.memory_space<vmem>>, %arg10: memref<1x128xf32, #tpu.memory_space<vmem>>, %arg11: memref<1x128xf32, #tpu.memory_space<vmem>>, %arg12: memref<1x128x128xf32, #tpu.memory_space<vmem>>, %arg13: memref<4x128x1xf32, #tpu.memory_space<vmem>>, %arg14: memref<4x128x1xf32, #tpu.memory_space<vmem>>, %arg15: memref<4x128x8xf32, #tpu.memory_space<vmem>>) attributes {dimension_semantics = [#tpu.dimension_semantics<parallel>, #tpu.dimension_semantics<parallel>, #tpu.dimension_semantics<arbitrary>], iteration_bounds = array<i64: 2, 1, 1>, scalar_prefetch = 0 : i64, scratch_operands = 3 : i64, tpu.core_type = #tpu.core_type<tc>, window_params = [{transform_indices = @transform_0, window_bounds = array<i64: 1, 4, 128, 8>}, {transform_indices = @transform_1, window_bounds = array<i64: 1, 4, 128, 8>}, {transform_indices = @transform_2, window_bounds = array<i64: 1, 4, 128, 8>}, {transform_indices = @transform_3, window_bounds = array<i64: 1, 128, 128>}, {transform_indices = @transform_4, window_bounds = array<i64: 1, 128, 128>}, {pipeline_mode = #tpu.pipeline_mode<synchronous>, transform_indices = @transform_5, window_bounds = array<i64: 4, 8, 128>}, {pipeline_mode = #tpu.pipeline_mode<synchronous>, transform_indices = @transform_6, window_bounds = array<i64: 1, 128>}, {pipeline_mode = #tpu.pipeline_mode<synchronous>, transform_indices = @transform_7, window_bounds = array<i64: 1, 128>}, {pipeline_mode = #tpu.pipeline_mode<synchronous>, transform_indices = @transform_8, window_bounds = array<i64: 1, 128>}, {transform_indices = @transform_9, window_bounds = array<i64: 1, 128, 128>}]} {
    %c0_i32 = arith.constant 0 : i32
    %0 = arith.cmpi eq, %arg2, %c0_i32 : i32
    %1 = arith.extui %0 : i1 to i32
    %c0_i32_0 = arith.constant 0 : i32
    %2 = arith.cmpi ne, %1, %c0_i32_0 : i32
    scf.if %2 {
      %cst_39 = arith.constant -1.000000e+30 : f32
      %50 = vector.broadcast %cst_39 : f32 to vector<4x128x1xf32>
      %c0_40 = arith.constant 0 : index
      %c0_41 = arith.constant 0 : index
      %c0_42 = arith.constant 0 : index
      %51 = vector.load %arg13[%c0_40, %c0_41, %c0_42] : memref<4x128x1xf32, #tpu.memory_space<vmem>>, vector<4x128x1xf32>
      tpu.vector_store %arg13[%c0_40, %c0_41, %c0_42], %50 {strides = array<i32>} : memref<4x128x1xf32, #tpu.memory_space<vmem>>, vector<4x128x1xf32>,
      %cst_43 = arith.constant 0.000000e+00 : f32
      %52 = vector.broadcast %cst_43 : f32 to vector<4x128x1xf32>
      %c0_44 = arith.constant 0 : index
      %c0_45 = arith.constant 0 : index
      %c0_46 = arith.constant 0 : index
      %53 = vector.load %arg14[%c0_44, %c0_45, %c0_46] : memref<4x128x1xf32, #tpu.memory_space<vmem>>, vector<4x128x1xf32>
      tpu.vector_store %arg14[%c0_44, %c0_45, %c0_46], %52 {strides = array<i32>} : memref<4x128x1xf32, #tpu.memory_space<vmem>>, vector<4x128x1xf32>,
      %cst_47 = arith.constant 0.000000e+00 : f32
      %54 = vector.broadcast %cst_47 : f32 to vector<4x128x8xf32>
      %c0_48 = arith.constant 0 : index
      %c0_49 = arith.constant 0 : index
      %c0_50 = arith.constant 0 : index
      %55 = vector.load %arg15[%c0_48, %c0_49, %c0_50] : memref<4x128x8xf32, #tpu.memory_space<vmem>>, vector<4x128x8xf32>
      tpu.vector_store %arg15[%c0_48, %c0_49, %c0_50], %54 {strides = array<i32>} : memref<4x128x8xf32, #tpu.memory_space<vmem>>, vector<4x128x8xf32>,
    } else {
    }
    %c0 = arith.constant 0 : index
    %c0_1 = arith.constant 0 : index
    %c0_2 = arith.constant 0 : index
    %3 = vector.load %arg6[%c0, %c0_1, %c0_2] : memref<1x128x128xbf16, #tpu.memory_space<vmem>>, vector<1x128x128xbf16>
    %4 = vector.shape_cast %3 : vector<1x128x128xbf16> to vector<128x128xbf16>
    %5 = arith.extf %4 : vector<128x128xbf16> to vector<128x128xf32>
    %c128_i32 = arith.constant 128 : i32
    %6 = arith.muli %arg2, %c128_i32 : i32
    %7 = tpu.iota {dimensions = array<i32: 1>} : vector<128x128xi32>
    %8 = vector.broadcast %6 : i32 to vector<128x128xi32>
    %9 = arith.addi %8, %7 : vector<128x128xi32>
    %c8_i32 = arith.constant 8 : i32
    %10 = vector.broadcast %c8_i32 : i32 to vector<128x128xi32>
    %11 = arith.cmpi slt, %9, %10 : vector<128x128xi32>
    %cst = arith.constant -1.000000e+09 : f32
    %12 = vector.broadcast %cst : f32 to vector<128x128xf32>
    %13 = arith.select %11, %5, %12 : vector<128x128xi1>, vector<128x128xf32>
    %c0_3 = arith.constant 0 : index
    %c0_4 = arith.constant 0 : index
    %c0_5 = arith.constant 0 : index
    %c0_6 = arith.constant 0 : index
    %14 = vector.load %arg3[%c0_3, %c0_4, %c0_5, %c0_6] : memref<1x4x128x8xbf16, #tpu.memory_space<vmem>>, vector<1x4x128x8xbf16>
    %15 = vector.shape_cast %14 : vector<1x4x128x8xbf16> to vector<4x128x8xbf16>
    %c0_7 = arith.constant 0 : index
    %c0_8 = arith.constant 0 : index
    %c0_9 = arith.constant 0 : index
    %c0_10 = arith.constant 0 : index
    %16 = vector.load %arg4[%c0_7, %c0_8, %c0_9, %c0_10] : memref<1x4x128x8xbf16, #tpu.memory_space<vmem>>, vector<1x4x128x8xbf16>
    %17 = vector.shape_cast %16 : vector<1x4x128x8xbf16> to vector<4x128x8xbf16>
    %c0_11 = arith.constant 0 : index
    %c0_12 = arith.constant 0 : index
    %c0_13 = arith.constant 0 : index
    %c0_14 = arith.constant 0 : index
    %18 = vector.load %arg5[%c0_11, %c0_12, %c0_13, %c0_14] : memref<1x4x128x8xbf16, #tpu.memory_space<vmem>>, vector<1x4x128x8xbf16>
    %19 = vector.shape_cast %18 : vector<1x4x128x8xbf16> to vector<4x128x8xbf16>
    "tpu.trace_start"() <{level = 10 : i32, message = "hqd,hkd->hqk"}> : () -> ()
    %cst_15 = arith.constant dense<0.000000e+00> : vector<4x128x128xf32>
    %20 = tpu.matmul %15, %17, %cst_15 {dimension_numbers = #tpu.dot_dimension_numbers<[2], [2], [1], [1], [0, 0, 0, 1, 1, 1], [0], [0]>} : vector<4x128x8xbf16>, vector<4x128x8xbf16>, vector<4x128x128xf32> -> vector<4x128x128xf32>
    "tpu.trace_stop"() : () -> ()
    %21 = vector.shape_cast %13 : vector<128x128xf32> to vector<1x128x128xf32>
    %22 = vector.broadcast %21 : vector<1x128x128xf32> to vector<4x128x128xf32>
    %23 = arith.addf %20, %22 : vector<4x128x128xf32>
    %c0_16 = arith.constant 0 : index
    %c0_17 = arith.constant 0 : index
    %c0_18 = arith.constant 0 : index
    %24 = vector.load %arg13[%c0_16, %c0_17, %c0_18] : memref<4x128x1xf32, #tpu.memory_space<vmem>>, vector<4x128x1xf32>
    %cst_19 = arith.constant dense<0xFF800000> : vector<4x128xf32>
    %25 = vector.multi_reduction <maximumf>, %23, %cst_19 [2] : vector<4x128x128xf32> to vector<4x128xf32>
    %26 = vector.shape_cast %25 : vector<4x128xf32> to vector<4x128x1xf32>
    %27 = arith.maximumf %24, %26 : vector<4x128x1xf32>
    %28 = arith.subf %24, %27 : vector<4x128x1xf32>
    %29 = math.exp %28 : vector<4x128x1xf32>
    %30 = vector.broadcast %27 : vector<4x128x1xf32> to vector<4x128x128xf32>
    %31 = arith.subf %23, %30 : vector<4x128x128xf32>
    %32 = math.exp %31 : vector<4x128x128xf32>
    %c0_20 = arith.constant 0 : index
    %c0_21 = arith.constant 0 : index
    %c0_22 = arith.constant 0 : index
    %33 = vector.load %arg14[%c0_20, %c0_21, %c0_22] : memref<4x128x1xf32, #tpu.memory_space<vmem>>, vector<4x128x1xf32>
    %34 = arith.mulf %29, %33 : vector<4x128x1xf32>
    %cst_23 = arith.constant dense<0.000000e+00> : vector<4x128xf32>
    %35 = vector.multi_reduction <add>, %32, %cst_23 [2] : vector<4x128x128xf32> to vector<4x128xf32>
    %36 = vector.shape_cast %35 : vector<4x128xf32> to vector<4x128x1xf32>
    %37 = arith.addf %34, %36 : vector<4x128x1xf32>
    %c0_24 = arith.constant 0 : index
    %c0_25 = arith.constant 0 : index
    %c0_26 = arith.constant 0 : index
    %38 = vector.load %arg14[%c0_24, %c0_25, %c0_26] : memref<4x128x1xf32, #tpu.memory_space<vmem>>, vector<4x128x1xf32>
    tpu.vector_store %arg14[%c0_24, %c0_25, %c0_26], %37 {strides = array<i32>} : memref<4x128x1xf32, #tpu.memory_space<vmem>>, vector<4x128x1xf32>,
    %c0_27 = arith.constant 0 : index
    %c0_28 = arith.constant 0 : index
    %c0_29 = arith.constant 0 : index
    %39 = vector.load %arg15[%c0_27, %c0_28, %c0_29] : memref<4x128x8xf32, #tpu.memory_space<vmem>>, vector<4x128x8xf32>
    %40 = vector.broadcast %29 : vector<4x128x1xf32> to vector<4x128x8xf32>
    %41 = arith.mulf %40, %39 : vector<4x128x8xf32>
    %42 = arith.truncf %32 : vector<4x128x128xf32> to vector<4x128x128xbf16>
    "tpu.trace_start"() <{level = 10 : i32, message = "hqk,hkd->hqd"}> : () -> ()
    %cst_30 = arith.constant dense<0.000000e+00> : vector<4x128x8xf32>
    %43 = tpu.matmul %42, %19, %cst_30 {dimension_numbers = #tpu.dot_dimension_numbers<[2], [1], [1], [2], [0, 0, 0, 1, 1, 2], [0], [0]>} : vector<4x128x128xbf16>, vector<4x128x8xbf16>, vector<4x128x8xf32> -> vector<4x128x8xf32>
    "tpu.trace_stop"() : () -> ()
    %44 = arith.addf %41, %43 : vector<4x128x8xf32>
    %c0_31 = arith.constant 0 : index
    %c0_32 = arith.constant 0 : index
    %c0_33 = arith.constant 0 : index
    %45 = vector.load %arg15[%c0_31, %c0_32, %c0_33] : memref<4x128x8xf32, #tpu.memory_space<vmem>>, vector<4x128x8xf32>
    tpu.vector_store %arg15[%c0_31, %c0_32, %c0_33], %44 {strides = array<i32>} : memref<4x128x8xf32, #tpu.memory_space<vmem>>, vector<4x128x8xf32>,
    %c0_34 = arith.constant 0 : index
    %c0_35 = arith.constant 0 : index
    %c0_36 = arith.constant 0 : index
    %46 = vector.load %arg13[%c0_34, %c0_35, %c0_36] : memref<4x128x1xf32, #tpu.memory_space<vmem>>, vector<4x128x1xf32>
    tpu.vector_store %arg13[%c0_34, %c0_35, %c0_36], %27 {strides = array<i32>} : memref<4x128x1xf32, #tpu.memory_space<vmem>>, vector<4x128x1xf32>,
    %c0_i32_37 = arith.constant 0 : i32
    %47 = arith.cmpi eq, %arg2, %c0_i32_37 : i32
    %48 = arith.extui %47 : i1 to i32
    %c0_i32_38 = arith.constant 0 : i32
    %49 = arith.cmpi ne, %48, %c0_i32_38 : i32
    scf.if %49 {
      %c0_39 = arith.constant 0 : index
      %c0_40 = arith.constant 0 : index
      %c0_41 = arith.constant 0 : index
      %50 = vector.load %arg7[%c0_39, %c0_40, %c0_41] : memref<1x128x128xf32, #tpu.memory_space<vmem>>, vector<1x128x128xf32>
      %51 = vector.shape_cast %50 : vector<1x128x128xf32> to vector<128x128xf32>
      %c0_42 = arith.constant 0 : index
      %c0_43 = arith.constant 0 : index
      %52 = vector.load %arg9[%c0_42, %c0_43] : memref<1x128xf32, #tpu.memory_space<vmem>>, vector<1x128xf32>
      %53 = vector.broadcast %52 : vector<1x128xf32> to vector<128x128xf32>
      %54 = arith.addf %51, %53 : vector<128x128xf32>
      %c0_44 = arith.constant 0 : index
      %c0_45 = arith.constant 0 : index
      %c0_46 = arith.constant 0 : index
      %55 = vector.load %arg14[%c0_44, %c0_45, %c0_46] : memref<4x128x1xf32, #tpu.memory_space<vmem>>, vector<1x128x1xf32>
      %56 = vector.shape_cast %55 : vector<1x128x1xf32> to vector<128x1xf32>
      %cst_47 = arith.constant 1.000000e+00 : f32
      %57 = vector.broadcast %cst_47 : f32 to vector<128x1xf32>
      %58 = arith.divf %57, %56 : vector<128x1xf32>
      %c0_48 = arith.constant 0 : index
      %c0_49 = arith.constant 0 : index
      %c0_50 = arith.constant 0 : index
      %59 = vector.load %arg15[%c0_48, %c0_49, %c0_50] : memref<4x128x8xf32, #tpu.memory_space<vmem>>, vector<1x128x8xf32>
      %60 = vector.shape_cast %59 : vector<1x128x8xf32> to vector<128x8xf32>
      %61 = vector.broadcast %58 : vector<128x1xf32> to vector<128x8xf32>
      %62 = arith.mulf %60, %61 : vector<128x8xf32>
      %63 = arith.truncf %62 : vector<128x8xf32> to vector<128x8xbf16>
      %c0_51 = arith.constant 0 : index
      %c0_52 = arith.constant 0 : index
      %c0_53 = arith.constant 0 : index
      %64 = vector.load %arg8[%c0_51, %c0_52, %c0_53] : memref<4x8x128xbf16, #tpu.memory_space<vmem>>, vector<1x8x128xbf16>
      %65 = vector.shape_cast %64 : vector<1x8x128xbf16> to vector<8x128xbf16>
      %cst_54 = arith.constant dense<0.000000e+00> : vector<128x128xf32>
      %66 = tpu.matmul %63, %65, %cst_54 {dimension_numbers = #tpu.dot_dimension_numbers<[1], [0], [0], [1], [0, 0, 1, 1], [], []>} : vector<128x8xbf16>, vector<8x128xbf16>, vector<128x128xf32> -> vector<128x128xf32>
      %67 = arith.addf %54, %66 : vector<128x128xf32>
      %c1 = arith.constant 1 : index
      %c0_55 = arith.constant 0 : index
      %c0_56 = arith.constant 0 : index
      %68 = vector.load %arg14[%c1, %c0_55, %c0_56] : memref<4x128x1xf32, #tpu.memory_space<vmem>>, vector<1x128x1xf32>
      %69 = vector.shape_cast %68 : vector<1x128x1xf32> to vector<128x1xf32>
      %cst_57 = arith.constant 1.000000e+00 : f32
      %70 = vector.broadcast %cst_57 : f32 to vector<128x1xf32>
      %71 = arith.divf %70, %69 : vector<128x1xf32>
      %c1_58 = arith.constant 1 : index
      %c0_59 = arith.constant 0 : index
      %c0_60 = arith.constant 0 : index
      %72 = vector.load %arg15[%c1_58, %c0_59, %c0_60] : memref<4x128x8xf32, #tpu.memory_space<vmem>>, vector<1x128x8xf32>
      %73 = vector.shape_cast %72 : vector<1x128x8xf32> to vector<128x8xf32>
      %74 = vector.broadcast %71 : vector<128x1xf32> to vector<128x8xf32>
      %75 = arith.mulf %73, %74 : vector<128x8xf32>
      %76 = arith.truncf %75 : vector<128x8xf32> to vector<128x8xbf16>
      %c1_61 = arith.constant 1 : index
      %c0_62 = arith.constant 0 : index
      %c0_63 = arith.constant 0 : index
      %77 = vector.load %arg8[%c1_61, %c0_62, %c0_63] : memref<4x8x128xbf16, #tpu.memory_space<vmem>>, vector<1x8x128xbf16>
      %78 = vector.shape_cast %77 : vector<1x8x128xbf16> to vector<8x128xbf16>
      %cst_64 = arith.constant dense<0.000000e+00> : vector<128x128xf32>
      %79 = tpu.matmul %76, %78, %cst_64 {dimension_numbers = #tpu.dot_dimension_numbers<[1], [0], [0], [1], [0, 0, 1, 1], [], []>} : vector<128x8xbf16>, vector<8x128xbf16>, vector<128x128xf32> -> vector<128x128xf32>
      %80 = arith.addf %67, %79 : vector<128x128xf32>
      %c2 = arith.constant 2 : index
      %c0_65 = arith.constant 0 : index
      %c0_66 = arith.constant 0 : index
      %81 = vector.load %arg14[%c2, %c0_65, %c0_66] : memref<4x128x1xf32, #tpu.memory_space<vmem>>, vector<1x128x1xf32>
      %82 = vector.shape_cast %81 : vector<1x128x1xf32> to vector<128x1xf32>
      %cst_67 = arith.constant 1.000000e+00 : f32
      %83 = vector.broadcast %cst_67 : f32 to vector<128x1xf32>
      %84 = arith.divf %83, %82 : vector<128x1xf32>
      %c2_68 = arith.constant 2 : index
      %c0_69 = arith.constant 0 : index
      %c0_70 = arith.constant 0 : index
      %85 = vector.load %arg15[%c2_68, %c0_69, %c0_70] : memref<4x128x8xf32, #tpu.memory_space<vmem>>, vector<1x128x8xf32>
      %86 = vector.shape_cast %85 : vector<1x128x8xf32> to vector<128x8xf32>
      %87 = vector.broadcast %84 : vector<128x1xf32> to vector<128x8xf32>
      %88 = arith.mulf %86, %87 : vector<128x8xf32>
      %89 = arith.truncf %88 : vector<128x8xf32> to vector<128x8xbf16>
      %c2_71 = arith.constant 2 : index
      %c0_72 = arith.constant 0 : index
      %c0_73 = arith.constant 0 : index
      %90 = vector.load %arg8[%c2_71, %c0_72, %c0_73] : memref<4x8x128xbf16, #tpu.memory_space<vmem>>, vector<1x8x128xbf16>
      %91 = vector.shape_cast %90 : vector<1x8x128xbf16> to vector<8x128xbf16>
      %cst_74 = arith.constant dense<0.000000e+00> : vector<128x128xf32>
      %92 = tpu.matmul %89, %91, %cst_74 {dimension_numbers = #tpu.dot_dimension_numbers<[1], [0], [0], [1], [0, 0, 1, 1], [], []>} : vector<128x8xbf16>, vector<8x128xbf16>, vector<128x128xf32> -> vector<128x128xf32>
      %93 = arith.addf %80, %92 : vector<128x128xf32>
      %c3 = arith.constant 3 : index
      %c0_75 = arith.constant 0 : index
      %c0_76 = arith.constant 0 : index
      %94 = vector.load %arg14[%c3, %c0_75, %c0_76] : memref<4x128x1xf32, #tpu.memory_space<vmem>>, vector<1x128x1xf32>
      %95 = vector.shape_cast %94 : vector<1x128x1xf32> to vector<128x1xf32>
      %cst_77 = arith.constant 1.000000e+00 : f32
      %96 = vector.broadcast %cst_77 : f32 to vector<128x1xf32>
      %97 = arith.divf %96, %95 : vector<128x1xf32>
      %c3_78 = arith.constant 3 : index
      %c0_79 = arith.constant 0 : index
      %c0_80 = arith.constant 0 : index
      %98 = vector.load %arg15[%c3_78, %c0_79, %c0_80] : memref<4x128x8xf32, #tpu.memory_space<vmem>>, vector<1x128x8xf32>
      %99 = vector.shape_cast %98 : vector<1x128x8xf32> to vector<128x8xf32>
      %100 = vector.broadcast %97 : vector<128x1xf32> to vector<128x8xf32>
      %101 = arith.mulf %99, %100 : vector<128x8xf32>
      %102 = arith.truncf %101 : vector<128x8xf32> to vector<128x8xbf16>
      %c3_81 = arith.constant 3 : index
      %c0_82 = arith.constant 0 : index
      %c0_83 = arith.constant 0 : index
      %103 = vector.load %arg8[%c3_81, %c0_82, %c0_83] : memref<4x8x128xbf16, #tpu.memory_space<vmem>>, vector<1x8x128xbf16>
      %104 = vector.shape_cast %103 : vector<1x8x128xbf16> to vector<8x128xbf16>
      %cst_84 = arith.constant dense<0.000000e+00> : vector<128x128xf32>
      %105 = tpu.matmul %102, %104, %cst_84 {dimension_numbers = #tpu.dot_dimension_numbers<[1], [0], [0], [1], [0, 0, 1, 1], [], []>} : vector<128x8xbf16>, vector<8x128xbf16>, vector<128x128xf32> -> vector<128x128xf32>
      %106 = arith.addf %93, %105 : vector<128x128xf32>
      %c0_85 = arith.constant 0 : index
      %c0_86 = arith.constant 0 : index
      %107 = vector.load %arg10[%c0_85, %c0_86] : memref<1x128xf32, #tpu.memory_space<vmem>>, vector<1x128xf32>
      %108 = vector.broadcast %107 : vector<1x128xf32> to vector<128x128xf32>
      %109 = arith.mulf %106, %108 : vector<128x128xf32>
      %c0_87 = arith.constant 0 : index
      %c0_88 = arith.constant 0 : index
      %110 = vector.load %arg11[%c0_87, %c0_88] : memref<1x128xf32, #tpu.memory_space<vmem>>, vector<1x128xf32>
      %111 = vector.broadcast %110 : vector<1x128xf32> to vector<128x128xf32>
      %112 = arith.addf %109, %111 : vector<128x128xf32>
      %c0_89 = arith.constant 0 : index
      %c0_90 = arith.constant 0 : index
      %c0_91 = arith.constant 0 : index
      %113 = vector.load %arg12[%c0_89, %c0_90, %c0_91] : memref<1x128x128xf32, #tpu.memory_space<vmem>>, vector<1x128x128xf32>
      %114 = vector.shape_cast %113 : vector<1x128x128xf32> to vector<128x128xf32>
      %115 = vector.shape_cast %112 : vector<128x128xf32> to vector<1x128x128xf32>
      tpu.vector_store %arg12[%c0_89, %c0_90, %c0_91], %115 {strides = array<i32>} : memref<1x128x128xf32, #tpu.memory_space<vmem>>, vector<1x128x128xf32>,
    } else {
    }
    return
  }
  func.func @transform_0(%arg0: i32, %arg1: i32, %arg2: i32) -> (i32, i32, i32, i32) {
    %c0_i32 = arith.constant 0 : i32
    %c0_i32_0 = arith.constant 0 : i32
    %c0_i32_1 = arith.constant 0 : i32
    return %arg0, %c0_i32, %arg1, %c0_i32_0 : i32, i32, i32, i32
  }
  func.func @transform_1(%arg0: i32, %arg1: i32, %arg2: i32) -> (i32, i32, i32, i32) {
    %c0_i32 = arith.constant 0 : i32
    %c0_i32_0 = arith.constant 0 : i32
    %c0_i32_1 = arith.constant 0 : i32
    return %arg0, %c0_i32, %arg2, %c0_i32_0 : i32, i32, i32, i32
  }
  func.func @transform_2(%arg0: i32, %arg1: i32, %arg2: i32) -> (i32, i32, i32, i32) {
    %c0_i32 = arith.constant 0 : i32
    %c0_i32_0 = arith.constant 0 : i32
    %c0_i32_1 = arith.constant 0 : i32
    return %arg0, %c0_i32, %arg2, %c0_i32_0 : i32, i32, i32, i32
  }
  func.func @transform_3(%arg0: i32, %arg1: i32, %arg2: i32) -> (i32, i32, i32) {
    %c0_i32 = arith.constant 0 : i32
    return %arg0, %arg1, %arg2 : i32, i32, i32
  }
  func.func @transform_4(%arg0: i32, %arg1: i32, %arg2: i32) -> (i32, i32, i32) {
    %c0_i32 = arith.constant 0 : i32
    %c0_i32_0 = arith.constant 0 : i32
    return %arg0, %arg1, %c0_i32 : i32, i32, i32
  }
  func.func @transform_5(%arg0: i32, %arg1: i32, %arg2: i32) -> (i32, i32, i32) {
    %c0_i32 = arith.constant 0 : i32
    %c0_i32_0 = arith.constant 0 : i32
    %c0_i32_1 = arith.constant 0 : i32
    %c0_i32_2 = arith.constant 0 : i32
    return %c0_i32, %c0_i32_0, %c0_i32_1 : i32, i32, i32
  }
  func.func @transform_6(%arg0: i32, %arg1: i32, %arg2: i32) -> (i32, i32) {
    %c0_i32 = arith.constant 0 : i32
    %c0_i32_0 = arith.constant 0 : i32
    %c0_i32_1 = arith.constant 0 : i32
    return %c0_i32, %c0_i32_0 : i32, i32
  }
  func.func @transform_7(%arg0: i32, %arg1: i32, %arg2: i32) -> (i32, i32) {
    %c0_i32 = arith.constant 0 : i32
    %c0_i32_0 = arith.constant 0 : i32
    %c0_i32_1 = arith.constant 0 : i32
    return %c0_i32, %c0_i32_0 : i32, i32
  }
  func.func @transform_8(%arg0: i32, %arg1: i32, %arg2: i32) -> (i32, i32) {
    %c0_i32 = arith.constant 0 : i32
    %c0_i32_0 = arith.constant 0 : i32
    %c0_i32_1 = arith.constant 0 : i32
    return %c0_i32, %c0_i32_0 : i32, i32
  }
  func.func @transform_9(%arg0: i32, %arg1: i32, %arg2: i32) -> (i32, i32, i32) {
    %c0_i32 = arith.constant 0 : i32
    %c0_i32_0 = arith.constant 0 : i32
    return %arg0, %arg1, %c0_i32 : i32, i32, i32
  }
}

</mosaic_0001>

<bundles_post_ra>
// kernel: tpu_custom_call.1
= control target key start
LH: loop header
LB: loop body
LE: loop exit
PB: predicated region body
PF: predicated region fallthrough
CT: control target
= control target key end

     0   :  { %14 = vsyncpa [#allocation6], 0  ;;  %s10347_s0 = inlined_call_operand.vmem [shape: bf16[2,4,128,8], index: 0, kind: input, shape index: {}]   ;;  %s10348_s1 = inlined_call_operand.vmem [shape: bf16[2,4,128,8], index: 1, kind: input, shape index: {}]   ;;  %s10349_s2 = inlined_call_operand.vmem [shape: bf16[2,4,128,8], index: 2, kind: input, shape index: {}]   ;;  %s10350_s3 = inlined_call_operand.vmem [shape: bf16[2,128,128], index: 3, kind: input, shape index: {}]   ;;  %s10351_s4 = inlined_call_operand.vmem [shape: f32[2,128,128], index: 4, kind: input, shape index: {}]   ;;  %s10352_s5 = inlined_call_operand.vmem [shape: bf16[4,8,128], index: 5, kind: input, shape index: {}]   ;;  %s10353_s6 = inlined_call_operand.vmem [shape: f32[1,128], index: 6, kind: input, shape index: {}]   ;;  %s10354_s7 = inlined_call_operand.vmem [shape: f32[1,128], index: 7, kind: input, shape index: {}]   ;;  %s10355_s8 = inlined_call_operand.vmem [shape: f32[1,128], index: 8, kind: input, shape index: {}]   ;;  %s10356_s9 = inlined_call_operand.hbm [shape: f32[2,128,128], index: 9, kind: output, shape index: {}]  }
   0x1   :  { %16 = vsyncpa [#allocation6 + $0x1], 0  ;;  %s7426_s30 = smov 0   ;;  %s7428_s10 = smov 0  }
   0x2   :  { %s7430_s11 = smov 0   ;;  %s7432_s12 = smov 0  }
   0x3   :  { %s7434_s13 = smov 0   ;;  %s7436_s14 = smov 0  }
   0x4 LB: > { %s5990_s15 = sadd.s32 4294967295, %s7368_s14   ;;  %s5991_s16 = sadd.s32 4294967294, %s7368_s14   ;;  %s7368_s14 = sphi %s7436_s14, %s22_s14   ;;  %s7364_s13 = sphi %s7434_s13, %s10901_s13   ;;  %s7360_s12 = sphi %s7432_s12, %s10900_s12   ;;  %s7356_s11 = sphi %s7430_s11, %s10899_s11   ;;  %s7352_s10 = sphi %s7428_s10, %s10898_s10   ;;  %s7348_s30 = sphi %s7426_s30, %s10897_s30  }
   0x5   : > { %s41_s17 = sadd.s32 1, %s7364_s13  ;;  %s276_s18 = sadd.s32 1, %s7356_s11 }
   0x6   : > { %p43_p0 = scmp.ge.s32.totalorder %s41_s17, 2  ;;  %p286_p1 = scmp.ne.s32.totalorder %s7356_s11, %s7352_s10 }
   0x7   : > { %p287_p2 = scmp.eq.s32.totalorder %s5990_s15, 1  ;;  %p292_p3 = scmp.ne.s32.totalorder %s7352_s10, %s7348_s30 }
   0x8   : > { %s10903_s17 = smov (%p43_p0, %s41_s17), 0  ;;  %p293_p5 = scmp.eq.s32.totalorder %s5991_s16, 1 }
   0x9   : > { %p7466_p4 = por %p287_p2, %p286_p1  ;;  %s271_s20 = ssub.s32 %s7364_s13, %s10903_s17 }
   0xa   : > { %p5994_p6 = scmp.ge.s32.totalorder %s7368_s14, 1  ;;  %p274_p7 = scmp.eq.s32.totalorder %s271_s20, 0 }
   0xb   : > { %p7473_p8 = por %p293_p5, %p292_p3  ;;  %p391_p9 = scmp.lt.s32.totalorder %s7368_s14, 3 }
   0xc   : > { %s7479_s22 = scalar_select %p274_p7, %s7356_s11, %s276_s18  }
   0xd   : > { %p392_p10 = pnand %p5994_p6, %p391_p9 }
   0xf   : > { %395 = sbr.rel (%p392_p10) target bundleno = 1368 (0x558), region = 56 }
  0x14   : > { %p471_p11 = scmp.lt.s32.totalorder %s7360_s12, 1  ;;  %vm658_vm0 = vcmask 64512   ;;  %vm529_vm2 = vcmask 7168   ;;  %vm4702_vm3 = vcmask 1043456  }
  0x16   : > { %s7483_s23 = scalar_select %p471_p11, %s7360_s12, 1 }
  0x18   : > { %s7486_s24 = sshll.u32 %s7483_s23, 8  ;;  %s6180_s16 = sshll.u32 %s7483_s23, 6 }
  0x19   : > { %s7492_s27 = scalar_lea.vmem %s10348_s1, %s7486_s24  ;;  %s7514_s15 = scalar_lea.vmem %s10347_s0, %s7486_s24 }
  0x1a   : > { %v6812_v0 = vld [vmem:[%s7492_s27 + $0x38] sm:$0xff]   ;;  %v6814_v3 = vld [vmem:[%s7492_s27 + $0x30] sm:$0xff]   ;;  %v6816_v7 = vld [vmem:[%s7492_s27 + $0x28] sm:$0xff]   ;;  %s7664_s25 = scalar_lea.vmem %s10350_s3, %s6180_s16  ;;  %s8427_s28 = scalar_lea.vmem %s10349_s2, %s7486_s24 }
  0x1b   : > { %v6813_v1 = vld [vmem:[%s7492_s27 + $0x78] sm:$0xff]   ;;  %6714 = vmatprep.subr.msk.bf16.mxu0 %vm658_vm0, %v6812_v0  ;;  %v1096_v2 = vsel %vm658_vm0, %v6812_v0, 0  ;;  %v6815_v5 = vld [vmem:[%s7492_s27 + $0x70] sm:$0xff]   ;;  %v1093_v6 = vsel %vm658_vm0, %v6814_v3, 0  ;;  %v6817_v9 = vld [vmem:[%s7492_s27 + $0x68] sm:$0xff]   ;;  %v1090_v12 = vsel %vm658_vm0, %v6816_v7, 0 }
  0x1c   : > { %6722 = vmatprep.subr.msk.bf16.mxu1 %vm658_vm0, %v6813_v1  ;;  %6387 = vmatpush3.bf16.xpose.msra.mxu0 %v1096_v2  ;;  %v1321_v4 = vsel %vm658_vm0, %v6813_v1, 0  ;;  %v1318_v8 = vsel %vm658_vm0, %v6815_v5, 0  ;;  %v6818_v10 = vld [vmem:[%s7492_s27 + $0x20] sm:$0xff]   ;;  %v1315_v14 = vsel %vm658_vm0, %v6817_v9, 0  ;;  %v6820_v17 = vld [vmem:[%s7492_s27 + $0x18] sm:$0xff]   ;;  %v6822_v21 = vld [vmem:[%s7492_s27 + $0x10] sm:$0xff]  }
  0x1d   : > { %6419 = vmatpush3.bf16.xpose.msra.mxu1 %v1321_v4  ;;  %6715 = vmatprep.subr.msk.bf16.mxu0 %vm658_vm0, %v6814_v3  ;;  %v6819_v11 = vld [vmem:[%s7492_s27 + $0x60] sm:$0xff]   ;;  %v1087_v16 = vsel %vm658_vm0, %v6818_v10, 0  ;;  %v6821_v19 = vld [vmem:[%s7492_s27 + $0x58] sm:$0xff]   ;;  %v1084_v20 = vsel %vm658_vm0, %v6820_v17, 0  ;;  %v6823_v23 = vld [vmem:[%s7492_s27 + $0x50] sm:$0xff]   ;;  %v1081_v24 = vsel %vm658_vm0, %v6822_v21, 0 }
  0x1e   : > { %6723 = vmatprep.subr.msk.bf16.mxu1 %vm658_vm0, %v6815_v5  ;;  %v6828_v13 = vld [vmem:[%s7514_s15] sm:$0xff]   ;;  %v1312_v18 = vsel %vm658_vm0, %v6819_v11, 0  ;;  %v1309_v22 = vsel %vm658_vm0, %v6821_v19, 0  ;;  %v6824_v25 = vld [vmem:[%s7492_s27 + $0x8] sm:$0xff]   ;;  %v1306_v26 = vsel %vm658_vm0, %v6823_v23, 0  ;;  %v6832_v33 = vld [vmem:[%s7492_s27 + $0xb8] sm:$0xff]  }
  0x1f   : > { %v6829_v15 = vld [vmem:[%s7514_s15 + $0x40] sm:$0xff]   ;;  %6402 = vmatprep.mubr.msk.bf16.mxu0 %vm658_vm0, %v6828_v13  ;;  %v6825_v27 = vld [vmem:[%s7492_s27 + $0x48] sm:$0xff]   ;;  %v1078_v28 = vsel %vm658_vm0, %v6824_v25, 0  ;;  %v6833_v35 = vld [vmem:[%s7492_s27 + $0xf8] sm:$0xff]   ;;  %v1546_v38 = vsel %vm658_vm0, %v6832_v33, 0  ;;  %s467_s16 = sand.u32 1, %s7352_s10  }
  0x20   : > { %6434 = vmatprep.mubr.msk.bf16.mxu1 %vm658_vm0, %v6829_v15  ;;  %v6826_v29 = vld [vmem:[%s7492_s27] sm:$0xff]   ;;  %v1303_v30 = vsel %vm658_vm0, %v6825_v27, 0  ;;  %v6830_v36 = vld [vmem:[%s7514_s15 + $0x8] sm:$0xff]   ;;  %v6834_v39 = vld [vmem:[%s7492_s27 + $0xb0] sm:$0xff]   ;;  %v1771_v40 = vsel %vm658_vm0, %v6833_v35, 0  ;;  %s6182_s24 = sshll.u32 %s7360_s12, 11 }
  0x21   : > { %v6827_v31 = vld [vmem:[%s7492_s27 + $0x40] sm:$0xff]   ;;  %v1075_v32 = vsel %vm658_vm0, %v6826_v29, 0  ;;  %v6831_v37 = vld [vmem:[%s7514_s15 + $0x48] sm:$0xff]   ;;  %v6835_v41 = vld [vmem:[%s7492_s27 + $0xf0] sm:$0xff]   ;;  %v1543_v46 = vsel %vm658_vm0, %v6834_v39, 0  ;;  %s10293_s18 = scalar_lea.hbm %s10356_s9, %s6182_s24  ;;  %s10302_s12 = scalar_lea.sflag [#allocation6], %s467_s16 }
  0x22   : > { %v1300_v34 = vsel %vm658_vm0, %v6827_v31, 0  ;;  %v6836_v42 = vld [vmem:[%s7514_s15 + $0x10] sm:$0xff]   ;;  %v6837_v44 = vld [vmem:[%s7514_s15 + $0x18] sm:$0xff]   ;;  %v6840_v47 = vld [vmem:[%s7492_s27 + $0xa8] sm:$0xff]   ;;  %v1768_v48 = vsel %vm658_vm0, %v6835_v41, 0 }
  0x23   : > { %v6838_v43 = vld [vmem:[%s7514_s15 + $0x50] sm:$0xff]   ;;  %v6839_v45 = vld [vmem:[%s7514_s15 + $0x58] sm:$0xff]   ;;  %v6841_v49 = vld [vmem:[%s7492_s27 + $0xe8] sm:$0xff]   ;;  %v1540_v54 = vsel %vm658_vm0, %v6840_v47, 0 }
  0x24   : > { %6389 = vmatpush3.bf16.xpose.msra.mxu0 %v1093_v6  ;;  %v6844_v50 = vld [vmem:[%s7514_s15 + $0x20] sm:$0xff]   ;;  %v6845_v52 = vld [vmem:[%s7514_s15 + $0x28] sm:$0xff]   ;;  %v1765_v56 = vsel %vm658_vm0, %v6841_v49, 0  ;;  %v6852_v58 = vld [vmem:[%s7514_s15 + $0x30] sm:$0xff]  }
  0x25   : > { %6421 = vmatpush3.bf16.xpose.msra.mxu1 %v1318_v8  ;;  %6716 = vmatprep.subr.msk.bf16.mxu0 %vm658_vm0, %v6816_v7  ;;  %v6846_v51 = vld [vmem:[%s7514_s15 + $0x60] sm:$0xff]   ;;  %v6847_v53 = vld [vmem:[%s7514_s15 + $0x68] sm:$0xff]   ;;  %v6854_v59 = vld [vmem:[%s7514_s15 + $0x70] sm:$0xff]  }
  0x26   : > { %6724 = vmatprep.subr.msk.bf16.mxu1 %vm658_vm0, %v6817_v9  ;;  %v6842_v55 = vld [vmem:[%s7492_s27 + $0xa0] sm:$0xff]   ;;  %v6853_v60 = vld [vmem:[%s7514_s15 + $0x38] sm:$0xff]   ;;  %v6850_v5 = vld [vmem:[%s7492_s27 + $0x90] sm:$0xff]  }
  0x27   : > { %v6843_v57 = vld [vmem:[%s7492_s27 + $0xe0] sm:$0xff]   ;;  %v6855_v61 = vld [vmem:[%s7514_s15 + $0x78] sm:$0xff]   ;;  %v1537_v62 = vsel %vm658_vm0, %v6842_v55, 0  ;;  %v6851_v7 = vld [vmem:[%s7492_s27 + $0xd0] sm:$0xff]   ;;  %v1531_v8 = vsel %vm658_vm0, %v6850_v5, 0 }
  0x28   : > { %v6848_v63 = vld [vmem:[%s7492_s27 + $0x98] sm:$0xff]   ;;  %v1762_v0 = vsel %vm658_vm0, %v6843_v57, 0  ;;  %v6860_v2 = vld [vmem:[%s7514_s15 + $0x80] sm:$0xff]   ;;  %v6856_v9 = vld [vmem:[%s7492_s27 + $0x88] sm:$0xff]  }
  0x29   : > { %v6849_v1 = vld [vmem:[%s7492_s27 + $0xd8] sm:$0xff]   ;;  %v6861_v3 = vld [vmem:[%s7514_s15 + $0xc0] sm:$0xff]   ;;  %v1534_v4 = vsel %vm658_vm0, %v6848_v63, 0 }
  0x2a   : > { %v1759_v6 = vsel %vm658_vm0, %v6849_v1, 0  ;;  %v6858_v13 = vld [vmem:[%s7492_s27 + $0x80] sm:$0xff]  }
  0x2b   : > { %v6859_v15 = vld [vmem:[%s7492_s27 + $0xc0] sm:$0xff]  }
  0x2c   : > { %6391 = vmatpush3.bf16.xpose.msra.mxu0 %v1090_v12  ;;  %v1528_v12 = vsel %vm658_vm0, %v6856_v9, 0 }
  0x2d   : > { %6423 = vmatpush3.bf16.xpose.msra.mxu1 %v1315_v14  ;;  %6717 = vmatprep.subr.msk.bf16.mxu0 %vm658_vm0, %v6818_v10  ;;  %v1756_v10 = vsel %vm658_vm0, %v6851_v7, 0 }
  0x2e   : > { %6725 = vmatprep.subr.msk.bf16.mxu1 %vm658_vm0, %v6819_v11  ;;  %v6857_v11 = vld [vmem:[%s7492_s27 + $0xc8] sm:$0xff]   ;;  %s6181_s27 = sshll.u32 %s7483_s23, 7 }
  0x2f   : > { %v1753_v14 = vsel %vm658_vm0, %v6857_v11, 0  ;;  %s10151_s29 = scalar_lea.vmem %s10351_s4, %s6181_s27 }
  0x34   : > { %6393 = vmatpush3.bf16.xpose.msra.mxu0 %v1087_v16  ;;  %v1525_v16 = vsel %vm658_vm0, %v6858_v13, 0 }
  0x35   : > { %6425 = vmatpush3.bf16.xpose.msra.mxu1 %v1312_v18  ;;  %6718 = vmatprep.subr.msk.bf16.mxu0 %vm658_vm0, %v6820_v17  ;;  %v1750_v17 = vsel %vm658_vm0, %v6859_v15, 0  ;;  %v6862_v18 = vld [vmem:[%s7514_s15 + $0x88] sm:$0xff]  }
  0x36   : > { %6726 = vmatprep.subr.msk.bf16.mxu1 %vm658_vm0, %v6821_v19  ;;  %v6863_v19 = vld [vmem:[%s7514_s15 + $0xc8] sm:$0xff]  }
  0x3c   : > { %6395 = vmatpush3.bf16.xpose.msra.mxu0 %v1084_v20  ;;  %v6864_v20 = vld [vmem:[%s7514_s15 + $0x90] sm:$0xff]  }
  0x3d   : > { %6427 = vmatpush3.bf16.xpose.msra.mxu1 %v1309_v22  ;;  %6719 = vmatprep.subr.msk.bf16.mxu0 %vm658_vm0, %v6822_v21  ;;  %v6866_v21 = vld [vmem:[%s7514_s15 + $0xd0] sm:$0xff]   ;;  %v6865_v22 = vld [vmem:[%s7514_s15 + $0x98] sm:$0xff]  }
  0x3e   : > { %6727 = vmatprep.subr.msk.bf16.mxu1 %vm658_vm0, %v6823_v23  ;;  %v6867_v23 = vld [vmem:[%s7514_s15 + $0xd8] sm:$0xff]  }
  0x44   : > { %6397 = vmatpush3.bf16.xpose.msra.mxu0 %v1081_v24  ;;  %v6868_v24 = vld [vmem:[%s7514_s15 + $0xa0] sm:$0xff]  }
  0x45   : > { %6429 = vmatpush3.bf16.xpose.msra.mxu1 %v1306_v26  ;;  %6720 = vmatprep.subr.msk.bf16.mxu0 %vm658_vm0, %v6824_v25  ;;  %v6870_v25 = vld [vmem:[%s7514_s15 + $0xe0] sm:$0xff]   ;;  %v6869_v26 = vld [vmem:[%s7514_s15 + $0xa8] sm:$0xff]  }
  0x46   : > { %6728 = vmatprep.subr.msk.bf16.mxu1 %vm658_vm0, %v6825_v27  ;;  %v6871_v27 = vld [vmem:[%s7514_s15 + $0xe8] sm:$0xff]  }
  0x4c   : > { %6399 = vmatpush3.bf16.xpose.msra.mxu0 %v1078_v28  ;;  %v6872_v28 = vld [vmem:[%s7514_s15 + $0xb0] sm:$0xff]  }
  0x4d   : > { %6431 = vmatpush3.bf16.xpose.msra.mxu1 %v1303_v30  ;;  %6721 = vmatprep.subr.msk.bf16.mxu0 %vm658_vm0, %v6826_v29  ;;  %v6874_v29 = vld [vmem:[%s7514_s15 + $0xf0] sm:$0xff]   ;;  %v6873_v30 = vld [vmem:[%s7514_s15 + $0xb8] sm:$0xff]  }
  0x4e   : > { %6729 = vmatprep.subr.msk.bf16.mxu1 %vm658_vm0, %v6827_v31  ;;  %v6875_v31 = vld [vmem:[%s7514_s15 + $0xf8] sm:$0xff]  }
  0x54   : > { %6401 = vmatpush3.bf16.xpose.msra.mxu0 %v1075_v32  ;;  %v756_v32 = vlaneseq }
  0x55   : > { %6433 = vmatpush3.bf16.xpose.msra.mxu1 %v1300_v34  ;;  %6730 = vmatprep.subr.msk.bf16.mxu0 %vm658_vm0, %v6832_v33  ;;  %v6215_v33 = vld [vmem:[%s7664_s25 + $0x8] sm:$0xff]  }
  0x56   : > { %6738 = vmatprep.subr.msk.bf16.mxu1 %vm658_vm0, %v6833_v35  ;;  %v7667_v34 = vand.u32 127, %v756_v32  ;;  %v6189_v35 = vunpack.c.l.bf16 %v6215_v33 }
  0x58   : > { %vm760_vm1 = vcmp.lt.s32.totalorder %v7667_v34, 8 }
  0x5b   : > { %6403 = vmatmul.mubr.msk.bf16.vlgmr.msra.gmra.mxu0 %vm658_vm0, %v6830_v36  ;;  %v7671_v36 = vld [vmem:[%s7664_s25] sm:$0xff]  }
  0x5c   : > { %6435 = vmatmul.mubr.msk.bf16.vlgmr.msra.gmra.mxu1 %vm658_vm0, %v6831_v37  ;;  %6451 = vmatpush3.bf16.xpose.msra.mxu0 %v1546_v38  ;;  %v7675_v37 = vsel %vm760_vm1, %v6189_v35, -1e+09  ;;  %v6190_v38 = vunpack.c.h.bf16 %v6215_v33 }
  0x5d   : > { %6483 = vmatpush3.bf16.xpose.msra.mxu1 %v1771_v40  ;;  %6731 = vmatprep.subr.msk.bf16.mxu0 %vm658_vm0, %v6834_v39  ;;  %v6185_v39 = vunpack.c.l.bf16 %v7671_v36 }
  0x5e   : > { %6739 = vmatprep.subr.msk.bf16.mxu1 %vm658_vm0, %v6835_v41  ;;  %6406 = vmatprep.mubr.msk.bf16.mxu0 %vm658_vm0, %v6836_v42 }
  0x5f   : > { %6438 = vmatprep.mubr.msk.bf16.mxu1 %vm658_vm0, %v6838_v43 }
  0x63   : > { %6407 = vmatmul.mubr.msk.bf16.gmra.mxu0 %vm658_vm0, %v6837_v44 }
  0x64   : > { %6453 = vmatpush3.bf16.xpose.msra.mxu0 %v1543_v46  ;;  %6439 = vmatmul.mubr.msk.bf16.gmra.mxu1 %vm658_vm0, %v6839_v45  ;;  %v7688_v45 = vsel %vm760_vm1, %v6190_v38, -1e+09  ;;  %v7692_v46 = vsel %vm760_vm1, %v6185_v39, -1e+09 }
  0x65   : > { %6485 = vmatpush3.bf16.xpose.msra.mxu1 %v1768_v48  ;;  %6732 = vmatprep.subr.msk.bf16.mxu0 %vm658_vm0, %v6840_v47 }
  0x66   : > { %6740 = vmatprep.subr.msk.bf16.mxu1 %vm658_vm0, %v6841_v49  ;;  %6410 = vmatprep.mubr.msk.bf16.mxu0 %vm658_vm0, %v6844_v50  ;;  %v7370_v49 = vmov -1e+30  }
  0x67   : > { %6442 = vmatprep.mubr.msk.bf16.mxu1 %vm658_vm0, %v6846_v51  ;;  %548 = vst.msk [vmem:[#allocation2 + $0x90] sm:$0xff] %vm529_vm2, %v7370_v49  ;;  %530 = vst.msk [vmem:[#allocation2] sm:$0xff] %vm529_vm2, %v7370_v49 }
  0x68   : > { %531 = vst.msk [vmem:[#allocation2 + $0x8] sm:$0xff] %vm529_vm2, %v7370_v49  ;;  %532 = vst.msk [vmem:[#allocation2 + $0x10] sm:$0xff] %vm529_vm2, %v7370_v49 }
  0x69   : > { %533 = vst.msk [vmem:[#allocation2 + $0x18] sm:$0xff] %vm529_vm2, %v7370_v49  ;;  %534 = vst.msk [vmem:[#allocation2 + $0x20] sm:$0xff] %vm529_vm2, %v7370_v49 }
  0x6a   : > { %535 = vst.msk [vmem:[#allocation2 + $0x28] sm:$0xff] %vm529_vm2, %v7370_v49  ;;  %536 = vst.msk [vmem:[#allocation2 + $0x30] sm:$0xff] %vm529_vm2, %v7370_v49 }
  0x6b   : > { %6411 = vmatmul.mubr.msk.bf16.gmra.mxu0 %vm658_vm0, %v6845_v52  ;;  %537 = vst.msk [vmem:[#allocation2 + $0x38] sm:$0xff] %vm529_vm2, %v7370_v49  ;;  %538 = vst.msk [vmem:[#allocation2 + $0x40] sm:$0xff] %vm529_vm2, %v7370_v49  ;;  %v6217_v52 = vld [vmem:[%s7664_s25 + $0x18] sm:$0xff]  }
  0x6c   : > { %6455 = vmatpush3.bf16.xpose.msra.mxu0 %v1540_v54  ;;  %6443 = vmatmul.mubr.msk.bf16.gmra.mxu1 %vm658_vm0, %v6847_v53  ;;  %539 = vst.msk [vmem:[#allocation2 + $0x48] sm:$0xff] %vm529_vm2, %v7370_v49  ;;  %540 = vst.msk [vmem:[#allocation2 + $0x50] sm:$0xff] %vm529_vm2, %v7370_v49  ;;  %v6186_v54 = vunpack.c.h.bf16 %v7671_v36  ;;  %v6218_v36 = vld [vmem:[%s7664_s25 + $0x20] sm:$0xff]  }
  0x6d   : > { %6487 = vmatpush3.bf16.xpose.msra.mxu1 %v1765_v56  ;;  %6733 = vmatprep.subr.msk.bf16.mxu0 %vm658_vm0, %v6842_v55  ;;  %541 = vst.msk [vmem:[#allocation2 + $0x58] sm:$0xff] %vm529_vm2, %v7370_v49  ;;  %542 = vst.msk [vmem:[#allocation2 + $0x60] sm:$0xff] %vm529_vm2, %v7370_v49 }
  0x6e   : > { %6741 = vmatprep.subr.msk.bf16.mxu1 %vm658_vm0, %v6843_v57  ;;  %6414 = vmatprep.mubr.msk.bf16.mxu0 %vm658_vm0, %v6852_v58  ;;  %543 = vst.msk [vmem:[#allocation2 + $0x68] sm:$0xff] %vm529_vm2, %v7370_v49  ;;  %544 = vst.msk [vmem:[#allocation2 + $0x70] sm:$0xff] %vm529_vm2, %v7370_v49  ;;  %v6198_v58 = vunpack.c.h.bf16 %v6217_v52 }
  0x6f   : > { %6446 = vmatprep.mubr.msk.bf16.mxu1 %vm658_vm0, %v6854_v59  ;;  %545 = vst.msk [vmem:[#allocation2 + $0x78] sm:$0xff] %vm529_vm2, %v7370_v49  ;;  %546 = vst.msk [vmem:[#allocation2 + $0x80] sm:$0xff] %vm529_vm2, %v7370_v49 }
  0x70   : > { %547 = vst.msk [vmem:[#allocation2 + $0x88] sm:$0xff] %vm529_vm2, %v7370_v49  ;;  %549 = vst.msk [vmem:[#allocation2 + $0x98] sm:$0xff] %vm529_vm2, %v7370_v49 }
  0x71   : > { %550 = vst.msk [vmem:[#allocation2 + $0xa0] sm:$0xff] %vm529_vm2, %v7370_v49  ;;  %551 = vst.msk [vmem:[#allocation2 + $0xa8] sm:$0xff] %vm529_vm2, %v7370_v49 }
  0x72   : > { %552 = vst.msk [vmem:[#allocation2 + $0xb0] sm:$0xff] %vm529_vm2, %v7370_v49  ;;  %553 = vst.msk [vmem:[#allocation2 + $0xb8] sm:$0xff] %vm529_vm2, %v7370_v49 }
  0x73   : > { %6415 = vmatmul.mubr.msk.bf16.gmra.mxu0 %vm658_vm0, %v6853_v60  ;;  %554 = vst.msk [vmem:[#allocation2 + $0xc0] sm:$0xff] %vm529_vm2, %v7370_v49  ;;  %555 = vst.msk [vmem:[#allocation2 + $0xc8] sm:$0xff] %vm529_vm2, %v7370_v49  ;;  %v6197_v60 = vunpack.c.l.bf16 %v6217_v52 }
  0x74   : > { %6457 = vmatpush3.bf16.xpose.msra.mxu0 %v1537_v62  ;;  %6447 = vmatmul.mubr.msk.bf16.gmra.mxu1 %vm658_vm0, %v6855_v61  ;;  %556 = vst.msk [vmem:[#allocation2 + $0xd0] sm:$0xff] %vm529_vm2, %v7370_v49  ;;  %557 = vst.msk [vmem:[#allocation2 + $0xd8] sm:$0xff] %vm529_vm2, %v7370_v49  ;;  %v7849_v62 = vsel %vm760_vm1, %v6186_v54, -1e+09 }
  0x75   : > { %6489 = vmatpush3.bf16.xpose.msra.mxu1 %v1762_v0  ;;  %6734 = vmatprep.subr.msk.bf16.mxu0 %vm658_vm0, %v6848_v63  ;;  %558 = vst.msk [vmem:[#allocation2 + $0xe0] sm:$0xff] %vm529_vm2, %v7370_v49  ;;  %559 = vst.msk [vmem:[#allocation2 + $0xe8] sm:$0xff] %vm529_vm2, %v7370_v49 }
  0x76   : > { %6742 = vmatprep.subr.msk.bf16.mxu1 %vm658_vm0, %v6849_v1  ;;  %6466 = vmatprep.mubr.msk.bf16.mxu0 %vm658_vm0, %v6860_v2  ;;  %560 = vst.msk [vmem:[#allocation2 + $0xf0] sm:$0xff] %vm529_vm2, %v7370_v49  ;;  %561 = vst.msk [vmem:[#allocation2 + $0xf8] sm:$0xff] %vm529_vm2, %v7370_v49  ;;  %v7855_v1 = vsel %vm760_vm1, %v6198_v58, -1e+09 }
  0x77   : > { %6498 = vmatprep.mubr.msk.bf16.mxu1 %vm658_vm0, %v6861_v3  ;;  %562 = vst.msk [vmem:[#allocation2 + $0x100] sm:$0xff] %vm529_vm2, %v7370_v49  ;;  %563 = vst.msk [vmem:[#allocation2 + $0x108] sm:$0xff] %vm529_vm2, %v7370_v49  ;;  %v7862_v3 = vsel %vm760_vm1, %v6197_v60, -1e+09 }
  0x78   : > { %564 = vst.msk [vmem:[#allocation2 + $0x110] sm:$0xff] %vm529_vm2, %v7370_v49  ;;  %565 = vst.msk [vmem:[#allocation2 + $0x118] sm:$0xff] %vm529_vm2, %v7370_v49 }
  0x79   : > { %566 = vst.msk [vmem:[#allocation2 + $0x120] sm:$0xff] %vm529_vm2, %v7370_v49  ;;  %567 = vst.msk [vmem:[#allocation2 + $0x128] sm:$0xff] %vm529_vm2, %v7370_v49 }
  0x7a   : > { %568 = vst.msk [vmem:[#allocation2 + $0x130] sm:$0xff] %vm529_vm2, %v7370_v49  ;;  %569 = vst.msk [vmem:[#allocation2 + $0x138] sm:$0xff] %vm529_vm2, %v7370_v49 }
  0x7b   : > { %570 = vst.msk [vmem:[#allocation2 + $0x140] sm:$0xff] %vm529_vm2, %v7370_v49  ;;  %571 = vst.msk [vmem:[#allocation2 + $0x148] sm:$0xff] %vm529_vm2, %v7370_v49 }
  0x7c   : > { %6459 = vmatpush3.bf16.xpose.msra.mxu0 %v1534_v4  ;;  %572 = vst.msk [vmem:[#allocation2 + $0x150] sm:$0xff] %vm529_vm2, %v7370_v49  ;;  %573 = vst.msk [vmem:[#allocation2 + $0x158] sm:$0xff] %vm529_vm2, %v7370_v49 }
  0x7d   : > { %6491 = vmatpush3.bf16.xpose.msra.mxu1 %v1759_v6  ;;  %6735 = vmatprep.subr.msk.bf16.mxu0 %vm658_vm0, %v6850_v5  ;;  %574 = vst.msk [vmem:[#allocation2 + $0x160] sm:$0xff] %vm529_vm2, %v7370_v49  ;;  %575 = vst.msk [vmem:[#allocation2 + $0x168] sm:$0xff] %vm529_vm2, %v7370_v49 }
  0x7e   : > { %6743 = vmatprep.subr.msk.bf16.mxu1 %vm658_vm0, %v6851_v7  ;;  %576 = vst.msk [vmem:[#allocation2 + $0x170] sm:$0xff] %vm529_vm2, %v7370_v49  ;;  %577 = vst.msk [vmem:[#allocation2 + $0x178] sm:$0xff] %vm529_vm2, %v7370_v49  ;;  %v6216_v7 = vld [vmem:[%s7664_s25 + $0x10] sm:$0xff]  }
  0x7f   : > { %578 = vst.msk [vmem:[#allocation2 + $0x180] sm:$0xff] %vm529_vm2, %v7370_v49  ;;  %579 = vst.msk [vmem:[#allocation2 + $0x188] sm:$0xff] %vm529_vm2, %v7370_v49 }
  0x80   : > { %580 = vst.msk [vmem:[#allocation2 + $0x190] sm:$0xff] %vm529_vm2, %v7370_v49  ;;  %581 = vst.msk [vmem:[#allocation2 + $0x198] sm:$0xff] %vm529_vm2, %v7370_v49 }
  0x81   : > { %582 = vst.msk [vmem:[#allocation2 + $0x1a0] sm:$0xff] %vm529_vm2, %v7370_v49  ;;  %583 = vst.msk [vmem:[#allocation2 + $0x1a8] sm:$0xff] %vm529_vm2, %v7370_v49 }
  0x82   : > { %584 = vst.msk [vmem:[#allocation2 + $0x1b0] sm:$0xff] %vm529_vm2, %v7370_v49  ;;  %585 = vst.msk [vmem:[#allocation2 + $0x1b8] sm:$0xff] %vm529_vm2, %v7370_v49 }
  0x83   : > { %586 = vst.msk [vmem:[#allocation2 + $0x1c0] sm:$0xff] %vm529_vm2, %v7370_v49  ;;  %587 = vst.msk [vmem:[#allocation2 + $0x1c8] sm:$0xff] %vm529_vm2, %v7370_v49 }
  0x84   : > { %6461 = vmatpush3.bf16.xpose.msra.mxu0 %v1531_v8  ;;  %588 = vst.msk [vmem:[#allocation2 + $0x1d0] sm:$0xff] %vm529_vm2, %v7370_v49  ;;  %589 = vst.msk [vmem:[#allocation2 + $0x1d8] sm:$0xff] %vm529_vm2, %v7370_v49 }
  0x85   : > { %6493 = vmatpush3.bf16.xpose.msra.mxu1 %v1756_v10  ;;  %6736 = vmatprep.subr.msk.bf16.mxu0 %vm658_vm0, %v6856_v9  ;;  %590 = vst.msk [vmem:[#allocation2 + $0x1e0] sm:$0xff] %vm529_vm2, %v7370_v49  ;;  %591 = vst.msk [vmem:[#allocation2 + $0x1e8] sm:$0xff] %vm529_vm2, %v7370_v49  ;;  %v6194_v10 = vunpack.c.h.bf16 %v6216_v7 }
  0x86   : > { %6744 = vmatprep.subr.msk.bf16.mxu1 %vm658_vm0, %v6857_v11  ;;  %592 = vst.msk [vmem:[#allocation2 + $0x1f0] sm:$0xff] %vm529_vm2, %v7370_v49  ;;  %593 = vst.msk [vmem:[#allocation2 + $0x1f8] sm:$0xff] %vm529_vm2, %v7370_v49 }
  0x8c   : > { %6463 = vmatpush3.bf16.xpose.msra.mxu0 %v1528_v12  ;;  %v6193_v12 = vunpack.c.l.bf16 %v6216_v7 }
  0x8d   : > { %6495 = vmatpush3.bf16.xpose.msra.mxu1 %v1753_v14  ;;  %6737 = vmatprep.subr.msk.bf16.mxu0 %vm658_vm0, %v6858_v13 }
  0x8e   : > { %6745 = vmatprep.subr.msk.bf16.mxu1 %vm658_vm0, %v6859_v15 }
  0x94   : > { %6465 = vmatpush3.bf16.xpose.msra.mxu0 %v1525_v16  ;;  %v7371_v16 = vmov 0  }
  0x95   : > { %6497 = vmatpush3.bf16.xpose.msra.mxu1 %v1750_v17  ;;  %6810 = vset.pattern.permute.xlu1 %v7371_v16  ;;  %v7887_v17 = vld [vmem:[%s7664_s25 + $0x28] sm:$0xff]  }
  0x96   : > { %6811 = vset.pattern.permute.xlu0 %v7371_v16  ;;  %v6220_v16 = vld [vmem:[%s7664_s25 + $0x30] sm:$0xff]  }
  0x9b   : > { %6467 = vmatmul.mubr.msk.bf16.vlgmr.msra.gmra.mxu0 %vm658_vm0, %v6862_v18  ;;  %v7891_v18 = vsel %vm760_vm1, %v6194_v10, -1e+09 }
  0x9c   : > { %6499 = vmatmul.mubr.msk.bf16.vlgmr.msra.gmra.mxu1 %vm658_vm0, %v6863_v19  ;;  %6470 = vmatprep.mubr.msk.bf16.mxu0 %vm658_vm0, %v6864_v20  ;;  %v7897_v20 = vsel %vm760_vm1, %v6193_v12, -1e+09 }
  0x9d   : > { %6502 = vmatprep.mubr.msk.bf16.mxu1 %vm658_vm0, %v6866_v21 }
  0xa3   : > { %6471 = vmatmul.mubr.msk.bf16.gmra.mxu0 %vm658_vm0, %v6865_v22  ;;  %v6206_v22 = vunpack.c.h.bf16 %v7887_v17 }
  0xa4   : > { %6503 = vmatmul.mubr.msk.bf16.gmra.mxu1 %vm658_vm0, %v6867_v23  ;;  %6474 = vmatprep.mubr.msk.bf16.mxu0 %vm658_vm0, %v6868_v24  ;;  %v6205_v24 = vunpack.c.l.bf16 %v7887_v17 }
  0xa5   : > { %6506 = vmatprep.mubr.msk.bf16.mxu1 %vm658_vm0, %v6870_v25 }
  0xab   : > { %6475 = vmatmul.mubr.msk.bf16.gmra.mxu0 %vm658_vm0, %v6869_v26 }
  0xac   : > { %6507 = vmatmul.mubr.msk.bf16.gmra.mxu1 %vm658_vm0, %v6871_v27  ;;  %6478 = vmatprep.mubr.msk.bf16.mxu0 %vm658_vm0, %v6872_v28  ;;  %v7372_v28 = vmov 0.0  }
  0xad   : > { %6510 = vmatprep.mubr.msk.bf16.mxu1 %vm658_vm0, %v6874_v29  ;;  %659 = vst.msk [vmem:[#allocation4] sm:$0xff] %vm658_vm0, %v7372_v28  ;;  %660 = vst.msk [vmem:[#allocation4 + $0x8] sm:$0xff] %vm658_vm0, %v7372_v28  ;;  %v8177_v29 = vsel %vm760_vm1, %v6206_v22, -1e+09 }
  0xae   : > { %594 = vst.msk [vmem:[#allocation3] sm:$0xff] %vm529_vm2, %v7372_v28  ;;  %595 = vst.msk [vmem:[#allocation3 + $0x8] sm:$0xff] %vm529_vm2, %v7372_v28 }
  0xaf   : > { %596 = vst.msk [vmem:[#allocation3 + $0x10] sm:$0xff] %vm529_vm2, %v7372_v28  ;;  %597 = vst.msk [vmem:[#allocation3 + $0x18] sm:$0xff] %vm529_vm2, %v7372_v28 }
  0xb0   : > { %598 = vst.msk [vmem:[#allocation3 + $0x20] sm:$0xff] %vm529_vm2, %v7372_v28  ;;  %599 = vst.msk [vmem:[#allocation3 + $0x28] sm:$0xff] %vm529_vm2, %v7372_v28 }
  0xb1   : > { %600 = vst.msk [vmem:[#allocation3 + $0x30] sm:$0xff] %vm529_vm2, %v7372_v28  ;;  %601 = vst.msk [vmem:[#allocation3 + $0x38] sm:$0xff] %vm529_vm2, %v7372_v28 }
  0xb2   : > { %602 = vst.msk [vmem:[#allocation3 + $0x40] sm:$0xff] %vm529_vm2, %v7372_v28  ;;  %603 = vst.msk [vmem:[#allocation3 + $0x48] sm:$0xff] %vm529_vm2, %v7372_v28 }
  0xb3   : > { %6479 = vmatmul.mubr.msk.bf16.gmra.mxu0 %vm658_vm0, %v6873_v30  ;;  %604 = vst.msk [vmem:[#allocation3 + $0x50] sm:$0xff] %vm529_vm2, %v7372_v28  ;;  %605 = vst.msk [vmem:[#allocation3 + $0x58] sm:$0xff] %vm529_vm2, %v7372_v28 }
  0xb4   : > { %6511 = vmatmul.mubr.msk.bf16.gmra.mxu1 %vm658_vm0, %v6875_v31  ;;  %606 = vst.msk [vmem:[#allocation3 + $0x60] sm:$0xff] %vm529_vm2, %v7372_v28  ;;  %607 = vst.msk [vmem:[#allocation3 + $0x68] sm:$0xff] %vm529_vm2, %v7372_v28  ;;  %v8187_v31 = vsel %vm760_vm1, %v6205_v24, -1e+09  ;;  %v6209_v24 = vunpack.c.l.bf16 %v6220_v16 }
  0xb5   : > { %608 = vst.msk [vmem:[#allocation3 + $0x70] sm:$0xff] %vm529_vm2, %v7372_v28  ;;  %609 = vst.msk [vmem:[#allocation3 + $0x78] sm:$0xff] %vm529_vm2, %v7372_v28 }
  0xb6   : > { %610 = vst.msk [vmem:[#allocation3 + $0x80] sm:$0xff] %vm529_vm2, %v7372_v28  ;;  %611 = vst.msk [vmem:[#allocation3 + $0x88] sm:$0xff] %vm529_vm2, %v7372_v28 }
  0xb7   : > { %612 = vst.msk [vmem:[#allocation3 + $0x90] sm:$0xff] %vm529_vm2, %v7372_v28  ;;  %613 = vst.msk [vmem:[#allocation3 + $0x98] sm:$0xff] %vm529_vm2, %v7372_v28 }
  0xb8   : > { %614 = vst.msk [vmem:[#allocation3 + $0xa0] sm:$0xff] %vm529_vm2, %v7372_v28  ;;  %615 = vst.msk [vmem:[#allocation3 + $0xa8] sm:$0xff] %vm529_vm2, %v7372_v28 }
  0xb9   : > { %616 = vst.msk [vmem:[#allocation3 + $0xb0] sm:$0xff] %vm529_vm2, %v7372_v28  ;;  %617 = vst.msk [vmem:[#allocation3 + $0xb8] sm:$0xff] %vm529_vm2, %v7372_v28 }
  0xba   : > { %618 = vst.msk [vmem:[#allocation3 + $0xc0] sm:$0xff] %vm529_vm2, %v7372_v28  ;;  %619 = vst.msk [vmem:[#allocation3 + $0xc8] sm:$0xff] %vm529_vm2, %v7372_v28 }
  0xbb   : > { %620 = vst.msk [vmem:[#allocation3 + $0xd0] sm:$0xff] %vm529_vm2, %v7372_v28  ;;  %621 = vst.msk [vmem:[#allocation3 + $0xd8] sm:$0xff] %vm529_vm2, %v7372_v28 }
  0xbc   : > { %622 = vst.msk [vmem:[#allocation3 + $0xe0] sm:$0xff] %vm529_vm2, %v7372_v28  ;;  %623 = vst.msk [vmem:[#allocation3 + $0xe8] sm:$0xff] %vm529_vm2, %v7372_v28 }
  0xbd   : > { %624 = vst.msk [vmem:[#allocation3 + $0xf0] sm:$0xff] %vm529_vm2, %v7372_v28  ;;  %625 = vst.msk [vmem:[#allocation3 + $0xf8] sm:$0xff] %vm529_vm2, %v7372_v28 }
  0xbe   : > { %626 = vst.msk [vmem:[#allocation3 + $0x100] sm:$0xff] %vm529_vm2, %v7372_v28  ;;  %627 = vst.msk [vmem:[#allocation3 + $0x108] sm:$0xff] %vm529_vm2, %v7372_v28 }
  0xbf   : > { %628 = vst.msk [vmem:[#allocation3 + $0x110] sm:$0xff] %vm529_vm2, %v7372_v28  ;;  %629 = vst.msk [vmem:[#allocation3 + $0x118] sm:$0xff] %vm529_vm2, %v7372_v28 }
  0xc0   : > { %630 = vst.msk [vmem:[#allocation3 + $0x120] sm:$0xff] %vm529_vm2, %v7372_v28  ;;  %631 = vst.msk [vmem:[#allocation3 + $0x128] sm:$0xff] %vm529_vm2, %v7372_v28 }
  0xc1   : > { %632 = vst.msk [vmem:[#allocation3 + $0x130] sm:$0xff] %vm529_vm2, %v7372_v28  ;;  %633 = vst.msk [vmem:[#allocation3 + $0x138] sm:$0xff] %vm529_vm2, %v7372_v28 }
  0xc2   : > { %634 = vst.msk [vmem:[#allocation3 + $0x140] sm:$0xff] %vm529_vm2, %v7372_v28  ;;  %635 = vst.msk [vmem:[#allocation3 + $0x148] sm:$0xff] %vm529_vm2, %v7372_v28 }
  0xc3   : > { %636 = vst.msk [vmem:[#allocation3 + $0x150] sm:$0xff] %vm529_vm2, %v7372_v28  ;;  %637 = vst.msk [vmem:[#allocation3 + $0x158] sm:$0xff] %vm529_vm2, %v7372_v28 }
  0xc4   : > { %638 = vst.msk [vmem:[#allocation3 + $0x160] sm:$0xff] %vm529_vm2, %v7372_v28  ;;  %639 = vst.msk [vmem:[#allocation3 + $0x168] sm:$0xff] %vm529_vm2, %v7372_v28 }
  0xc5   : > { %640 = vst.msk [vmem:[#allocation3 + $0x170] sm:$0xff] %vm529_vm2, %v7372_v28  ;;  %641 = vst.msk [vmem:[#allocation3 + $0x178] sm:$0xff] %vm529_vm2, %v7372_v28 }
  0xc6   : > { %642 = vst.msk [vmem:[#allocation3 + $0x180] sm:$0xff] %vm529_vm2, %v7372_v28  ;;  %643 = vst.msk [vmem:[#allocation3 + $0x188] sm:$0xff] %vm529_vm2, %v7372_v28 }
  0xc7   : > { %644 = vst.msk [vmem:[#allocation3 + $0x190] sm:$0xff] %vm529_vm2, %v7372_v28  ;;  %645 = vst.msk [vmem:[#allocation3 + $0x198] sm:$0xff] %vm529_vm2, %v7372_v28 }
  0xc8   : > { %646 = vst.msk [vmem:[#allocation3 + $0x1a0] sm:$0xff] %vm529_vm2, %v7372_v28  ;;  %647 = vst.msk [vmem:[#allocation3 + $0x1a8] sm:$0xff] %vm529_vm2, %v7372_v28 }
  0xc9   : > { %648 = vst.msk [vmem:[#allocation3 + $0x1b0] sm:$0xff] %vm529_vm2, %v7372_v28  ;;  %649 = vst.msk [vmem:[#allocation3 + $0x1b8] sm:$0xff] %vm529_vm2, %v7372_v28 }
  0xca   : > { %650 = vst.msk [vmem:[#allocation3 + $0x1c0] sm:$0xff] %vm529_vm2, %v7372_v28  ;;  %651 = vst.msk [vmem:[#allocation3 + $0x1c8] sm:$0xff] %vm529_vm2, %v7372_v28 }
  0xcb   : > { %652 = vst.msk [vmem:[#allocation3 + $0x1d0] sm:$0xff] %vm529_vm2, %v7372_v28  ;;  %653 = vst.msk [vmem:[#allocation3 + $0x1d8] sm:$0xff] %vm529_vm2, %v7372_v28 }
  0xcc   : > { %654 = vst.msk [vmem:[#allocation3 + $0x1e0] sm:$0xff] %vm529_vm2, %v7372_v28  ;;  %655 = vst.msk [vmem:[#allocation3 + $0x1e8] sm:$0xff] %vm529_vm2, %v7372_v28 }
  0xcd   : > { %656 = vst.msk [vmem:[#allocation3 + $0x1f0] sm:$0xff] %vm529_vm2, %v7372_v28  ;;  %657 = vst.msk [vmem:[#allocation3 + $0x1f8] sm:$0xff] %vm529_vm2, %v7372_v28 }
  0xce   : > { %661 = vst.msk [vmem:[#allocation4 + $0x10] sm:$0xff] %vm658_vm0, %v7372_v28  ;;  %662 = vst.msk [vmem:[#allocation4 + $0x18] sm:$0xff] %vm658_vm0, %v7372_v28 }
  0xcf   : > { %663 = vst.msk [vmem:[#allocation4 + $0x20] sm:$0xff] %vm658_vm0, %v7372_v28  ;;  %664 = vst.msk [vmem:[#allocation4 + $0x28] sm:$0xff] %vm658_vm0, %v7372_v28 }
  0xd0   : > { %665 = vst.msk [vmem:[#allocation4 + $0x30] sm:$0xff] %vm658_vm0, %v7372_v28  ;;  %666 = vst.msk [vmem:[#allocation4 + $0x38] sm:$0xff] %vm658_vm0, %v7372_v28 }
  0xd1   : > { %667 = vst.msk [vmem:[#allocation4 + $0x40] sm:$0xff] %vm658_vm0, %v7372_v28  ;;  %668 = vst.msk [vmem:[#allocation4 + $0x48] sm:$0xff] %vm658_vm0, %v7372_v28 }
  0xd2   : > { %669 = vst.msk [vmem:[#allocation4 + $0x50] sm:$0xff] %vm658_vm0, %v7372_v28  ;;  %670 = vst.msk [vmem:[#allocation4 + $0x58] sm:$0xff] %vm658_vm0, %v7372_v28 }
  0xd3   : > { %671 = vst.msk [vmem:[#allocation4 + $0x60] sm:$0xff] %vm658_vm0, %v7372_v28  ;;  %672 = vst.msk [vmem:[#allocation4 + $0x68] sm:$0xff] %vm658_vm0, %v7372_v28 }
  0xd4   : > { %673 = vst.msk [vmem:[#allocation4 + $0x70] sm:$0xff] %vm658_vm0, %v7372_v28  ;;  %674 = vst.msk [vmem:[#allocation4 + $0x78] sm:$0xff] %vm658_vm0, %v7372_v28 }
  0xd5   : > { %675 = vst.msk [vmem:[#allocation4 + $0x80] sm:$0xff] %vm658_vm0, %v7372_v28  ;;  %676 = vst.msk [vmem:[#allocation4 + $0x88] sm:$0xff] %vm658_vm0, %v7372_v28 }
  0xd6   : > { %677 = vst.msk [vmem:[#allocation4 + $0x90] sm:$0xff] %vm658_vm0, %v7372_v28  ;;  %678 = vst.msk [vmem:[#allocation4 + $0x98] sm:$0xff] %vm658_vm0, %v7372_v28 }
  0xd7   : > { %679 = vst.msk [vmem:[#allocation4 + $0xa0] sm:$0xff] %vm658_vm0, %v7372_v28  ;;  %680 = vst.msk [vmem:[#allocation4 + $0xa8] sm:$0xff] %vm658_vm0, %v7372_v28 }
  0xd8   : > { %681 = vst.msk [vmem:[#allocation4 + $0xb0] sm:$0xff] %vm658_vm0, %v7372_v28  ;;  %682 = vst.msk [vmem:[#allocation4 + $0xb8] sm:$0xff] %vm658_vm0, %v7372_v28 }
  0xd9   : > { %683 = vst.msk [vmem:[#allocation4 + $0xc0] sm:$0xff] %vm658_vm0, %v7372_v28  ;;  %684 = vst.msk [vmem:[#allocation4 + $0xc8] sm:$0xff] %vm658_vm0, %v7372_v28 }
  0xda   : > { %685 = vst.msk [vmem:[#allocation4 + $0xd0] sm:$0xff] %vm658_vm0, %v7372_v28  ;;  %686 = vst.msk [vmem:[#allocation4 + $0xd8] sm:$0xff] %vm658_vm0, %v7372_v28 }
  0xdb   : > { %687 = vst.msk [vmem:[#allocation4 + $0xe0] sm:$0xff] %vm658_vm0, %v7372_v28  ;;  %688 = vst.msk [vmem:[#allocation4 + $0xe8] sm:$0xff] %vm658_vm0, %v7372_v28 }
  0xdc   : > { %689 = vst.msk [vmem:[#allocation4 + $0xf0] sm:$0xff] %vm658_vm0, %v7372_v28  ;;  %690 = vst.msk [vmem:[#allocation4 + $0xf8] sm:$0xff] %vm658_vm0, %v7372_v28 }
  0xdd   : > { %691 = vst.msk [vmem:[#allocation4 + $0x100] sm:$0xff] %vm658_vm0, %v7372_v28  ;;  %692 = vst.msk [vmem:[#allocation4 + $0x108] sm:$0xff] %vm658_vm0, %v7372_v28 }
  0xde   : > { %693 = vst.msk [vmem:[#allocation4 + $0x110] sm:$0xff] %vm658_vm0, %v7372_v28  ;;  %694 = vst.msk [vmem:[#allocation4 + $0x118] sm:$0xff] %vm658_vm0, %v7372_v28 }
  0xdf   : > { %695 = vst.msk [vmem:[#allocation4 + $0x120] sm:$0xff] %vm658_vm0, %v7372_v28  ;;  %696 = vst.msk [vmem:[#allocation4 + $0x128] sm:$0xff] %vm658_vm0, %v7372_v28 }
  0xe0   : > { %697 = vst.msk [vmem:[#allocation4 + $0x130] sm:$0xff] %vm658_vm0, %v7372_v28  ;;  %698 = vst.msk [vmem:[#allocation4 + $0x138] sm:$0xff] %vm658_vm0, %v7372_v28 }
  0xe1   : > { %699 = vst.msk [vmem:[#allocation4 + $0x140] sm:$0xff] %vm658_vm0, %v7372_v28  ;;  %700 = vst.msk [vmem:[#allocation4 + $0x148] sm:$0xff] %vm658_vm0, %v7372_v28 }
  0xe2   : > { %701 = vst.msk [vmem:[#allocation4 + $0x150] sm:$0xff] %vm658_vm0, %v7372_v28  ;;  %702 = vst.msk [vmem:[#allocation4 + $0x158] sm:$0xff] %vm658_vm0, %v7372_v28 }
  0xe3   : > { %703 = vst.msk [vmem:[#allocation4 + $0x160] sm:$0xff] %vm658_vm0, %v7372_v28  ;;  %704 = vst.msk [vmem:[#allocation4 + $0x168] sm:$0xff] %vm658_vm0, %v7372_v28 }
  0xe4   : > { %705 = vst.msk [vmem:[#allocation4 + $0x170] sm:$0xff] %vm658_vm0, %v7372_v28  ;;  %706 = vst.msk [vmem:[#allocation4 + $0x178] sm:$0xff] %vm658_vm0, %v7372_v28 }
  0xe5   : > { %707 = vst.msk [vmem:[#allocation4 + $0x180] sm:$0xff] %vm658_vm0, %v7372_v28  ;;  %708 = vst.msk [vmem:[#allocation4 + $0x188] sm:$0xff] %vm658_vm0, %v7372_v28 }
  0xe6   : > { %709 = vst.msk [vmem:[#allocation4 + $0x190] sm:$0xff] %vm658_vm0, %v7372_v28  ;;  %710 = vst.msk [vmem:[#allocation4 + $0x198] sm:$0xff] %vm658_vm0, %v7372_v28 }
  0xe7   : > { %711 = vst.msk [vmem:[#allocation4 + $0x1a0] sm:$0xff] %vm658_vm0, %v7372_v28  ;;  %712 = vst.msk [vmem:[#allocation4 + $0x1a8] sm:$0xff] %vm658_vm0, %v7372_v28 }
  0xe8   : > { %713 = vst.msk [vmem:[#allocation4 + $0x1b0] sm:$0xff] %vm658_vm0, %v7372_v28  ;;  %714 = vst.msk [vmem:[#allocation4 + $0x1b8] sm:$0xff] %vm658_vm0, %v7372_v28 }
  0xe9   : > { %715 = vst.msk [vmem:[#allocation4 + $0x1c0] sm:$0xff] %vm658_vm0, %v7372_v28  ;;  %716 = vst.msk [vmem:[#allocation4 + $0x1c8] sm:$0xff] %vm658_vm0, %v7372_v28 }
  0xea   : > { %717 = vst.msk [vmem:[#allocation4 + $0x1d0] sm:$0xff] %vm658_vm0, %v7372_v28  ;;  %718 = vst.msk [vmem:[#allocation4 + $0x1d8] sm:$0xff] %vm658_vm0, %v7372_v28 }
  0xeb   : > { %719 = vst.msk [vmem:[#allocation4 + $0x1e0] sm:$0xff] %vm658_vm0, %v7372_v28  ;;  %720 = vst.msk [vmem:[#allocation4 + $0x1e8] sm:$0xff] %vm658_vm0, %v7372_v28 }
  0xec   : > { %721 = vst.msk [vmem:[#allocation4 + $0x1f0] sm:$0xff] %vm658_vm0, %v7372_v28  ;;  %722 = vst.msk [vmem:[#allocation4 + $0x1f8] sm:$0xff] %vm658_vm0, %v7372_v28 }
 0x11b   : > { %v6404_v40 = vpop.f32.mrf.mxu0 }
 0x11c   : > { %v7679_v41 = vadd.f32 %v6404_v40, %v7675_v37  ;;  %v6436_v42 = vpop.f32.mrf.mxu1  ;;  %v6202_v40 = vunpack.c.h.bf16 %v6218_v36 }
 0x11d   : > { %v7682_v43 = vadd.f32 %v6436_v42, %v7675_v37  ;;  %v7684_v44 = vpop.f32.mrf.mxu0 }
 0x11e   : > { %10517 = vst [vmem:[#allocation8_spill] sm:$0xff] %v7679_v41  ;;  %v7694_v47 = vpop.f32.mrf.mxu1  ;;  %1938 = vmax.xlane.f32.xlu1 %v7679_v41  ;;  %v7835_v53 = vadd.f32 %v7684_v44, %v7692_v46  ;;  %v6201_v44 = vunpack.c.l.bf16 %v6218_v36  ;;  %v8215_v52 = vsel %vm760_vm1, %v6202_v40, -1e+09  ;;  %v8729_v41 = vld [vmem:[#allocation2 + $0x190] sm:$0xff] }
 0x11f   : > { %1970 = vmax.xlane.f32.xlu0 %v7682_v43  ;;  %v7698_v48 = vpop.f32.mrf.mxu0  ;;  %v7845_v61 = vadd.f32 %v7694_v47, %v7692_v46 }
 0x120   : > { %v7830_v50 = vadd.f32 %v7698_v48, %v7688_v45  ;;  %v6437_v51 = vpop.f32.mrf.mxu1  ;;  %10519 = vst [vmem:[#allocation10_spill] sm:$0xff] %v7835_v53 }
 0x121   : > { %v1135_v55 = vpop.f32.mrf.mxu0  ;;  %v7841_v59 = vadd.f32 %v6437_v51, %v7688_v45  ;;  %v6221_v51 = vld [vmem:[%s7664_s25 + $0x38] sm:$0xff]   ;;  %s5995_s25 = sshll.u32 %s467_s16, 7 }
 0x122   : > { %10518 = vst [vmem:[#allocation9_spill] sm:$0xff] %v7830_v50  ;;  %1940 = vmax.xlane.f32.xlu1 %v7830_v50  ;;  %v1360_v56 = vpop.f32.mrf.mxu1  ;;  %v7865_v4 = vadd.f32 %v1135_v55, %v7849_v62  ;;  %v8219_v55 = vsel %vm760_vm1, %v6201_v44, -1e+09  ;;  %v6213_v60 = vunpack.c.l.bf16 %v6221_v51  ;;  %v8742_v50 = vld [vmem:[#allocation2 + $0x198] sm:$0xff] }
 0x123   : > { %1934 = vmax.xlane.f32.xlu0 %v7835_v53  ;;  %v6408_v57 = vpop.f32.mrf.mxu0  ;;  %v7858_v2 = vadd.f32 %v1360_v56, %v7849_v62  ;;  %10584 = vst [vmem:[#allocation75_spill] sm:$0xff] %v8742_v50 }
 0x124   : > { %v6440_v0 = vpop.f32.mrf.mxu1  ;;  %10520 = vst [vmem:[#allocation11_spill] sm:$0xff] %v7865_v4  ;;  %v7875_v9 = vadd.f32 %v6408_v57, %v7862_v3  ;;  %v6214_v57 = vunpack.c.h.bf16 %v6221_v51  ;;  %v8241_v10 = vsel %vm760_vm1, %v6213_v60, -1e+09 }
 0x125   : > { %v1148_v63 = vpop.f32.mrf.mxu0  ;;  %v7883_v14 = vadd.f32 %v6440_v0, %v7862_v3 }
 0x126   : > { %1972 = vmax.xlane.f32.xlu1 %v7841_v59  ;;  %v7867_v6 = vpop.f32.mrf.mxu1  ;;  %10522 = vst [vmem:[#allocation13_spill] sm:$0xff] %v7875_v9  ;;  %v7909_v25 = vadd.f32 %v1148_v63, %v7897_v20 }
 0x127   : > { %1966 = vmax.xlane.f32.xlu0 %v7845_v61  ;;  %v6409_v5 = vpop.f32.mrf.mxu0  ;;  %10524 = vst [vmem:[#allocation15_spill] sm:$0xff] %v7883_v14  ;;  %v8191_v32 = vadd.f32 %v7867_v6, %v7897_v20  ;;  %v8234_v6 = vsel %vm760_vm1, %v6214_v57, -1e+09 }
 0x128   : > { %v7871_v8 = vadd.f32 %v6409_v5, %v7855_v1  ;;  %v6441_v11 = vpop.f32.mrf.mxu1  ;;  %10526 = vst [vmem:[#allocation17_spill] sm:$0xff] %v7909_v25 }
 0x129   : > { %v7879_v13 = vadd.f32 %v6441_v11, %v7855_v1  ;;  %v1151_v15 = vpop.f32.mrf.mxu0  ;;  %10528 = vst [vmem:[#allocation19_spill] sm:$0xff] %v8191_v32 }
 0x12a   : > { %10521 = vst [vmem:[#allocation12_spill] sm:$0xff] %v7871_v8  ;;  %1968 = vmax.xlane.f32.xlu1 %v7858_v2  ;;  %v7900_v21 = vpop.f32.mrf.mxu1  ;;  %v7905_v23 = vadd.f32 %v1151_v15, %v7891_v18 }
 0x12b   : > { %1936 = vmax.xlane.f32.xlu0 %v7865_v4  ;;  %10523 = vst [vmem:[#allocation14_spill] sm:$0xff] %v7879_v13  ;;  %v7893_v19 = vpop.f32.mrf.mxu0  ;;  %v8181_v30 = vadd.f32 %v7900_v21, %v7891_v18  ;;  %v6210_v21 = vunpack.c.h.bf16 %v6220_v16  ;;  %v8724_v4 = vld [vmem:[#allocation2 + $0x118] sm:$0xff] }
 0x12c   : > { %10525 = vst [vmem:[#allocation16_spill] sm:$0xff] %v7905_v23  ;;  %v7913_v27 = vpop.f32.mrf.mxu1  ;;  %v8200_v39 = vadd.f32 %v7893_v19, %v8187_v31  ;;  %10582 = vst [vmem:[#allocation73_spill] sm:$0xff] %v8724_v4 }
 0x12d   : > { %v7911_v26 = vpop.f32.mrf.mxu0  ;;  %10527 = vst [vmem:[#allocation18_spill] sm:$0xff] %v8181_v30  ;;  %v8209_v48 = vadd.f32 %v7913_v27, %v8187_v31  ;;  %v8265_v28 = vsel %vm760_vm1, %v6210_v21, -1e+09 }
 0x12e   : > { %1948 = vmax.xlane.f32.xlu1 %v7871_v8  ;;  %v1389_v35 = vpop.f32.mrf.mxu1  ;;  %10530 = vst [vmem:[#allocation21_spill] sm:$0xff] %v8200_v39  ;;  %v8228_v63 = vadd.f32 %v7911_v26, %v8219_v55 }
 0x12f   : > { %1946 = vmax.xlane.f32.xlu0 %v7875_v9  ;;  %v6413_v33 = vpop.f32.mrf.mxu0  ;;  %10532 = vst [vmem:[#allocation23_spill] sm:$0xff] %v8209_v48  ;;  %v8244_v11 = vadd.f32 %v1389_v35, %v8219_v55  ;;  %v8269_v35 = vsel %vm760_vm1, %v6209_v24, -1e+09  ;;  %v8656_v9 = vld [vmem:[#allocation2 + $0xf0] sm:$0xff] }
 0x130   : > { %v8195_v38 = vadd.f32 %v6413_v33, %v8177_v29  ;;  %v6445_v42 = vpop.f32.mrf.mxu1  ;;  %10534 = vst [vmem:[#allocation25_spill] sm:$0xff] %v8228_v63 }
 0x131   : > { %v8204_v47 = vadd.f32 %v6445_v42, %v8177_v29  ;;  %v1167_v49 = vpop.f32.mrf.mxu0  ;;  %10536 = vst [vmem:[#allocation27_spill] sm:$0xff] %v8244_v11 }
 0x132   : > { %1980 = vmax.xlane.f32.xlu1 %v7879_v13  ;;  %10529 = vst [vmem:[#allocation20_spill] sm:$0xff] %v8195_v38  ;;  %v1392_v56 = vpop.f32.mrf.mxu1  ;;  %v8224_v58 = vadd.f32 %v1167_v49, %v8215_v52  ;;  %v8694_v13 = vld [vmem:[#allocation2 + $0xe0] sm:$0xff] }
 0x133   : > { %1978 = vmax.xlane.f32.xlu0 %v7883_v14  ;;  %10531 = vst [vmem:[#allocation22_spill] sm:$0xff] %v8204_v47  ;;  %v6416_v54 = vpop.f32.mrf.mxu0  ;;  %v8237_v7 = vadd.f32 %v1392_v56, %v8215_v52 }
 0x134   : > { %10533 = vst [vmem:[#allocation24_spill] sm:$0xff] %v8224_v58  ;;  %v6448_v5 = vpop.f32.mrf.mxu1  ;;  %v8252_v19 = vadd.f32 %v6416_v54, %v8241_v10 }
 0x135   : > { %v1180_v0 = vpop.f32.mrf.mxu0  ;;  %10535 = vst [vmem:[#allocation26_spill] sm:$0xff] %v8237_v7  ;;  %v8260_v27 = vadd.f32 %v6448_v5, %v8241_v10 }
 0x136   : > { %1944 = vmax.xlane.f32.xlu1 %v7905_v23  ;;  %v1405_v15 = vpop.f32.mrf.mxu1  ;;  %10538 = vst [vmem:[#allocation29_spill] sm:$0xff] %v8252_v19  ;;  %v8277_v40 = vadd.f32 %v1180_v0, %v8269_v35  ;;  %v8651_v23 = vld [vmem:[#allocation2 + $0xf8] sm:$0xff] }
 0x137   : > { %1942 = vmax.xlane.f32.xlu0 %v7909_v25  ;;  %v6417_v12 = vpop.f32.mrf.mxu0  ;;  %10540 = vst [vmem:[#allocation31_spill] sm:$0xff] %v8260_v27  ;;  %v8285_v34 = vadd.f32 %v1405_v15, %v8269_v35  ;;  %v8671_v25 = vld [vmem:[#allocation2 + $0x68] sm:$0xff] }
 0x138   : > { %v8248_v17 = vadd.f32 %v6417_v12, %v8234_v6  ;;  %v6449_v22 = vpop.f32.mrf.mxu1  ;;  %10542 = vst [vmem:[#allocation33_spill] sm:$0xff] %v8277_v40 }
 0x139   : > { %v8256_v26 = vadd.f32 %v6449_v22, %v8234_v6  ;;  %v1183_v33 = vpop.f32.mrf.mxu0  ;;  %10544 = vst [vmem:[#allocation35_spill] sm:$0xff] %v8285_v34 }
 0x13a   : > { %1976 = vmax.xlane.f32.xlu1 %v8181_v30  ;;  %10537 = vst [vmem:[#allocation28_spill] sm:$0xff] %v8248_v17  ;;  %v8274_v36 = vadd.f32 %v1183_v33, %v8265_v28  ;;  %v1408_v42 = vpop.f32.mrf.mxu1  ;;  %v8712_v30 = vld [vmem:[#allocation2 + $0x110] sm:$0xff] }
 0x13b   : > { %1974 = vmax.xlane.f32.xlu0 %v8191_v32  ;;  %10539 = vst [vmem:[#allocation30_spill] sm:$0xff] %v8256_v26  ;;  %v8282_v44 = vadd.f32 %v1408_v42, %v8265_v28  ;;  %10581 = vst [vmem:[#allocation72_spill] sm:$0xff] %v8712_v30 }
 0x13c   : > { %10541 = vst [vmem:[#allocation32_spill] sm:$0xff] %v8274_v36 }
 0x13d   : > { %10543 = vst [vmem:[#allocation34_spill] sm:$0xff] %v8282_v44 }
 0x13e   : > { %1956 = vmax.xlane.f32.xlu1 %v8195_v38 }
 0x13f   : > { %1954 = vmax.xlane.f32.xlu0 %v8200_v39  ;;  %v8615_v39 = vld [vmem:[#allocation2 + $0xc8] sm:$0xff] }
 0x142   : > { %1988 = vmax.xlane.f32.xlu1 %v8204_v47  ;;  %v8581_v47 = vld [vmem:[#allocation2 + $0xd0] sm:$0xff] }
 0x143   : > { %1986 = vmax.xlane.f32.xlu0 %v8209_v48  ;;  %v8595_v48 = vld [vmem:[#allocation2 + $0x48] sm:$0xff] }
 0x146   : > { %1952 = vmax.xlane.f32.xlu1 %v8224_v58  ;;  %v8638_v58 = vld [vmem:[#allocation2 + $0x70] sm:$0xff] }
 0x147   : > { %1950 = vmax.xlane.f32.xlu0 %v8228_v63 }
 0x14a   : > { %1984 = vmax.xlane.f32.xlu1 %v8237_v7 }
 0x14b   : > { %1982 = vmax.xlane.f32.xlu0 %v8244_v11  ;;  %v8576_v11 = vld [vmem:[#allocation2 + $0xd8] sm:$0xff] }
 0x14e   : > { %1964 = vmax.xlane.f32.xlu1 %v8248_v17  ;;  %v8557_v17 = vld [vmem:[#allocation2 + $0x58] sm:$0xff] }
 0x14f   : > { %1962 = vmax.xlane.f32.xlu0 %v8252_v19  ;;  %v6890_v19 = vld [vmem:[%s8427_s28 + $0x8] sm:$0xff]  }
 0x152   : > { %1996 = vmax.xlane.f32.xlu1 %v8256_v26  ;;  %v6887_v26 = vld [vmem:[%s8427_s28 + $0x48] sm:$0xff]  }
 0x153   : > { %1994 = vmax.xlane.f32.xlu0 %v8260_v27  ;;  %v8542_v27 = vld [vmem:[#allocation2 + $0xa0] sm:$0xff] }
 0x156   : > { %1960 = vmax.xlane.f32.xlu1 %v8274_v36 }
 0x157   : > { %1958 = vmax.xlane.f32.xlu0 %v8277_v40 }
 0x15a   : > { %1992 = vmax.xlane.f32.xlu1 %v8282_v44 }
 0x15b   : > { %1990 = vmax.xlane.f32.xlu0 %v8285_v34  ;;  %v6468_v49 = vpop.f32.mrf.mxu0  ;;  %v8524_v34 = vld [vmem:[#allocation2 + $0x20] sm:$0xff] }
 0x15c   : > { %v8290_v51 = vadd.f32 %v6468_v49, %v7675_v37  ;;  %v6500_v54 = vpop.f32.mrf.mxu1 }
 0x15d   : > { %v1582_v56 = vpop.f32.mrf.mxu0  ;;  %v8293_v60 = vadd.f32 %v6500_v54, %v7675_v37 }
 0x15e   : > { %10545 = vst [vmem:[#allocation36_spill] sm:$0xff] %v8290_v51  ;;  %v1807_v57 = vpop.f32.mrf.mxu1  ;;  %v8305_v16 = vadd.f32 %v1582_v56, %v7692_v46 }
 0x15f   : > { %10546 = vst [vmem:[#allocation37_spill] sm:$0xff] %v8293_v60  ;;  %2002 = vmax.xlane.f32.xlu0 %v8290_v51  ;;  %v6469_v0 = vpop.f32.mrf.mxu0  ;;  %v8313_v24 = vadd.f32 %v1807_v57, %v7692_v46  ;;  %v6885_v51 = vld [vmem:[%s8427_s28 + $0x50] sm:$0xff]  }
 0x160   : > { %v8297_v5 = vadd.f32 %v6469_v0, %v7688_v45  ;;  %v6501_v12 = vpop.f32.mrf.mxu1  ;;  %10549 = vst [vmem:[#allocation40_spill] sm:$0xff] %v8305_v16 }
 0x161   : > { %v8302_v15 = vadd.f32 %v6501_v12, %v7688_v45  ;;  %v1585_v21 = vpop.f32.mrf.mxu0  ;;  %10551 = vst [vmem:[#allocation42_spill] sm:$0xff] %v8313_v24 }
 0x162   : > { %10547 = vst [vmem:[#allocation38_spill] sm:$0xff] %v8297_v5  ;;  %2004 = vmax.xlane.f32.xlu1 %v8297_v5  ;;  %v8310_v22 = vadd.f32 %v1585_v21, %v7849_v62  ;;  %v1810_v33 = vpop.f32.mrf.mxu1  ;;  %v6884_v5 = vld [vmem:[%s8427_s28 + $0x20] sm:$0xff]  }
 0x163   : > { %2034 = vmax.xlane.f32.xlu0 %v8293_v60  ;;  %10548 = vst [vmem:[#allocation39_spill] sm:$0xff] %v8302_v15  ;;  %v6472_v37 = vpop.f32.mrf.mxu0  ;;  %v8321_v54 = vadd.f32 %v1810_v33, %v7849_v62  ;;  %v8505_v60 = vld [vmem:[#allocation2 + $0xb0] sm:$0xff] }
 0x164   : > { %10550 = vst [vmem:[#allocation41_spill] sm:$0xff] %v8310_v22  ;;  %v8317_v45 = vadd.f32 %v6472_v37, %v7862_v3  ;;  %v6504_v49 = vpop.f32.mrf.mxu1 }
 0x165   : > { %v1598_v42 = vpop.f32.mrf.mxu0  ;;  %10553 = vst [vmem:[#allocation44_spill] sm:$0xff] %v8321_v54  ;;  %v8325_v0 = vadd.f32 %v6504_v49, %v7862_v3 }
 0x166   : > { %2036 = vmax.xlane.f32.xlu1 %v8302_v15  ;;  %10552 = vst [vmem:[#allocation43_spill] sm:$0xff] %v8317_v45  ;;  %v1823_v46 = vpop.f32.mrf.mxu1  ;;  %v8337_v21 = vadd.f32 %v1598_v42, %v7897_v20  ;;  %v6883_v15 = vld [vmem:[%s8427_s28 + $0x58] sm:$0xff]  }
 0x167   : > { %1998 = vmax.xlane.f32.xlu0 %v8305_v16  ;;  %v6473_v56 = vpop.f32.mrf.mxu0  ;;  %10554 = vst [vmem:[#allocation45_spill] sm:$0xff] %v8325_v0  ;;  %v8345_v49 = vadd.f32 %v1823_v46, %v7897_v20 }
 0x168   : > { %v8329_v57 = vadd.f32 %v6473_v56, %v7855_v1  ;;  %v6505_v12 = vpop.f32.mrf.mxu1  ;;  %10557 = vst [vmem:[#allocation48_spill] sm:$0xff] %v8337_v21 }
 0x169   : > { %v8334_v62 = vadd.f32 %v6505_v12, %v7855_v1  ;;  %v1601_v37 = vpop.f32.mrf.mxu0  ;;  %10559 = vst [vmem:[#allocation50_spill] sm:$0xff] %v8345_v49 }
 0x16a   : > { %2000 = vmax.xlane.f32.xlu1 %v8310_v22  ;;  %10555 = vst [vmem:[#allocation46_spill] sm:$0xff] %v8329_v57  ;;  %v8342_v33 = vadd.f32 %v1601_v37, %v7891_v18  ;;  %v1826_v56 = vpop.f32.mrf.mxu1 }
 0x16b   : > { %2030 = vmax.xlane.f32.xlu0 %v8313_v24  ;;  %10556 = vst [vmem:[#allocation47_spill] sm:$0xff] %v8334_v62  ;;  %v6476_v3 = vpop.f32.mrf.mxu0  ;;  %v6882_v24 = vld [vmem:[%s8427_s28 + $0x28] sm:$0xff]  }
 0x16c   : > { %10558 = vst [vmem:[#allocation49_spill] sm:$0xff] %v8342_v33  ;;  %v8349_v1 = vadd.f32 %v6476_v3, %v8187_v31  ;;  %v6508_v12 = vpop.f32.mrf.mxu1 }
 0x16d   : > { %v1614_v42 = vpop.f32.mrf.mxu0 }
 0x16e   : > { %2032 = vmax.xlane.f32.xlu1 %v8321_v54  ;;  %10560 = vst [vmem:[#allocation51_spill] sm:$0xff] %v8349_v1  ;;  %v1839_v20 = vpop.f32.mrf.mxu1 }
 0x16f   : > { %2010 = vmax.xlane.f32.xlu0 %v8317_v45  ;;  %v6477_v37 = vpop.f32.mrf.mxu0 }
 0x170   : > { %v8361_v46 = vadd.f32 %v6477_v37, %v8177_v29  ;;  %v6509_v3 = vpop.f32.mrf.mxu1  ;;  %v8377_v37 = vadd.f32 %v1839_v20, %v8219_v55 }
 0x172   : > { %2012 = vmax.xlane.f32.xlu1 %v8329_v57  ;;  %10563 = vst [vmem:[#allocation54_spill] sm:$0xff] %v8361_v46  ;;  %10567 = vst [vmem:[#allocation58_spill] sm:$0xff] %v8377_v37  ;;  %v6881_v57 = vld [vmem:[%s8427_s28 + $0x60] sm:$0xff]  }
 0x173   : > { %2042 = vmax.xlane.f32.xlu0 %v8325_v0 }
 0x176   : > { %2044 = vmax.xlane.f32.xlu1 %v8334_v62  ;;  %v8353_v62 = vadd.f32 %v1826_v56, %v7891_v18  ;;  %v8366_v18 = vadd.f32 %v6509_v3, %v8177_v29  ;;  %v8369_v56 = vadd.f32 %v1614_v42, %v8219_v55 }
 0x177   : > { %2006 = vmax.xlane.f32.xlu0 %v8337_v21  ;;  %v8357_v21 = vadd.f32 %v6508_v12, %v8187_v31 }
 0x178   : > { %10561 = vst [vmem:[#allocation52_spill] sm:$0xff] %v8353_v62  ;;  %10564 = vst [vmem:[#allocation55_spill] sm:$0xff] %v8366_v18 }
 0x179   : > { %10562 = vst [vmem:[#allocation53_spill] sm:$0xff] %v8357_v21  ;;  %10565 = vst [vmem:[#allocation56_spill] sm:$0xff] %v8369_v56 }
 0x17a   : > { %2008 = vmax.xlane.f32.xlu1 %v8342_v33  ;;  %v8487_v33 = vld [vmem:[#allocation2 + $0x30] sm:$0xff] }
 0x17b   : > { %2038 = vmax.xlane.f32.xlu0 %v8345_v49  ;;  %v1617_v49 = vpop.f32.mrf.mxu0 }
 0x17c   : > { %v8374_v12 = vadd.f32 %v1617_v49, %v8215_v52 }
 0x17d   : > { %v6480_v31 = vpop.f32.mrf.mxu0 }
 0x17e   : > { %2040 = vmax.xlane.f32.xlu1 %v8353_v62  ;;  %10566 = vst [vmem:[#allocation57_spill] sm:$0xff] %v8374_v12  ;;  %v8381_v29 = vadd.f32 %v6480_v31, %v8241_v10  ;;  %v6880_v62 = vld [vmem:[%s8427_s28 + $0x30] sm:$0xff]  }
 0x17f   : > { %2018 = vmax.xlane.f32.xlu0 %v8349_v1  ;;  %v1630_v42 = vpop.f32.mrf.mxu0 }
 0x180   : > { %10568 = vst [vmem:[#allocation59_spill] sm:$0xff] %v8381_v29 }
 0x181   : > { %v6481_v49 = vpop.f32.mrf.mxu0 }
 0x182   : > { %2020 = vmax.xlane.f32.xlu1 %v8361_v46  ;;  %v1842_v46 = vpop.f32.mrf.mxu1  ;;  %v8393_v20 = vadd.f32 %v6481_v49, %v8234_v6 }
 0x183   : > { %2050 = vmax.xlane.f32.xlu0 %v8357_v21 }
 0x184   : > { %v6512_v3 = vpop.f32.mrf.mxu1  ;;  %10571 = vst [vmem:[#allocation62_spill] sm:$0xff] %v8393_v20 }
 0x186   : > { %2052 = vmax.xlane.f32.xlu1 %v8366_v18  ;;  %v8385_v18 = vadd.f32 %v1842_v46, %v8215_v52  ;;  %v1855_v55 = vpop.f32.mrf.mxu1  ;;  %v8401_v46 = vadd.f32 %v1630_v42, %v8269_v35  ;;  %v8417_v42 = vld [vmem:[#allocation2 + $0x10] sm:$0xff] }
 0x187   : > { %2014 = vmax.xlane.f32.xlu0 %v8369_v56  ;;  %v8389_v56 = vadd.f32 %v6512_v3, %v8241_v10  ;;  %v1633_v10 = vpop.f32.mrf.mxu0  ;;  %v8409_v49 = vadd.f32 %v1855_v55, %v8269_v35  ;;  %v8432_v55 = vld [vmem:[#allocation2] sm:$0xff] }
 0x188   : > { %10569 = vst [vmem:[#allocation60_spill] sm:$0xff] %v8385_v18  ;;  %v6513_v31 = vpop.f32.mrf.mxu1  ;;  %10573 = vst [vmem:[#allocation64_spill] sm:$0xff] %v8401_v46  ;;  %v8406_v3 = vadd.f32 %v1633_v10, %v8265_v28  ;;  %v8421_v10 = vld [vmem:[#allocation2 + $0x18] sm:$0xff] }
 0x189   : > { %10570 = vst [vmem:[#allocation61_spill] sm:$0xff] %v8389_v56  ;;  %v8398_v52 = vadd.f32 %v6513_v31, %v8234_v6  ;;  %10575 = vst [vmem:[#allocation66_spill] sm:$0xff] %v8409_v49  ;;  %v8419_v31 = vld [vmem:[#allocation2 + $0x90] sm:$0xff] }
 0x18a   : > { %2016 = vmax.xlane.f32.xlu1 %v8374_v12  ;;  %10574 = vst [vmem:[#allocation65_spill] sm:$0xff] %v8406_v3  ;;  %v8469_v12 = vld [vmem:[#allocation2 + $0x8] sm:$0xff] }
 0x18b   : > { %2046 = vmax.xlane.f32.xlu0 %v8377_v37  ;;  %10572 = vst [vmem:[#allocation63_spill] sm:$0xff] %v8398_v52  ;;  %v8458_v37 = vld [vmem:[#allocation2 + $0x88] sm:$0xff] }
 0x18e   : > { %2048 = vmax.xlane.f32.xlu1 %v8385_v18  ;;  %v6879_v18 = vld [vmem:[%s8427_s28 + $0x68] sm:$0xff]  }
 0x18f   : > { %2026 = vmax.xlane.f32.xlu0 %v8381_v29  ;;  %v8451_v29 = vld [vmem:[#allocation2 + $0x80] sm:$0xff] }
 0x192   : > { %2028 = vmax.xlane.f32.xlu1 %v8393_v20  ;;  %v1858_v20 = vpop.f32.mrf.mxu1 }
 0x193   : > { %2058 = vmax.xlane.f32.xlu0 %v8389_v56  ;;  %v8414_v6 = vadd.f32 %v1858_v20, %v8265_v28  ;;  %v8445_v56 = vld [vmem:[#allocation2 + $0x98] sm:$0xff] }
 0x195   : > { %10576 = vst [vmem:[#allocation67_spill] sm:$0xff] %v8414_v6 }
 0x196   : > { %2060 = vmax.xlane.f32.xlu1 %v8398_v52 }
 0x197   : > { %2022 = vmax.xlane.f32.xlu0 %v8401_v46 }
 0x19a   : > { %2024 = vmax.xlane.f32.xlu1 %v8406_v3 }
 0x19b   : > { %2054 = vmax.xlane.f32.xlu0 %v8409_v49  ;;  %v6876_v49 = vld [vmem:[%s8427_s28 + $0x78] sm:$0xff]  }
 0x19c   : > { %6546 = vmatprep.subr.bf16.mxu1 %v6876_v49 }
 0x19d   : > { %6547 = vmatpush3.bf16.msra.mxu1 %v6876_v49 }
 0x19e   : > { %2056 = vmax.xlane.f32.xlu1 %v8414_v6 }
 0x1a7   : > { %v1939_v52 = vpop.xlane.xlu1 %1938 }
 0x1a8   : > { %v1971_v35 = vpop.xlane.xlu0 %1970  ;;  %v8430_v28 = vmax.f32 %v8417_v42, %v1939_v52 }
 0x1a9   : > { %v8435_v20 = vmax.f32 %v8419_v31, %v1971_v35  ;;  %v6877_v35 = vld [vmem:[%s8427_s28 + $0x70] sm:$0xff]  }
 0x1aa   : > { %4405 = vst.msk [vmem:[#allocation2 + $0x10] sm:$0xff] %vm529_vm2, %v8430_v28  ;;  %6548 = vmatprep.subr.bf16.mxu1 %v6877_v35 }
 0x1ab   : > { %4421 = vst.msk [vmem:[#allocation2 + $0x90] sm:$0xff] %vm529_vm2, %v8435_v20  ;;  %v1941_v46 = vpop.xlane.xlu1 %1940  ;;  %6549 = vmatpush3.bf16.msra.mxu1 %v6877_v35 }
 0x1ac   : > { %v8443_v6 = vmax.f32 %v8421_v10, %v1941_v46  ;;  %v1935_v52 = vpop.xlane.xlu0 %1934  ;;  %6550 = vmatprep.subr.bf16.mxu1 %v6879_v18 }
 0x1ad   : > { %v8449_v3 = vmax.f32 %v8432_v55, %v1935_v52  ;;  %v6878_v52 = vld [vmem:[%s8427_s28 + $0x38] sm:$0xff]  }
 0x1ae   : > { %4406 = vst.msk [vmem:[#allocation2 + $0x18] sm:$0xff] %vm529_vm2, %v8443_v6  ;;  %6514 = vmatprep.subr.bf16.mxu0 %v6878_v52 }
 0x1af   : > { %4403 = vst.msk [vmem:[#allocation2] sm:$0xff] %vm529_vm2, %v8449_v3  ;;  %v1973_v46 = vpop.xlane.xlu1 %1972  ;;  %2330 = vperm.xlu1 %6810, %v8430_v28   ;;  %6515 = vmatpush3.bf16.msra.mxu0 %v6878_v52  ;;  %v8494_v52 = vld [vmem:[#allocation2 + $0xb8] sm:$0xff] }
 0x1b0   : > { %v8461_v49 = vmax.f32 %v8445_v56, %v1973_v46  ;;  %v1967_v21 = vpop.xlane.xlu0 %1966  ;;  %v8476_v46 = vld [vmem:[#allocation2 + $0x38] sm:$0xff]  ;;  %6551 = vmatpush3.bf16.msra.mxu1 %v6879_v18  ;;  %6516 = vmatprep.subr.bf16.mxu0 %v6880_v62 }
 0x1b1   : > { %v8466_v1 = vmax.f32 %v8451_v29, %v1967_v21  ;;  %2320 = vperm.xlu0 %6811, %v8449_v3   ;;  %6552 = vmatprep.subr.bf16.mxu1 %v6881_v57 }
 0x1b2   : > { %4422 = vst.msk [vmem:[#allocation2 + $0x98] sm:$0xff] %vm529_vm2, %v8461_v49 }
 0x1b3   : > { %4419 = vst.msk [vmem:[#allocation2 + $0x80] sm:$0xff] %vm529_vm2, %v8466_v1  ;;  %v1969_v35 = vpop.xlane.xlu1 %1968  ;;  %2410 = vperm.xlu1 %6810, %v8435_v20   ;;  %6517 = vmatpush3.bf16.msra.mxu0 %v6880_v62  ;;  %v8512_v62 = vld [vmem:[#allocation2 + $0x28] sm:$0xff] }
 0x1b4   : > { %v8479_v21 = vmax.f32 %v8458_v37, %v1969_v35  ;;  %v1937_v0 = vpop.xlane.xlu0 %1936  ;;  %6553 = vmatpush3.bf16.msra.mxu1 %v6881_v57  ;;  %6518 = vmatprep.subr.bf16.mxu0 %v6882_v24 }
 0x1b5   : > { %v8484_v45 = vmax.f32 %v8469_v12, %v1937_v0  ;;  %2415 = vperm.xlu0 %6811, %v8461_v49   ;;  %6554 = vmatprep.subr.bf16.mxu1 %v6883_v15 }
 0x1b6   : > { %4420 = vst.msk [vmem:[#allocation2 + $0x88] sm:$0xff] %vm529_vm2, %v8479_v21 }
 0x1b7   : > { %4404 = vst.msk [vmem:[#allocation2 + $0x8] sm:$0xff] %vm529_vm2, %v8484_v45  ;;  %v1949_v18 = vpop.xlane.xlu1 %1948  ;;  %2400 = vperm.xlu1 %6810, %v8466_v1   ;;  %6519 = vmatpush3.bf16.msra.mxu0 %v6882_v24 }
 0x1b8   : > { %v8497_v0 = vmax.f32 %v8476_v46, %v1949_v18  ;;  %v1947_v35 = vpop.xlane.xlu0 %1946  ;;  %v2126_v18 = vsub.f32 %v8432_v55, %v8449_v3  ;;  %6555 = vmatpush3.bf16.msra.mxu1 %v6883_v15  ;;  %6520 = vmatprep.subr.bf16.mxu0 %v6884_v5  ;;  %v8532_v15 = vld [vmem:[#allocation2 + $0xa8] sm:$0xff] }
 0x1b9   : > { %v8502_v16 = vmax.f32 %v8487_v33, %v1947_v35  ;;  %2405 = vperm.xlu0 %6811, %v8479_v21   ;;  %6556 = vmatprep.subr.bf16.mxu1 %v6885_v51 }
 0x1ba   : > { %4410 = vst.msk [vmem:[#allocation2 + $0x38] sm:$0xff] %vm529_vm2, %v8497_v0 }
 0x1bb   : > { %4409 = vst.msk [vmem:[#allocation2 + $0x30] sm:$0xff] %vm529_vm2, %v8502_v16  ;;  %v1981_v57 = vpop.xlane.xlu1 %1980  ;;  %2335 = vperm.xlu1 %6810, %v8443_v6   ;;  %6521 = vmatpush3.bf16.msra.mxu0 %v6884_v5 }
 0x1bc   : > { %v8517_v35 = vmax.f32 %v8494_v52, %v1981_v57  ;;  %v1979_v54 = vpop.xlane.xlu0 %1978  ;;  %6557 = vmatpush3.bf16.msra.mxu1 %v6885_v51  ;;  %v6886_v57 = vld [vmem:[%s8427_s28 + $0x18] sm:$0xff]  }
 0x1bd   : > { %v8522_v22 = vmax.f32 %v8505_v60, %v1979_v54  ;;  %v2190_v54 = vmul.f32 1.442695, %v2126_v18  ;;  %6522 = vmatprep.subr.bf16.mxu0 %v6886_v57  ;;  %6558 = vmatprep.subr.bf16.mxu1 %v6887_v26 }
 0x1be   : > { %4426 = vst.msk [vmem:[#allocation2 + $0xb8] sm:$0xff] %vm529_vm2, %v8517_v35  ;;  %2435 = vperm.xlu0 %6811, %v8517_v35  }
 0x1bf   : > { %4425 = vst.msk [vmem:[#allocation2 + $0xb0] sm:$0xff] %vm529_vm2, %v8522_v22  ;;  %v1945_v24 = vpop.xlane.xlu1 %1944  ;;  %2325 = vperm.xlu1 %6810, %v8484_v45   ;;  %6908 = vpow2.f32 %v2190_v54  ;;  %6523 = vmatpush3.bf16.msra.mxu0 %v6886_v57  ;;  %v8562_v54 = vld [vmem:[#allocation2 + $0x50] sm:$0xff]  ;;  %v2129_v57 = vsub.f32 %v8421_v10, %v8443_v6 }
 0x1c0   : > { %v8535_v3 = vmax.f32 %v8512_v62, %v1945_v24  ;;  %v1943_v55 = vpop.xlane.xlu0 %1942  ;;  %6559 = vmatpush3.bf16.msra.mxu1 %v6887_v26  ;;  %v6888_v24 = vld [vmem:[%s8427_s28 + $0x10] sm:$0xff]  }
 0x1c1   : > { %v8540_v40 = vmax.f32 %v8524_v34, %v1943_v55  ;;  %v6889_v55 = vld [vmem:[%s8427_s28 + $0x40] sm:$0xff]   ;;  %6524 = vmatprep.subr.bf16.mxu0 %v6888_v24  ;;  %v2196_v10 = vmul.f32 1.442695, %v2129_v57 }
 0x1c2   : > { %4408 = vst.msk [vmem:[#allocation2 + $0x28] sm:$0xff] %vm529_vm2, %v8535_v3  ;;  %6560 = vmatprep.subr.bf16.mxu1 %v6889_v55  ;;  %v8600_v57 = vld [vmem:[#allocation2 + $0x40] sm:$0xff] }
 0x1c3   : > { %4407 = vst.msk [vmem:[#allocation2 + $0x20] sm:$0xff] %vm529_vm2, %v8540_v40  ;;  %v1977_v18 = vpop.xlane.xlu1 %1976  ;;  %2350 = vperm.xlu1 %6810, %v8502_v16   ;;  %6525 = vmatpush3.bf16.msra.mxu0 %v6888_v24  ;;  %v2145_v24 = vsub.f32 %v8445_v56, %v8461_v49  ;;  %6910 = vpow2.f32 %v2196_v10  ;;  %v2143_v49 = vsub.f32 %v8458_v37, %v8479_v21  ;;  %v8620_v10 = vld [vmem:[#allocation2 + $0xc0] sm:$0xff] }
 0x1c4   : > { %v8550_v51 = vmax.f32 %v8532_v15, %v1977_v18  ;;  %v1975_v5 = vpop.xlane.xlu0 %1974  ;;  %6561 = vmatpush3.bf16.msra.mxu1 %v6889_v55  ;;  %6526 = vmatprep.subr.bf16.mxu0 %v6890_v19 }
 0x1c5   : > { %v8555_v44 = vmax.f32 %v8542_v27, %v1975_v5  ;;  %v2224_v21 = vmul.f32 1.442695, %v2143_v49  ;;  %v2144_v49 = vsub.f32 %v8419_v31, %v8435_v20 }
 0x1c6   : > { %4424 = vst.msk [vmem:[#allocation2 + $0xa8] sm:$0xff] %vm529_vm2, %v8550_v51  ;;  %2425 = vperm.xlu0 %6811, %v8550_v51  }
 0x1c7   : > { %4423 = vst.msk [vmem:[#allocation2 + $0xa0] sm:$0xff] %vm529_vm2, %v8555_v44  ;;  %v1957_v26 = vpop.xlane.xlu1 %1956  ;;  %2430 = vperm.xlu1 %6810, %v8522_v22   ;;  %6527 = vmatpush3.bf16.msra.mxu0 %v6890_v19  ;;  %v2228_v19 = vmul.f32 1.442695, %v2145_v24 }
 0x1c8   : > { %v8570_v18 = vmax.f32 %v8557_v17, %v1957_v26  ;;  %v1955_v5 = vpop.xlane.xlu0 %1954 }
 0x1c9   : > { %v8574_v36 = vmax.f32 %v8562_v54, %v1955_v5  ;;  %v6891_v5 = vld [vmem:[%s8427_s28] sm:$0xff]   ;;  %6912 = vpow2.f32 %v2228_v19 }
 0x1ca   : > { %4414 = vst.msk [vmem:[#allocation2 + $0x58] sm:$0xff] %vm529_vm2, %v8570_v18  ;;  %2375 = vperm.xlu0 %6811, %v8570_v18   ;;  %6528 = vmatprep.subr.bf16.mxu0 %v6891_v5  ;;  %6914 = vpow2.f32 %v2224_v21 }
 0x1cb   : > { %4413 = vst.msk [vmem:[#allocation2 + $0x50] sm:$0xff] %vm529_vm2, %v8574_v36  ;;  %v1989_v6 = vpop.xlane.xlu1 %1988  ;;  %2340 = vperm.xlu1 %6810, %v8540_v40   ;;  %6529 = vmatpush3.bf16.msra.mxu0 %v6891_v5 }
 0x1cc   : > { %v8589_v55 = vmax.f32 %v8576_v11, %v1989_v6  ;;  %v1987_v26 = vpop.xlane.xlu0 %1986  ;;  %v8610_v7 = vpop.eup %6908 }
 0x1cd   : > { %v8593_v63 = vmax.f32 %v8581_v47, %v1987_v26  ;;  %10577 = vst [vmem:[#allocation68_spill] sm:$0xff] %v8610_v7 }
 0x1ce   : > { %4430 = vst.msk [vmem:[#allocation2 + $0xd8] sm:$0xff] %vm529_vm2, %v8589_v55  ;;  %2455 = vperm.xlu0 %6811, %v8589_v55  }
 0x1cf   : > { %4429 = vst.msk [vmem:[#allocation2 + $0xd0] sm:$0xff] %vm529_vm2, %v8593_v63  ;;  %v1953_v56 = vpop.xlane.xlu1 %1952  ;;  %2420 = vperm.xlu1 %6810, %v8555_v44  }
 0x1d0   : > { %v8608_v6 = vmax.f32 %v8595_v48, %v1953_v56  ;;  %v1951_v26 = vpop.xlane.xlu0 %1950  ;;  %v2128_v56 = vsub.f32 %v8417_v42, %v8430_v28 }
 0x1d1   : > { %v8613_v38 = vmax.f32 %v8600_v57, %v1951_v26 }
 0x1d2   : > { %4412 = vst.msk [vmem:[#allocation2 + $0x48] sm:$0xff] %vm529_vm2, %v8608_v6  ;;  %3281 = vperm.xlu0 %6811, %v8610_v7   ;;  %v8633_v7 = vld [vmem:[#allocation2 + $0x78] sm:$0xff] }
 0x1d3   : > { %4411 = vst.msk [vmem:[#allocation2 + $0x40] sm:$0xff] %vm529_vm2, %v8613_v38  ;;  %v1985_v37 = vpop.xlane.xlu1 %1984  ;;  %2355 = vperm.xlu1 %6810, %v8497_v0  }
 0x1d4   : > { %v8626_v24 = vmax.f32 %v8615_v39, %v1985_v37  ;;  %v1983_v5 = vpop.xlane.xlu0 %1982  ;;  %v2194_v37 = vmul.f32 1.442695, %v2128_v56  ;;  %v8664_v56 = vpop.eup %6910 }
 0x1d5   : > { %v8631_v26 = vmax.f32 %v8620_v10, %v1983_v5  ;;  %10578 = vst [vmem:[#allocation69_spill] sm:$0xff] %v8664_v56 }
 0x1d6   : > { %4428 = vst.msk [vmem:[#allocation2 + $0xc8] sm:$0xff] %vm529_vm2, %v8626_v24  ;;  %2365 = vperm.xlu0 %6811, %v8608_v6   ;;  %6916 = vpow2.f32 %v2194_v37  ;;  %v8684_v37 = vpop.eup %6912 }
 0x1d7   : > { %4427 = vst.msk [vmem:[#allocation2 + $0xc0] sm:$0xff] %vm529_vm2, %v8631_v26  ;;  %v1965_v19 = vpop.xlane.xlu1 %1964  ;;  %2345 = vperm.xlu1 %6810, %v8535_v3   ;;  %10579 = vst [vmem:[#allocation70_spill] sm:$0xff] %v8684_v37  ;;  %v8704_v14 = vpop.eup %6914 }
 0x1d8   : > { %v8644_v42 = vmax.f32 %v8633_v7, %v1965_v19  ;;  %v1963_v28 = vpop.xlane.xlu0 %1962  ;;  %v2226_v19 = vmul.f32 1.442695, %v2144_v49  ;;  %10580 = vst [vmem:[#allocation71_spill] sm:$0xff] %v8704_v14 }
 0x1d9   : > { %v8649_v5 = vmax.f32 %v8638_v58, %v1963_v28  ;;  %v2142_v28 = vsub.f32 %v8451_v29, %v8466_v1 }
 0x1da   : > { %4418 = vst.msk [vmem:[#allocation2 + $0x78] sm:$0xff] %vm529_vm2, %v8644_v42  ;;  %2445 = vperm.xlu0 %6811, %v8626_v24   ;;  %6918 = vpow2.f32 %v2226_v19  ;;  %v2133_v19 = vsub.f32 %v8476_v46, %v8497_v0  ;;  %v2149_v0 = vsub.f32 %v8494_v52, %v8517_v35 }
 0x1db   : > { %4417 = vst.msk [vmem:[#allocation2 + $0x70] sm:$0xff] %vm529_vm2, %v8649_v5  ;;  %v1997_v21 = vpop.xlane.xlu1 %1996  ;;  %2370 = vperm.xlu1 %6810, %v8574_v36  }
 0x1dc   : > { %v8662_v31 = vmax.f32 %v8651_v23, %v1997_v21  ;;  %v1995_v20 = vpop.xlane.xlu0 %1994  ;;  %v8676_v21 = vld [vmem:[#allocation2 + $0x60] sm:$0xff]  ;;  %v2204_v46 = vmul.f32 1.442695, %v2133_v19  ;;  %v2236_v52 = vmul.f32 1.442695, %v2149_v0  ;;  %v2147_v0 = vsub.f32 %v8532_v15, %v8550_v51 }
 0x1dd   : > { %v8669_v8 = vmax.f32 %v8656_v9, %v1995_v20  ;;  %v2222_v20 = vmul.f32 1.442695, %v2142_v28  ;;  %v8773_v15 = vld [vmem:[#allocation2 + $0x180] sm:$0xff] }
 0x1de   : > { %4434 = vst.msk [vmem:[#allocation2 + $0xf8] sm:$0xff] %vm529_vm2, %v8662_v31  ;;  %3296 = vperm.xlu0 %6811, %v8664_v56   ;;  %v8689_v56 = vld [vmem:[#allocation2 + $0xe8] sm:$0xff] }
 0x1df   : > { %4433 = vst.msk [vmem:[#allocation2 + $0xf0] sm:$0xff] %vm529_vm2, %v8669_v8  ;;  %v1961_v49 = vpop.xlane.xlu1 %1960  ;;  %2450 = vperm.xlu1 %6810, %v8593_v63   ;;  %6920 = vpow2.f32 %v2222_v20 }
 0x1e0   : > { %v8682_v1 = vmax.f32 %v8671_v25, %v1961_v49  ;;  %v1959_v29 = vpop.xlane.xlu0 %1958  ;;  %6922 = vpow2.f32 %v2204_v46 }
 0x1e1   : > { %v8687_v32 = vmax.f32 %v8676_v21, %v1959_v29  ;;  %6924 = vpow2.f32 %v2236_v52  ;;  %v2232_v52 = vmul.f32 1.442695, %v2147_v0 }
 0x1e2   : > { %4416 = vst.msk [vmem:[#allocation2 + $0x68] sm:$0xff] %vm529_vm2, %v8682_v1  ;;  %3376 = vperm.xlu0 %6811, %v8684_v37  }
 0x1e3   : > { %4415 = vst.msk [vmem:[#allocation2 + $0x60] sm:$0xff] %vm529_vm2, %v8687_v32  ;;  %v1993_v49 = vpop.xlane.xlu1 %1992  ;;  %2360 = vperm.xlu1 %6810, %v8613_v38  }
 0x1e4   : > { %v8702_v28 = vmax.f32 %v8689_v56, %v1993_v49  ;;  %v1991_v29 = vpop.xlane.xlu0 %1990  ;;  %v2127_v49 = vsub.f32 %v8469_v12, %v8484_v45  ;;  %v2131_v45 = vsub.f32 %v8512_v62, %v8535_v3  ;;  %v8751_v62 = vld [vmem:[#allocation2 + $0x100] sm:$0xff] }
 0x1e5   : > { %v8707_v37 = vmax.f32 %v8694_v13, %v1991_v29  ;;  %10586 = vst [vmem:[#allocation77_spill] sm:$0xff] %v8751_v62 }
 0x1e6   : > { %4432 = vst.msk [vmem:[#allocation2 + $0xe8] sm:$0xff] %vm529_vm2, %v8702_v28  ;;  %3366 = vperm.xlu0 %6811, %v8704_v14   ;;  %v8726_v14 = vpop.eup %6916  ;;  %v2200_v46 = vmul.f32 1.442695, %v2131_v45  ;;  %v2137_v45 = vsub.f32 %v8557_v17, %v8570_v18  ;;  %v8795_v17 = vld [vmem:[#allocation2 + $0x130] sm:$0xff] }
 0x1e7   : > { %4431 = vst.msk [vmem:[#allocation2 + $0xe0] sm:$0xff] %vm529_vm2, %v8707_v37  ;;  %2440 = vperm.xlu1 %6810, %v8631_v26   ;;  %10583 = vst [vmem:[#allocation74_spill] sm:$0xff] %v8726_v14  ;;  %v8744_v53 = vpop.eup %6918 }
 0x1e8   : > { %v2003_v20 = vpop.xlane.xlu0 %2002  ;;  %10585 = vst [vmem:[#allocation76_spill] sm:$0xff] %v8744_v53  ;;  %10589 = vst [vmem:[#allocation80_spill] sm:$0xff] %v8795_v17 }
 0x1e9   : > { %v8722_v29 = vmax.f32 %v8712_v30, %v2003_v20  ;;  %v2192_v20 = vmul.f32 1.442695, %v2127_v49 }
 0x1ea   : > { %2395 = vperm.xlu0 %6811, %v8644_v42  }
 0x1eb   : > { %4437 = vst.msk [vmem:[#allocation2 + $0x110] sm:$0xff] %vm529_vm2, %v8722_v29  ;;  %v2005_v19 = vpop.xlane.xlu1 %2004  ;;  %3291 = vperm.xlu1 %6810, %v8726_v14   ;;  %6926 = vpow2.f32 %v2192_v20  ;;  %v8764_v14 = vld [vmem:[#allocation2 + $0x108] sm:$0xff] }
 0x1ec   : > { %v8737_v12 = vmax.f32 %v8724_v4, %v2005_v19  ;;  %v2035_v35 = vpop.xlane.xlu0 %2034  ;;  %10587 = vst [vmem:[#allocation78_spill] sm:$0xff] %v8764_v14  ;;  %v8766_v4 = vpop.eup %6920  ;;  %6928 = vpow2.f32 %v2200_v46 }
 0x1ed   : > { %v8740_v30 = vmax.f32 %v8729_v41, %v2035_v35  ;;  %10588 = vst [vmem:[#allocation79_spill] sm:$0xff] %v8766_v4  ;;  %6930 = vpow2.f32 %v2232_v52  ;;  %v2130_v52 = vsub.f32 %v8524_v34, %v8540_v40  ;;  %v2151_v34 = vsub.f32 %v8615_v39, %v8626_v24  ;;  %v8869_v39 = vld [vmem:[#allocation2 + $0x1a0] sm:$0xff] }
 0x1ee   : > { %4438 = vst.msk [vmem:[#allocation2 + $0x118] sm:$0xff] %vm529_vm2, %v8737_v12  ;;  %2475 = vperm.xlu0 %6811, %v8662_v31  }
 0x1ef   : > { %4453 = vst.msk [vmem:[#allocation2 + $0x190] sm:$0xff] %vm529_vm2, %v8740_v30  ;;  %v2037_v3 = vpop.xlane.xlu1 %2036  ;;  %3371 = vperm.xlu1 %6810, %v8744_v53  }
 0x1f0   : > { %v8759_v49 = vmax.f32 %v8742_v50, %v2037_v3  ;;  %v1999_v19 = vpop.xlane.xlu0 %1998  ;;  %v8788_v50 = vld [vmem:[#allocation2 + $0x188] sm:$0xff] }
 0x1f1   : > { %v8762_v35 = vmax.f32 %v8751_v62, %v1999_v19  ;;  %v2132_v19 = vsub.f32 %v8487_v33, %v8502_v16  ;;  %v2212_v16 = vmul.f32 1.442695, %v2137_v45  ;;  %v2153_v33 = vsub.f32 %v8576_v11, %v8589_v55  ;;  %v8819_v11 = vld [vmem:[#allocation2 + $0x1b0] sm:$0xff] }
 0x1f2   : > { %4454 = vst.msk [vmem:[#allocation2 + $0x198] sm:$0xff] %vm529_vm2, %v8759_v49  ;;  %2385 = vperm.xlu0 %6811, %v8682_v1  }
 0x1f3   : > { %4435 = vst.msk [vmem:[#allocation2 + $0x100] sm:$0xff] %vm529_vm2, %v8762_v35  ;;  %v2001_v51 = vpop.xlane.xlu1 %2000  ;;  %3361 = vperm.xlu1 %6810, %v8766_v4   ;;  %v2148_v4 = vsub.f32 %v8505_v60, %v8522_v22  ;;  %6932 = vpow2.f32 %v2212_v16  ;;  %v2244_v60 = vmul.f32 1.442695, %v2153_v33  ;;  %v2135_v22 = vsub.f32 %v8595_v48, %v8608_v6  ;;  %v8845_v6 = vld [vmem:[#allocation2 + $0x120] sm:$0xff] }
 0x1f4   : > { %v8781_v20 = vmax.f32 %v8764_v14, %v2001_v51  ;;  %v2031_v3 = vpop.xlane.xlu0 %2030  ;;  %v8805_v51 = vpop.eup %6922  ;;  %v8812_v14 = vld [vmem:[#allocation2 + $0x138] sm:$0xff]  ;;  %v2146_v48 = vsub.f32 %v8542_v27, %v8555_v44  ;;  %v2240_v27 = vmul.f32 1.442695, %v2151_v34  ;;  %v2141_v44 = vsub.f32 %v8633_v7, %v8644_v42  ;;  %v8893_v7 = vld [vmem:[#allocation2 + $0x150] sm:$0xff] }
 0x1f5   : > { %v8786_v53 = vmax.f32 %v8773_v15, %v2031_v3  ;;  %10590 = vst [vmem:[#allocation81_spill] sm:$0xff] %v8805_v51  ;;  %v2202_v3 = vmul.f32 1.442695, %v2132_v19  ;;  %v2208_v40 = vmul.f32 1.442695, %v2135_v22  ;;  %10595 = vst [vmem:[#allocation86_spill] sm:$0xff] %v8893_v7 }
 0x1f6   : > { %4436 = vst.msk [vmem:[#allocation2 + $0x108] sm:$0xff] %vm529_vm2, %v8781_v20  ;;  %2465 = vperm.xlu0 %6811, %v8702_v28  }
 0x1f7   : > { %4451 = vst.msk [vmem:[#allocation2 + $0x180] sm:$0xff] %vm529_vm2, %v8786_v53  ;;  %v2033_v18 = vpop.xlane.xlu1 %2032  ;;  %2390 = vperm.xlu1 %6810, %v8649_v5   ;;  %6934 = vpow2.f32 %v2202_v3 }
 0x1f8   : > { %v8803_v46 = vmax.f32 %v8788_v50, %v2033_v18  ;;  %v2011_v0 = vpop.xlane.xlu0 %2010  ;;  %v8829_v18 = vpop.eup %6924  ;;  %6936 = vpow2.f32 %v2244_v60 }
 0x1f9   : > { %v8810_v62 = vmax.f32 %v8795_v17, %v2011_v0  ;;  %10591 = vst [vmem:[#allocation82_spill] sm:$0xff] %v8829_v18  ;;  %v2234_v0 = vmul.f32 1.442695, %v2148_v4  ;;  %v8836_v17 = vld [vmem:[#allocation2 + $0x1b8] sm:$0xff]  ;;  %v8838_v16 = vpop.eup %6926 }
 0x1fa   : > { %4452 = vst.msk [vmem:[#allocation2 + $0x188] sm:$0xff] %vm529_vm2, %v8803_v46  ;;  %3316 = vperm.xlu0 %6811, %v8805_v51   ;;  %10592 = vst [vmem:[#allocation83_spill] sm:$0xff] %v8838_v16 }
 0x1fb   : > { %4441 = vst.msk [vmem:[#allocation2 + $0x130] sm:$0xff] %vm529_vm2, %v8810_v62  ;;  %v2013_v55 = vpop.xlane.xlu1 %2012  ;;  %2470 = vperm.xlu1 %6810, %v8669_v8   ;;  %6938 = vpow2.f32 %v2234_v0 }
 0x1fc   : > { %v8827_v45 = vmax.f32 %v8812_v14, %v2013_v55  ;;  %v2043_v19 = vpop.xlane.xlu0 %2042  ;;  %v8855_v55 = vpop.eup %6928  ;;  %6940 = vpow2.f32 %v2208_v40 }
 0x1fd   : > { %v8834_v51 = vmax.f32 %v8819_v11, %v2043_v19  ;;  %10593 = vst [vmem:[#allocation84_spill] sm:$0xff] %v8855_v55  ;;  %v2198_v19 = vmul.f32 1.442695, %v2130_v52  ;;  %v8879_v0 = vpop.eup %6930 }
 0x1fe   : > { %4442 = vst.msk [vmem:[#allocation2 + $0x138] sm:$0xff] %vm529_vm2, %v8827_v45  ;;  %3396 = vperm.xlu0 %6811, %v8829_v18   ;;  %10594 = vst [vmem:[#allocation85_spill] sm:$0xff] %v8879_v0 }
 0x1ff   : > { %4457 = vst.msk [vmem:[#allocation2 + $0x1b0] sm:$0xff] %vm529_vm2, %v8834_v51  ;;  %v2045_v4 = vpop.xlane.xlu1 %2044  ;;  %3286 = vperm.xlu1 %6810, %v8838_v16   ;;  %v8862_v16 = vld [vmem:[#allocation2 + $0x128] sm:$0xff]  ;;  %6942 = vpow2.f32 %v2198_v19 }
 0x200   : > { %v8853_v33 = vmax.f32 %v8836_v17, %v2045_v4  ;;  %v2007_v3 = vpop.xlane.xlu0 %2006  ;;  %v2230_v4 = vmul.f32 1.442695, %v2146_v48  ;;  %6944 = vpow2.f32 %v2240_v27  ;;  %v8903_v19 = vpop.eup %6932 }
 0x201   : > { %v8860_v18 = vmax.f32 %v8845_v6, %v2007_v3  ;;  %v2136_v3 = vsub.f32 %v8562_v54, %v8574_v36  ;;  %v2220_v36 = vmul.f32 1.442695, %v2141_v44  ;;  %v2157_v54 = vsub.f32 %v8651_v23, %v8662_v31  ;;  %10596 = vst [vmem:[#allocation87_spill] sm:$0xff] %v8903_v19  ;;  %v8919_v31 = vld [vmem:[#allocation2 + $0x1d0] sm:$0xff] }
 0x202   : > { %4458 = vst.msk [vmem:[#allocation2 + $0x1b8] sm:$0xff] %vm529_vm2, %v8853_v33  ;;  %3306 = vperm.xlu0 %6811, %v8855_v55   ;;  %v8886_v55 = vld [vmem:[#allocation2 + $0x1a8] sm:$0xff]  ;;  %6946 = vpow2.f32 %v2230_v4  ;;  %v2139_v44 = vsub.f32 %v8671_v25, %v8682_v1  ;;  %v2134_v23 = vsub.f32 %v8600_v57, %v8613_v38  ;;  %v8945_v1 = vld [vmem:[#allocation2 + $0x140] sm:$0xff]  ;;  %v2150_v25 = vsub.f32 %v8620_v10, %v8631_v26 }
 0x203   : > { %4439 = vst.msk [vmem:[#allocation2 + $0x120] sm:$0xff] %vm529_vm2, %v8860_v18  ;;  %v2009_v24 = vpop.xlane.xlu1 %2008  ;;  %2380 = vperm.xlu1 %6810, %v8687_v32   ;;  %6948 = vpow2.f32 %v2220_v36  ;;  %10601 = vst [vmem:[#allocation92_spill] sm:$0xff] %v8945_v1 }
 0x204   : > { %v8877_v52 = vmax.f32 %v8862_v16, %v2009_v24  ;;  %v2039_v22 = vpop.xlane.xlu0 %2038  ;;  %v2210_v24 = vmul.f32 1.442695, %v2136_v3  ;;  %v8912_v27 = vpop.eup %6934  ;;  %v2216_v57 = vmul.f32 1.442695, %v2139_v44 }
 0x205   : > { %v8884_v60 = vmax.f32 %v8869_v39, %v2039_v22  ;;  %v2152_v22 = vsub.f32 %v8581_v47, %v8593_v63  ;;  %10597 = vst [vmem:[#allocation88_spill] sm:$0xff] %v8912_v27  ;;  %v2252_v63 = vmul.f32 1.442695, %v2157_v54  ;;  %v2155_v54 = vsub.f32 %v8689_v56, %v8702_v28  ;;  %v8971_v28 = vld [vmem:[#allocation2 + $0x1c0] sm:$0xff] }
 0x206   : > { %4440 = vst.msk [vmem:[#allocation2 + $0x128] sm:$0xff] %vm529_vm2, %v8877_v52  ;;  %3386 = vperm.xlu0 %6811, %v8879_v0   ;;  %v8910_v0 = vld [vmem:[#allocation2 + $0x158] sm:$0xff]  ;;  %6950 = vpow2.f32 %v2210_v24 }
 0x207   : > { %4455 = vst.msk [vmem:[#allocation2 + $0x1a0] sm:$0xff] %vm529_vm2, %v8884_v60  ;;  %v2041_v42 = vpop.xlane.xlu1 %2040  ;;  %2460 = vperm.xlu1 %6810, %v8707_v37   ;;  %6952 = vpow2.f32 %v2252_v63  ;;  %v2248_v26 = vmul.f32 1.442695, %v2155_v54 }
 0x208   : > { %v8901_v48 = vmax.f32 %v8886_v55, %v2041_v42  ;;  %v2019_v34 = vpop.xlane.xlu0 %2018  ;;  %v8929_v42 = vpop.eup %6936 }
 0x209   : > { %v8908_v40 = vmax.f32 %v8893_v7, %v2019_v34  ;;  %10598 = vst [vmem:[#allocation89_spill] sm:$0xff] %v8929_v42  ;;  %v2242_v34 = vmul.f32 1.442695, %v2152_v22  ;;  %v8938_v36 = vpop.eup %6938 }
 0x20a   : > { %4456 = vst.msk [vmem:[#allocation2 + $0x1a8] sm:$0xff] %vm529_vm2, %v8901_v48  ;;  %3336 = vperm.xlu0 %6811, %v8903_v19   ;;  %10600 = vst [vmem:[#allocation91_spill] sm:$0xff] %v8938_v36 }
 0x20b   : > { %4445 = vst.msk [vmem:[#allocation2 + $0x150] sm:$0xff] %vm529_vm2, %v8908_v40  ;;  %v2021_v47 = vpop.xlane.xlu1 %2020  ;;  %3311 = vperm.xlu1 %6810, %v8912_v27   ;;  %v8936_v27 = vld [vmem:[#allocation2 + $0x1d8] sm:$0xff]  ;;  %6954 = vpow2.f32 %v2242_v34 }
 0x20c   : > { %v8927_v4 = vmax.f32 %v8910_v0, %v2021_v47  ;;  %v2051_v3 = vpop.xlane.xlu0 %2050  ;;  %10599 = vst [vmem:[#allocation90_spill] sm:$0xff] %v8936_v27  ;;  %v8955_v47 = vpop.eup %6940  ;;  %6956 = vpow2.f32 %v2216_v57  ;;  %v8993_v57 = vld [vmem:[#allocation2 + $0x170] sm:$0xff] }
 0x20d   : > { %v8934_v19 = vmax.f32 %v8919_v31, %v2051_v3  ;;  %10602 = vst [vmem:[#allocation93_spill] sm:$0xff] %v8955_v47  ;;  %v2206_v3 = vmul.f32 1.442695, %v2134_v23  ;;  %v8964_v63 = vpop.eup %6942  ;;  %10607 = vst [vmem:[#allocation98_spill] sm:$0xff] %v8993_v57 }
 0x20e   : > { %4446 = vst.msk [vmem:[#allocation2 + $0x158] sm:$0xff] %vm529_vm2, %v8927_v4  ;;  %3416 = vperm.xlu0 %6811, %v8929_v42   ;;  %10603 = vst [vmem:[#allocation94_spill] sm:$0xff] %v8964_v63  ;;  %v8979_v34 = vpop.eup %6944 }
 0x20f   : > { %4461 = vst.msk [vmem:[#allocation2 + $0x1d0] sm:$0xff] %vm529_vm2, %v8934_v19  ;;  %v2053_v38 = vpop.xlane.xlu1 %2052  ;;  %3391 = vperm.xlu1 %6810, %v8938_v36   ;;  %v8962_v36 = vld [vmem:[#allocation2 + $0x148] sm:$0xff]  ;;  %10604 = vst [vmem:[#allocation95_spill] sm:$0xff] %v8979_v34  ;;  %6958 = vpow2.f32 %v2206_v3 }
 0x210   : > { %v8953_v24 = vmax.f32 %v8936_v27, %v2053_v38  ;;  %v2015_v22 = vpop.xlane.xlu0 %2014  ;;  %v2238_v38 = vmul.f32 1.442695, %v2150_v25  ;;  %v8988_v27 = vpop.eup %6946  ;;  %6960 = vpow2.f32 %v2248_v26  ;;  %v9015_v26 = vld [vmem:[#allocation2 + $0x1f0] sm:$0xff] }
 0x211   : > { %v8960_v42 = vmax.f32 %v8945_v1, %v2015_v22  ;;  %v2140_v22 = vsub.f32 %v8638_v58, %v8649_v5  ;;  %10606 = vst [vmem:[#allocation97_spill] sm:$0xff] %v8988_v27  ;;  %v9001_v54 = vpop.eup %6948  ;;  %10611 = vst [vmem:[#allocation102_spill] sm:$0xff] %v9015_v26 }
 0x212   : > { %4462 = vst.msk [vmem:[#allocation2 + $0x1d8] sm:$0xff] %vm529_vm2, %v8953_v24  ;;  %3326 = vperm.xlu0 %6811, %v8955_v47   ;;  %v8986_v47 = vld [vmem:[#allocation2 + $0x1c8] sm:$0xff]  ;;  %10608 = vst [vmem:[#allocation99_spill] sm:$0xff] %v9001_v54  ;;  %6962 = vpow2.f32 %v2238_v38 }
 0x213   : > { %4443 = vst.msk [vmem:[#allocation2 + $0x140] sm:$0xff] %vm529_vm2, %v8960_v42  ;;  %v2017_v10 = vpop.xlane.xlu1 %2016  ;;  %3301 = vperm.xlu1 %6810, %v8964_v63   ;;  %10605 = vst [vmem:[#allocation96_spill] sm:$0xff] %v8986_v47  ;;  %v2218_v3 = vmul.f32 1.442695, %v2140_v22  ;;  %v9010_v63 = vpop.eup %6950 }
 0x214   : > { %v8977_v23 = vmax.f32 %v8962_v36, %v2017_v10  ;;  %v2047_v44 = vpop.xlane.xlu0 %2046  ;;  %v2156_v10 = vsub.f32 %v8656_v9, %v8669_v8  ;;  %10610 = vst [vmem:[#allocation101_spill] sm:$0xff] %v9010_v63  ;;  %v9023_v22 = vpop.eup %6952 }
 0x215   : > { %v8984_v56 = vmax.f32 %v8971_v28, %v2047_v44  ;;  %10612 = vst [vmem:[#allocation103_spill] sm:$0xff] %v9023_v22  ;;  %6964 = vpow2.f32 %v2218_v3 }
 0x216   : > { %4444 = vst.msk [vmem:[#allocation2 + $0x148] sm:$0xff] %vm529_vm2, %v8977_v23  ;;  %3406 = vperm.xlu0 %6811, %v8979_v34   ;;  %v9008_v34 = vld [vmem:[#allocation2 + $0x178] sm:$0xff] }
 0x217   : > { %4459 = vst.msk [vmem:[#allocation2 + $0x1c0] sm:$0xff] %vm529_vm2, %v8984_v56  ;;  %v2049_v25 = vpop.xlane.xlu1 %2048  ;;  %3381 = vperm.xlu1 %6810, %v8988_v27   ;;  %10609 = vst [vmem:[#allocation100_spill] sm:$0xff] %v9008_v34  ;;  %v9030_v27 = vld [vmem:[#allocation2 + $0x1f8] sm:$0xff] }
 0x218   : > { %v8999_v58 = vmax.f32 %v8986_v47, %v2049_v25  ;;  %v2027_v5 = vpop.xlane.xlu0 %2026  ;;  %v2250_v25 = vmul.f32 1.442695, %v2156_v10  ;;  %10613 = vst [vmem:[#allocation104_spill] sm:$0xff] %v9030_v27 }
 0x219   : > { %v9006_v44 = vmax.f32 %v8993_v57, %v2027_v5  ;;  %v2138_v5 = vsub.f32 %v8676_v21, %v8687_v32  ;;  %v9032_v57 = vpop.eup %6954 }
 0x21a   : > { %4460 = vst.msk [vmem:[#allocation2 + $0x1c8] sm:$0xff] %vm529_vm2, %v8999_v58  ;;  %3356 = vperm.xlu0 %6811, %v9001_v54   ;;  %10614 = vst [vmem:[#allocation105_spill] sm:$0xff] %v9032_v57  ;;  %v9045_v10 = vpop.eup %6956  ;;  %6966 = vpow2.f32 %v2250_v25 }
 0x21b   : > { %4449 = vst.msk [vmem:[#allocation2 + $0x170] sm:$0xff] %vm529_vm2, %v9006_v44  ;;  %v2029_v38 = vpop.xlane.xlu1 %2028  ;;  %3331 = vperm.xlu1 %6810, %v9010_v63   ;;  %10616 = vst [vmem:[#allocation107_spill] sm:$0xff] %v9045_v10  ;;  %v2154_v63 = vsub.f32 %v8694_v13, %v8707_v37 }
 0x21c   : > { %v9021_v8 = vmax.f32 %v9008_v34, %v2029_v38  ;;  %v2059_v9 = vpop.xlane.xlu0 %2058  ;;  %v9037_v38 = vld [vmem:[#allocation2 + $0x160] sm:$0xff]  ;;  %v9054_v47 = vpop.eup %6958 }
 0x21d   : > { %v9028_v54 = vmax.f32 %v9015_v26, %v2059_v9  ;;  %10615 = vst [vmem:[#allocation106_spill] sm:$0xff] %v9037_v38  ;;  %v2214_v9 = vmul.f32 1.442695, %v2138_v5  ;;  %v9052_v26 = vld [vmem:[#allocation2 + $0x168] sm:$0xff]  ;;  %10619 = vst [vmem:[#allocation110_spill] sm:$0xff] %v9054_v47  ;;  %v9067_v5 = vpop.eup %6960 }
 0x21e   : > { %4450 = vst.msk [vmem:[#allocation2 + $0x178] sm:$0xff] %vm529_vm2, %v9021_v8  ;;  %3436 = vperm.xlu0 %6811, %v9023_v22   ;;  %10618 = vst [vmem:[#allocation109_spill] sm:$0xff] %v9052_v26 }
 0x21f   : > { %4465 = vst.msk [vmem:[#allocation2 + $0x1f0] sm:$0xff] %vm529_vm2, %v9028_v54  ;;  %v2061_v3 = vpop.xlane.xlu1 %2060  ;;  %3411 = vperm.xlu1 %6810, %v9032_v57   ;;  %10621 = vst [vmem:[#allocation112_spill] sm:$0xff] %v9067_v5  ;;  %6968 = vpow2.f32 %v2214_v9 }
 0x220   : > { %v9043_v32 = vmax.f32 %v9030_v27, %v2061_v3  ;;  %v2023_v21 = vpop.xlane.xlu0 %2022  ;;  %v9059_v3 = vld [vmem:[#allocation2 + $0x1e0] sm:$0xff]  ;;  %v2176_v27 = vsub.f32 %v8729_v41, %v8740_v30 }
 0x221   : > { %v9050_v22 = vmax.f32 %v9037_v38, %v2023_v21  ;;  %10620 = vst [vmem:[#allocation111_spill] sm:$0xff] %v9059_v3  ;;  %v2246_v21 = vmul.f32 1.442695, %v2154_v63  ;;  %v9074_v38 = vpop.eup %6962 }
 0x222   : > { %4466 = vst.msk [vmem:[#allocation2 + $0x1f8] sm:$0xff] %vm529_vm2, %v9043_v32  ;;  %3346 = vperm.xlu0 %6811, %v9045_v10   ;;  %v9072_v10 = vld [vmem:[#allocation2 + $0x1e8] sm:$0xff]  ;;  %10624 = vst [vmem:[#allocation115_spill] sm:$0xff] %v9074_v38  ;;  %v9085_v9 = vpop.eup %6964 }
 0x223   : > { %10617 = vst [vmem:[#allocation108_spill] sm:$0xff] %v9050_v22  ;;  %4447 = vst.msk [vmem:[#allocation2 + $0x160] sm:$0xff] %vm529_vm2, %v9050_v22  ;;  %v2025_v25 = vpop.xlane.xlu1 %2024  ;;  %3321 = vperm.xlu1 %6810, %v9054_v47   ;;  %6970 = vpow2.f32 %v2246_v21  ;;  %v10654_v22 = vld [vmem:[#allocation13_spill] sm:$0xff] }
 0x224   : > { %v9065_v13 = vmax.f32 %v9052_v26, %v2025_v25  ;;  %v2055_v37 = vpop.xlane.xlu0 %2054  ;;  %10623 = vst [vmem:[#allocation114_spill] sm:$0xff] %v9072_v10  ;;  %10626 = vst [vmem:[#allocation117_spill] sm:$0xff] %v9085_v9 }
 0x225   : > { %v9070_v57 = vmax.f32 %v9059_v3, %v2055_v37 }
 0x226   : > { %4448 = vst.msk [vmem:[#allocation2 + $0x168] sm:$0xff] %vm529_vm2, %v9065_v13  ;;  %3426 = vperm.xlu0 %6811, %v9067_v5  }
 0x227   : > { %10622 = vst [vmem:[#allocation113_spill] sm:$0xff] %v9070_v57  ;;  %4463 = vst.msk [vmem:[#allocation2 + $0x1e0] sm:$0xff] %vm529_vm2, %v9070_v57  ;;  %v2057_v25 = vpop.xlane.xlu1 %2056  ;;  %3401 = vperm.xlu1 %6810, %v9074_v38   ;;  %v9091_v47 = vpop.eup %6966 }
 0x228   : > { %v9083_v63 = vmax.f32 %v9072_v10, %v2057_v25  ;;  %10627 = vst [vmem:[#allocation118_spill] sm:$0xff] %v9091_v47 }
 0x22a   : > { %10625 = vst [vmem:[#allocation116_spill] sm:$0xff] %v9083_v63  ;;  %4464 = vst.msk [vmem:[#allocation2 + $0x1e8] sm:$0xff] %vm529_vm2, %v9083_v63  ;;  %2495 = vperm.xlu0 %6811, %v8737_v12  }
 0x22b   : > { %v2331_v37 = vpop.permute.xlu1 %2330  ;;  %3351 = vperm.xlu1 %6810, %v9085_v9  }
 0x22c   : > { %v2321_v5 = vpop.permute.xlu0 %2320  ;;  %v9097_v10 = vpop.eup %6968 }
 0x22d   : > { %10628 = vst [vmem:[#allocation119_spill] sm:$0xff] %v9097_v10 }
 0x22e   : > { %2575 = vperm.xlu0 %6811, %v8759_v49  }
 0x22f   : > { %v2411_v38 = vpop.permute.xlu1 %2410  ;;  %3431 = vperm.xlu1 %6810, %v9091_v47  }
 0x230   : > { %v2656_v21 = vsub.f32 %v7682_v43, %v2411_v38  ;;  %v2416_v25 = vpop.permute.xlu0 %2415  ;;  %v9105_v43 = vld [vmem:[%s8427_s28 + $0xb8] sm:$0xff]   ;;  %v9108_v38 = vpop.eup %6970 }
 0x231   : > { %v2657_v3 = vsub.f32 %v7841_v59, %v2416_v25  ;;  %10629 = vst [vmem:[#allocation120_spill] sm:$0xff] %v9108_v38  ;;  %6578 = vmatprep.subr.bf16.mxu0 %v9105_v43 }
 0x232   : > { %v2738_v26 = vmul.f32 1.442695, %v2656_v21  ;;  %2485 = vperm.xlu0 %6811, %v8781_v20   ;;  %v10630_v21 = vld [vmem:[#allocation10_spill] sm:$0xff] }
 0x233   : > { %v2740_v9 = vmul.f32 1.442695, %v2657_v3  ;;  %v2401_v1 = vpop.permute.xlu1 %2400  ;;  %3341 = vperm.xlu1 %6810, %v9097_v10   ;;  %v2638_v25 = vsub.f32 %v10630_v21, %v2321_v5 }
 0x234   : > { %v2654_v57 = vsub.f32 %v7845_v61, %v2401_v1  ;;  %v2406_v47 = vpop.permute.xlu0 %2405  ;;  %6972 = vpow2.f32 %v2738_v26  ;;  %v2290_v61 = vmul.f32 1.442695, %v2176_v27  ;;  %v10631_v1 = vld [vmem:[#allocation9_spill] sm:$0xff] }
 0x235   : > { %v2655_v59 = vsub.f32 %v7858_v2, %v2406_v47  ;;  %6974 = vpow2.f32 %v2740_v9  ;;  %v6894_v2 = vld [vmem:[%s8427_s28 + $0xf8] sm:$0xff]   ;;  %v10632_v47 = vld [vmem:[#allocation8_spill] sm:$0xff]  ;;  %v2702_v5 = vmul.f32 1.442695, %v2638_v25 }
 0x236   : > { %v2734_v3 = vmul.f32 1.442695, %v2654_v57  ;;  %2565 = vperm.xlu0 %6811, %v8803_v46   ;;  %v2640_v34 = vsub.f32 %v10632_v47, %v2331_v37  ;;  %6610 = vmatprep.subr.bf16.mxu1 %v6894_v2  ;;  %v10633_v9 = vld [vmem:[#allocation11_spill] sm:$0xff] }
 0x237   : > { %v2736_v41 = vmul.f32 1.442695, %v2655_v59  ;;  %v2336_v10 = vpop.permute.xlu1 %2335  ;;  %3421 = vperm.xlu1 %6810, %v9108_v38   ;;  %v10641_v38 = vld [vmem:[#allocation14_spill] sm:$0xff] }
 0x238   : > { %6976 = vpow2.f32 %v2734_v3  ;;  %v2641_v7 = vsub.f32 %v10631_v1, %v2336_v10  ;;  %v2706_v21 = vmul.f32 1.442695, %v2640_v34 }
 0x239   : > { %6978 = vpow2.f32 %v2736_v41  ;;  %v2436_v27 = vpop.permute.xlu0 %2435 }
 0x23a   : > { %2515 = vperm.xlu0 %6811, %v8827_v45   ;;  %v2708_v57 = vmul.f32 1.442695, %v2641_v7  ;;  %6980 = vpow2.f32 %v2290_v61  ;;  %v2174_v7 = vsub.f32 %v8773_v15, %v8786_v53  ;;  %v10638_v15 = vld [vmem:[#allocation18_spill] sm:$0xff] }
 0x23b   : > { %v2326_v26 = vpop.permute.xlu1 %2325  ;;  %2490 = vperm.xlu1 %6810, %v8722_v29   ;;  %6982 = vpow2.f32 %v2702_v5 }
 0x23c   : > { %v2639_v59 = vsub.f32 %v10633_v9, %v2326_v26  ;;  %6984 = vpow2.f32 %v2708_v57  ;;  %v2286_v61 = vmul.f32 1.442695, %v2174_v7  ;;  %v10639_v57 = vld [vmem:[#allocation15_spill] sm:$0xff] }
 0x23e   : > { %v2704_v3 = vmul.f32 1.442695, %v2639_v59  ;;  %2595 = vperm.xlu0 %6811, %v8853_v33  }
 0x23f   : > { %v9121_v10 = vpop.permute.xlu1 %2350  ;;  %2570 = vperm.xlu1 %6810, %v8740_v30  }
 0x240   : > { %6986 = vpow2.f32 %v2704_v3  ;;  %v6896_v3 = vld [vmem:[%s8427_s28 + $0xf0] sm:$0xff]  }
 0x241   : > { %6988 = vpow2.f32 %v2706_v21  ;;  %v2426_v37 = vpop.permute.xlu0 %2425  ;;  %v9127_v25 = vpop.eup %6972 }
 0x242   : > { %2505 = vperm.xlu0 %6811, %v8877_v52   ;;  %10634 = vst [vmem:[#allocation10_spill] sm:$0xff] %v9127_v25  ;;  %v9130_v41 = vpop.eup %6974  ;;  %v2659_v5 = vsub.f32 %v10638_v15, %v2426_v37  ;;  %6990 = vpow2.f32 %v2286_v61  ;;  %v2661_v37 = vsub.f32 %v10641_v38, %v2436_v27  ;;  %v6898_v38 = vld [vmem:[%s8427_s28 + $0xe8] sm:$0xff]  }
 0x243   : > { %v2431_v34 = vpop.permute.xlu1 %2430  ;;  %2480 = vperm.xlu1 %6810, %v8762_v35   ;;  %10635 = vst [vmem:[#allocation9_spill] sm:$0xff] %v9130_v41  ;;  %v3672_v21 = vpack.c.bf16 %v9130_v41, %v9127_v25  ;;  %v10644_v41 = vld [vmem:[#allocation19_spill] sm:$0xff] }
 0x244   : > { %v2660_v26 = vsub.f32 %v10639_v57, %v2431_v34  ;;  %v2744_v34 = vmul.f32 1.442695, %v2659_v5  ;;  %v2748_v5 = vmul.f32 1.442695, %v2661_v37 }
 0x245   : > { %v9132_v1 = vpop.eup %6976  ;;  %v9134_v30 = vpop.permute.xlu0 %2375 }
 0x246   : > { %10636 = vst [vmem:[#allocation8_spill] sm:$0xff] %v9132_v1  ;;  %v9136_v47 = vpop.eup %6978  ;;  %2585 = vperm.xlu0 %6811, %v8901_v48   ;;  %v2746_v57 = vmul.f32 1.442695, %v2660_v26  ;;  %6992 = vpow2.f32 %v2744_v34  ;;  %v10648_v26 = vld [vmem:[#allocation17_spill] sm:$0xff] }
 0x247   : > { %10637 = vst [vmem:[#allocation11_spill] sm:$0xff] %v9136_v47  ;;  %v2341_v9 = vpop.permute.xlu1 %2340  ;;  %2560 = vperm.xlu1 %6810, %v8786_v53   ;;  %v3671_v59 = vpack.c.bf16 %v9136_v47, %v9132_v1  ;;  %v9147_v7 = vpop.eup %6980 }
 0x248   : > { %10640 = vst [vmem:[#allocation18_spill] sm:$0xff] %v9147_v7  ;;  %v9153_v53 = vpop.eup %6982  ;;  %6994 = vpow2.f32 %v2746_v57  ;;  %v10652_v57 = vld [vmem:[#allocation78_spill] sm:$0xff] }
 0x249   : > { %6562 = vmatprep.mubr.bf16.mxu1 %v3671_v59  ;;  %v9150_v15 = vpop.permute.xlu0 %2455  ;;  %10642 = vst [vmem:[#allocation15_spill] sm:$0xff] %v9153_v53  ;;  %v9156_v47 = vpop.eup %6984 }
 0x24a   : > { %6563 = vmatmul.mubr.bf16.vlgmr.msra.gmra.mxu1 %v3672_v21  ;;  %3531 = vperm.xlu0 %6811, %v9147_v7   ;;  %10643 = vst [vmem:[#allocation14_spill] sm:$0xff] %v9156_v47  ;;  %v2642_v7 = vsub.f32 %v10648_v26, %v2341_v9 }
 0x24b   : > { %v2421_v61 = vpop.permute.xlu1 %2420  ;;  %2510 = vperm.xlu1 %6810, %v8810_v62   ;;  %6611 = vmatpush3.bf16.msra.mxu1 %v6894_v2 }
 0x24c   : > { %v2658_v1 = vsub.f32 %v10644_v41, %v2421_v61  ;;  %6612 = vmatprep.subr.bf16.mxu1 %v6896_v3  ;;  %v6893_v61 = vld [vmem:[%s8427_s28 + $0xb0] sm:$0xff]   ;;  %v2710_v63 = vmul.f32 1.442695, %v2642_v7 }
 0x24d   : > { %v9160_v27 = vpop.eup %6986  ;;  %v9162_v59 = vpop.permute.xlu0 %3281 }
 0x24e   : > { %10645 = vst [vmem:[#allocation19_spill] sm:$0xff] %v9160_v27  ;;  %10646 = vst [vmem:[#allocation121_spill] sm:$0xff] %v9162_v59  ;;  %v9164_v21 = vpop.eup %6988  ;;  %v2742_v25 = vmul.f32 1.442695, %v2658_v1  ;;  %2535 = vperm.xlu0 %6811, %v8927_v4   ;;  %v3663_v2 = vpack.c.bf16 %v9160_v27, %v9153_v53  ;;  %v10649_v59 = vld [vmem:[#allocation73_spill] sm:$0xff]  ;;  %v10651_v1 = vld [vmem:[#allocation12_spill] sm:$0xff]  ;;  %v10653_v53 = vsub.f32 %v10652_v57, %v8781_v20 }
 0x24f   : > { %10647 = vst [vmem:[#allocation122_spill] sm:$0xff] %v9164_v21  ;;  %v2356_v41 = vpop.permute.xlu1 %2355  ;;  %2590 = vperm.xlu1 %6810, %v8834_v51   ;;  %v3664_v37 = vpack.c.bf16 %v9156_v47, %v9164_v21  ;;  %6613 = vmatpush3.bf16.msra.mxu1 %v6896_v3  ;;  %v10650_v34 = vsub.f32 %v10649_v59, %v8737_v12  ;;  %v6900_v21 = vld [vmem:[%s8427_s28 + $0xe0] sm:$0xff]   ;;  %v6895_v20 = vld [vmem:[%s8427_s28 + $0xa8] sm:$0xff]   ;;  %v9191_v7 = vpop.eup %6990 }
 0x250   : > { %6996 = vpow2.f32 %v2742_v25  ;;  %v2645_v26 = vsub.f32 %v10651_v1, %v2356_v41  ;;  %6530 = vmatprep.mubr.bf16.mxu0 %v3663_v2  ;;  %6614 = vmatprep.subr.bf16.mxu1 %v6898_v38  ;;  %v2256_v27 = vmul.f32 1.442695, %v10653_v53  ;;  %v2644_v47 = vsub.f32 %v10654_v22, %v9121_v10  ;;  %v10655_v22 = vld [vmem:[#allocation16_spill] sm:$0xff]  ;;  %10656 = vst [vmem:[#allocation17_spill] sm:$0xff] %v9191_v7  ;;  %v6902_v41 = vld [vmem:[%s8427_s28 + $0xd8] sm:$0xff]  }
 0x251   : > { %v2260_v9 = vmul.f32 1.442695, %v10650_v34  ;;  %6998 = vpow2.f32 %v2748_v5  ;;  %6531 = vmatmul.mubr.bf16.vlgmr.msra.gmra.mxu0 %v3664_v37  ;;  %v2366_v3 = vpop.permute.xlu0 %2365  ;;  %v2180_v53 = vsub.f32 %v8819_v11, %v8834_v51  ;;  %v10657_v5 = vld [vmem:[#allocation72_spill] sm:$0xff] }
 0x252   : > { %2615 = vperm.xlu0 %6811, %v8953_v24   ;;  %6579 = vmatpush3.bf16.msra.mxu0 %v9105_v43  ;;  %v2716_v12 = vmul.f32 1.442695, %v2645_v26  ;;  %v2160_v43 = vsub.f32 %v10657_v5, %v8722_v29  ;;  %v2714_v59 = vmul.f32 1.442695, %v2644_v47  ;;  %v6897_v11 = vld [vmem:[%s8427_s28 + $0xa0] sm:$0xff]   ;;  %v10658_v29 = vld [vmem:[#allocation77_spill] sm:$0xff] }
 0x253   : > { %v2346_v25 = vpop.permute.xlu1 %2345  ;;  %2500 = vperm.xlu1 %6810, %v8860_v18   ;;  %6580 = vmatprep.subr.bf16.mxu0 %v6893_v61  ;;  %7000 = vpow2.f32 %v2260_v9  ;;  %v2298_v47 = vmul.f32 1.442695, %v2180_v53  ;;  %v10659_v9 = vld [vmem:[#allocation24_spill] sm:$0xff]  ;;  %v9210_v26 = vpop.eup %6992 }
 0x254   : > { %v2643_v10 = vsub.f32 %v10655_v22, %v2346_v25  ;;  %6615 = vmatpush3.bf16.msra.mxu1 %v6898_v38  ;;  %7002 = vpow2.f32 %v2256_v27  ;;  %v2158_v38 = vsub.f32 %v10658_v29, %v8762_v35  ;;  %v2258_v27 = vmul.f32 1.442695, %v2160_v43  ;;  %v10660_v35 = vld [vmem:[#allocation75_spill] sm:$0xff]  ;;  %v6906_v43 = vld [vmem:[%s8427_s28 + $0xc8] sm:$0xff]  }
 0x255   : > { %v9195_v2 = vpop.permute.xlu0 %2445  ;;  %6616 = vmatprep.subr.bf16.mxu1 %v6900_v21  ;;  %7004 = vpow2.f32 %v2710_v63  ;;  %v2178_v63 = vsub.f32 %v8869_v39, %v8884_v60  ;;  %v2647_v1 = vsub.f32 %v10659_v9, %v2366_v3  ;;  %v6899_v39 = vld [vmem:[%s8427_s28 + $0x98] sm:$0xff]   ;;  %v9218_v53 = vpop.eup %6994  ;;  %v6901_v9 = vld [vmem:[%s8427_s28 + $0x90] sm:$0xff]  }
 0x256   : > { %v2712_v37 = vmul.f32 1.442695, %v2643_v10  ;;  %3521 = vperm.xlu0 %6811, %v9191_v7   ;;  %6581 = vmatpush3.bf16.msra.mxu0 %v6893_v61  ;;  %7006 = vpow2.f32 %v2716_v12  ;;  %v6904_v61 = vld [vmem:[%s8427_s28 + $0xd0] sm:$0xff]   ;;  %v10662_v12 = vld [vmem:[#allocation21_spill] sm:$0xff]  ;;  %v2254_v3 = vmul.f32 1.442695, %v2158_v38 }
 0x257   : > { %v2371_v51 = vpop.permute.xlu1 %2370  ;;  %2580 = vperm.xlu1 %6810, %v8884_v60   ;;  %6582 = vmatprep.subr.bf16.mxu0 %v6895_v20  ;;  %v2294_v22 = vmul.f32 1.442695, %v2178_v63 }
 0x258   : > { %7008 = vpow2.f32 %v2712_v37  ;;  %6617 = vmatpush3.bf16.msra.mxu1 %v6900_v21  ;;  %v10661_v21 = vsub.f32 %v10660_v35, %v8759_v49  ;;  %v2648_v25 = vsub.f32 %v10662_v12, %v2371_v51  ;;  %v10663_v49 = vld [vmem:[#allocation20_spill] sm:$0xff]  ;;  %v2720_v37 = vmul.f32 1.442695, %v2647_v1  ;;  %v10664_v51 = vld [vmem:[#allocation26_spill] sm:$0xff] }
 0x259   : > { %7010 = vpow2.f32 %v2714_v59  ;;  %v9205_v34 = vpop.permute.xlu0 %3296  ;;  %6618 = vmatprep.subr.bf16.mxu1 %v6902_v41  ;;  %v2649_v10 = vsub.f32 %v10663_v49, %v9134_v30  ;;  %v2663_v29 = vsub.f32 %v10664_v51, %v9195_v2  ;;  %v10665_v30 = vld [vmem:[#allocation23_spill] sm:$0xff]  ;;  %v10666_v2 = vld [vmem:[#allocation25_spill] sm:$0xff] }
 0x25a   : > { %2525 = vperm.xlu0 %6811, %v8977_v23   ;;  %6583 = vmatpush3.bf16.msra.mxu0 %v6895_v20  ;;  %v2292_v57 = vmul.f32 1.442695, %v10661_v21  ;;  %7012 = vpow2.f32 %v2298_v47  ;;  %v2722_v38 = vmul.f32 1.442695, %v2648_v25  ;;  %v10668_v21 = vld [vmem:[#allocation22_spill] sm:$0xff]  ;;  %v6907_v25 = vld [vmem:[%s8427_s28 + $0xc0] sm:$0xff]  }
 0x25b   : > { %v2451_v60 = vpop.permute.xlu1 %2450  ;;  %2530 = vperm.xlu1 %6810, %v8908_v40   ;;  %6584 = vmatprep.subr.bf16.mxu0 %v6897_v11  ;;  %7014 = vpow2.f32 %v2258_v27 }
 0x25c   : > { %6619 = vmatpush3.bf16.msra.mxu1 %v6902_v41  ;;  %7016 = vpow2.f32 %v2292_v57  ;;  %v2664_v47 = vsub.f32 %v10665_v30, %v2451_v60  ;;  %v2665_v57 = vsub.f32 %v10668_v21, %v9150_v15  ;;  %v6903_v15 = vld [vmem:[%s8427_s28 + $0x88] sm:$0xff]  }
 0x25d   : > { %v9220_v20 = vpop.eup %6996  ;;  %v9224_v5 = vpop.permute.xlu0 %3376  ;;  %6620 = vmatprep.subr.bf16.mxu1 %v6904_v61  ;;  %7018 = vpow2.f32 %v2254_v3  ;;  %v2752_v3 = vmul.f32 1.442695, %v2663_v29 }
 0x25e   : > { %v9227_v59 = vpop.eup %6998  ;;  %2605 = vperm.xlu0 %6811, %v8999_v58   ;;  %v3673_v41 = vpack.c.bf16 %v9210_v26, %v9220_v20  ;;  %6585 = vmatpush3.bf16.msra.mxu0 %v6897_v11  ;;  %7020 = vpow2.f32 %v2294_v22  ;;  %v2724_v11 = vmul.f32 1.442695, %v2649_v10  ;;  %v2754_v22 = vmul.f32 1.442695, %v2664_v47 }
 0x25f   : > { %v2361_v27 = vpop.permute.xlu1 %2360  ;;  %2610 = vperm.xlu1 %6810, %v8934_v19   ;;  %v3674_v63 = vpack.c.bf16 %v9227_v59, %v9218_v53  ;;  %6586 = vmatprep.subr.bf16.mxu0 %v6899_v39  ;;  %7022 = vpow2.f32 %v2720_v37 }
 0x260   : > { %v2646_v1 = vsub.f32 %v10666_v2, %v2361_v27  ;;  %6566 = vmatprep.mubr.bf16.mxu1 %v3673_v41  ;;  %6621 = vmatpush3.bf16.msra.mxu1 %v6904_v61  ;;  %v9240_v35 = vpop.eup %7000  ;;  %7024 = vpow2.f32 %v2722_v38  ;;  %v10670_v41 = vld [vmem:[#allocation27_spill] sm:$0xff]  ;;  %v6905_v2 = vld [vmem:[%s8427_s28 + $0x80] sm:$0xff]   ;;  %s10199_s28 = scalar_lea.vmem [#allocation5], %s5995_s25  ;;  %s7373_s25 = smov [#allocation5]  }
 0x261   : > { %10667 = vst [vmem:[#allocation73_spill] sm:$0xff] %v9240_v35  ;;  %6567 = vmatmul.mubr.bf16.gmra.mxu1 %v3674_v63  ;;  %v9244_v12 = vpop.permute.xlu0 %3366  ;;  %6622 = vmatprep.subr.bf16.mxu1 %v6906_v43  ;;  %v9247_v60 = vpop.eup %7002  ;;  %s7296_s26 = sshll.u32 %s7373_s25, 4  ;;  %s7297_s26 = int_to_ptr.vmem [resolvable:$false] %s7296_s26 }
 0x262   : > { %10669 = vst [vmem:[#allocation12_spill] sm:$0xff] %v9247_v60  ;;  %v2718_v49 = vmul.f32 1.442695, %v2646_v1  ;;  %3456 = vperm.xlu0 %6811, %v9240_v35   ;;  %6587 = vmatpush3.bf16.msra.mxu0 %v6899_v39  ;;  %v9250_v61 = vpop.eup %7004  ;;  %v2756_v39 = vmul.f32 1.442695, %v2665_v57  ;;  %s7298_s27 = scalar_lea.vmem %s7297_s26, 4096 }
 0x263   : > { %v2441_v10 = vpop.permute.xlu1 %2440  ;;  %2520 = vperm.xlu1 %6810, %v8960_v42   ;;  %6588 = vmatprep.subr.bf16.mxu0 %v6901_v9  ;;  %v9254_v51 = vpop.eup %7006 }
 0x264   : > { %7026 = vpow2.f32 %v2718_v49  ;;  %v2662_v30 = vsub.f32 %v10670_v41, %v2441_v10  ;;  %6623 = vmatpush3.bf16.msra.mxu1 %v6906_v43 }
 0x265   : > { %v9257_v37 = vpop.eup %7008  ;;  %7028 = vpow2.f32 %v2724_v11  ;;  %v9259_v29 = vpop.permute.xlu0 %2395  ;;  %6624 = vmatprep.subr.bf16.mxu1 %v6907_v25 }
 0x266   : > { %v9261_v38 = vpop.eup %7010  ;;  %7030 = vpow2.f32 %v2752_v3  ;;  %v2750_v47 = vmul.f32 1.442695, %v2662_v30  ;;  %3446 = vperm.xlu0 %6811, %v9247_v60   ;;  %v3665_v27 = vpack.c.bf16 %v9257_v37, %v9250_v61  ;;  %6589 = vmatpush3.bf16.msra.mxu0 %v6901_v9 }
 0x267   : > { %7032 = vpow2.f32 %v2754_v22  ;;  %v9266_v43 = vpop.permute.xlu1 %3291  ;;  %2600 = vperm.xlu1 %6810, %v8984_v56   ;;  %v3666_v63 = vpack.c.bf16 %v9254_v51, %v9261_v38  ;;  %6590 = vmatprep.subr.bf16.mxu0 %v6903_v15  ;;  %v9272_v1 = vpop.eup %7012 }
 0x268   : > { %7034 = vpow2.f32 %v2750_v47  ;;  %6534 = vmatprep.mubr.bf16.mxu0 %v3665_v27  ;;  %6625 = vmatpush3.bf16.msra.mxu1 %v6907_v25  ;;  %10671 = vst [vmem:[#allocation78_spill] sm:$0xff] %v9272_v1  ;;  %v9276_v9 = vpop.eup %7014  ;;  %v10675_v25 = vsub.f32 %v8788_v50, %v8803_v46 }
 0x269   : > { %7036 = vpow2.f32 %v2756_v39  ;;  %6535 = vmatmul.mubr.bf16.gmra.mxu0 %v3666_v63  ;;  %v9274_v11 = vpop.permute.xlu0 %2475  ;;  %10672 = vst [vmem:[#allocation13_spill] sm:$0xff] %v9276_v9  ;;  %v9282_v57 = vpop.eup %7016  ;;  %v10677_v39 = vsub.f32 %v8812_v14, %v8827_v45  ;;  %v10678_v63 = vld [vmem:[#allocation80_spill] sm:$0xff] }
 0x26a   : > { %3551 = vperm.xlu0 %6811, %v9272_v1   ;;  %6591 = vmatpush3.bf16.msra.mxu0 %v6903_v15  ;;  %10673 = vst [vmem:[#allocation16_spill] sm:$0xff] %v9282_v57  ;;  %v9284_v3 = vpop.eup %7018  ;;  %v2288_v49 = vmul.f32 1.442695, %v10675_v25  ;;  %v2162_v1 = vsub.f32 %v8845_v6, %v8860_v18 }
 0x26b   : > { %v9279_v21 = vpop.permute.xlu1 %3371  ;;  %3451 = vperm.xlu1 %6810, %v9276_v9   ;;  %6592 = vmatprep.subr.bf16.mxu0 %v6905_v2  ;;  %10674 = vst [vmem:[#allocation72_spill] sm:$0xff] %v9284_v3  ;;  %v9289_v10 = vpop.eup %7020  ;;  %v2268_v47 = vmul.f32 1.442695, %v10677_v39  ;;  %v2184_v39 = vsub.f32 %v8919_v31, %v8934_v19 }
 0x26c   : > { %10676 = vst [vmem:[#allocation77_spill] sm:$0xff] %v9289_v10  ;;  %v9292_v15 = vpop.eup %7022  ;;  %7038 = vpow2.f32 %v2288_v49  ;;  %v10679_v49 = vsub.f32 %v8862_v16, %v8877_v52  ;;  %v10681_v52 = vsub.f32 %v8836_v17, %v8853_v33  ;;  %v10682_v17 = vsub.f32 %v8886_v55, %v8901_v48  ;;  %v10686_v48 = vld [vmem:[#allocation28_spill] sm:$0xff] }
 0x26d   : > { %v2386_v22 = vpop.permute.xlu0 %2385  ;;  %v9297_v30 = vpop.eup %7024  ;;  %7040 = vpow2.f32 %v2268_v47  ;;  %v2306_v6 = vmul.f32 1.442695, %v2184_v39  ;;  %v2182_v47 = vsub.f32 %v8971_v28, %v8984_v56  ;;  %v10684_v56 = vsub.f32 %v8910_v0, %v8927_v4  ;;  %v10689_v4 = vld [vmem:[#allocation34_spill] sm:$0xff] }
 0x26e   : > { %2555 = vperm.xlu0 %6811, %v9021_v8   ;;  %6593 = vmatpush3.bf16.msra.mxu0 %v6905_v2  ;;  %v2164_v2 = vsub.f32 %v10678_v63, %v8810_v62  ;;  %v2264_v62 = vmul.f32 1.442695, %v10679_v49  ;;  %v2300_v19 = vmul.f32 1.442695, %v10681_v52  ;;  %v2296_v33 = vmul.f32 1.442695, %v10682_v17 }
 0x26f   : > { %v9294_v41 = vpop.permute.xlu1 %3361  ;;  %3441 = vperm.xlu1 %6810, %v9284_v3   ;;  %v10683_v49 = vld [vmem:[#allocation32_spill] sm:$0xff]  ;;  %v2276_v28 = vmul.f32 1.442695, %v10684_v56 }
 0x270   : > { %v2266_v3 = vmul.f32 1.442695, %v2164_v2  ;;  %7042 = vpow2.f32 %v2264_v62  ;;  %v2262_v2 = vmul.f32 1.442695, %v2162_v1  ;;  %v2651_v52 = vsub.f32 %v10683_v49, %v2386_v22  ;;  %v10685_v1 = vld [vmem:[#allocation29_spill] sm:$0xff] }
 0x271   : > { %v9302_v50 = vpop.eup %7026  ;;  %v9304_v46 = vpop.permute.xlu0 %2465 }
 0x272   : > { %v9306_v27 = vpop.eup %7028  ;;  %2635 = vperm.xlu0 %6811, %v9043_v32   ;;  %v3667_v25 = vpack.c.bf16 %v9292_v15, %v9302_v50  ;;  %7044 = vpow2.f32 %v2266_v3  ;;  %v2653_v3 = vsub.f32 %v10686_v48, %v9259_v29  ;;  %v2728_v0 = vmul.f32 1.442695, %v2651_v52  ;;  %v10692_v29 = vld [vmem:[#allocation33_spill] sm:$0xff] }
 0x273   : > { %v9313_v60 = vpop.eup %7030  ;;  %v2391_v35 = vpop.permute.xlu1 %2390  ;;  %3536 = vperm.xlu1 %6810, %v9282_v57   ;;  %v3668_v14 = vpack.c.bf16 %v9306_v27, %v9297_v30  ;;  %7046 = vpow2.f32 %v2300_v19 }
 0x274   : > { %v9318_v45 = vpop.eup %7032  ;;  %6538 = vmatprep.mubr.bf16.mxu0 %v3667_v25  ;;  %v2167_v25 = vsub.f32 %v8962_v36, %v8977_v23  ;;  %v2652_v62 = vsub.f32 %v10685_v1, %v2391_v35  ;;  %7048 = vpow2.f32 %v2306_v6  ;;  %v2302_v23 = vmul.f32 1.442695, %v2182_v47  ;;  %v10695_v1 = vld [vmem:[#allocation108_spill] sm:$0xff] }
 0x275   : > { %v9325_v63 = vpop.eup %7034  ;;  %6539 = vmatmul.mubr.bf16.gmra.mxu0 %v3668_v14  ;;  %v9329_v57 = vpop.permute.xlu0 %3316  ;;  %7050 = vpow2.f32 %v2262_v2  ;;  %v2667_v35 = vsub.f32 %v10689_v4, %v9304_v46  ;;  %v2732_v17 = vmul.f32 1.442695, %v2653_v3 }
 0x276   : > { %10680 = vst [vmem:[#allocation24_spill] sm:$0xff] %v9329_v57  ;;  %v9331_v7 = vpop.eup %7036  ;;  %3541 = vperm.xlu0 %6811, %v9289_v10   ;;  %v3675_v16 = vpack.c.bf16 %v9313_v60, %v9325_v63  ;;  %v2272_v55 = vmul.f32 1.442695, %v2167_v25  ;;  %7052 = vpow2.f32 %v2296_v33  ;;  %v2730_v19 = vmul.f32 1.442695, %v2652_v62  ;;  %v10694_v33 = vld [vmem:[#allocation30_spill] sm:$0xff] }
 0x277   : > { %v2471_v31 = vpop.permute.xlu1 %2470  ;;  %2550 = vperm.xlu1 %6810, %v9006_v44   ;;  %v3676_v18 = vpack.c.bf16 %v9331_v7, %v9318_v45  ;;  %7054 = vpow2.f32 %v2276_v28  ;;  %v2669_v49 = vsub.f32 %v10694_v33, %v9274_v11  ;;  %v2760_v52 = vmul.f32 1.442695, %v2667_v35  ;;  %v10696_v62 = vld [vmem:[#allocation100_spill] sm:$0xff]  ;;  %v10699_v11 = vld [vmem:[#allocation86_spill] sm:$0xff] }
 0x278   : > { %6570 = vmatprep.mubr.bf16.mxu1 %v3675_v16  ;;  %v10690_v16 = vld [vmem:[#allocation116_spill] sm:$0xff]  ;;  %7056 = vpow2.f32 %v2302_v23  ;;  %v2173_v23 = vsub.f32 %v10696_v62, %v9021_v8 }
 0x279   : > { %6571 = vmatmul.mubr.bf16.gmra.mxu1 %v3676_v18  ;;  %v9346_v14 = vpop.permute.xlu0 %3396  ;;  %v9364_v39 = vpop.eup %7038  ;;  %v10691_v18 = vld [vmem:[#allocation31_spill] sm:$0xff]  ;;  %7058 = vpow2.f32 %v2272_v55  ;;  %v2764_v4 = vmul.f32 1.442695, %v2669_v49  ;;  %v10706_v49 = vld [vmem:[#allocation92_spill] sm:$0xff] }
 0x27a   : > { %2545 = vperm.xlu0 %6811, %v9065_v13   ;;  %10688 = vst [vmem:[#allocation21_spill] sm:$0xff] %v9364_v39  ;;  %v2668_v6 = vsub.f32 %v10691_v18, %v2471_v31  ;;  %v9372_v25 = vpop.eup %7040  ;;  %7060 = vpow2.f32 %v2728_v0  ;;  %v10697_v55 = vld [vmem:[#allocation35_spill] sm:$0xff]  ;;  %v2168_v0 = vsub.f32 %v10699_v11, %v8908_v40  ;;  %v10704_v40 = vld [vmem:[#allocation104_spill] sm:$0xff] }
 0x27b   : > { %v9357_v36 = vpop.permute.xlu1 %3286  ;;  %2630 = vperm.xlu1 %6810, %v9028_v54   ;;  %10693 = vst [vmem:[#allocation20_spill] sm:$0xff] %v9372_v25  ;;  %7062 = vpow2.f32 %v2730_v19 }
 0x27c   : > { %v2762_v31 = vmul.f32 1.442695, %v2668_v6  ;;  %v10702_v6 = vld [vmem:[#allocation113_spill] sm:$0xff]  ;;  %v2274_v33 = vmul.f32 1.442695, %v2168_v0 }
 0x27d   : > { %v9362_v22 = vpop.permute.xlu0 %3306  ;;  %v9383_v3 = vpop.eup %7042 }
 0x27e   : > { %10687 = vst [vmem:[#allocation75_spill] sm:$0xff] %v9362_v22  ;;  %2625 = vperm.xlu0 %6811, %v10690_v16   ;;  %10698 = vst [vmem:[#allocation26_spill] sm:$0xff] %v9383_v3  ;;  %v10755_v22 = vld [vmem:[#allocation39_spill] sm:$0xff] }
 0x27f   : > { %v2381_v47 = vpop.permute.xlu1 %2380  ;;  %3526 = vperm.xlu1 %6810, %v9364_v39   ;;  %v9390_v18 = vpop.eup %7044 }
 0x280   : > { %v2650_v2 = vsub.f32 %v10692_v29, %v2381_v47  ;;  %10701 = vst [vmem:[#allocation25_spill] sm:$0xff] %v9390_v18  ;;  %v9395_v47 = vpop.eup %7046  ;;  %v2284_v29 = vmul.f32 1.442695, %v2173_v23 }
 0x281   : > { %v9376_v46 = vpop.permute.xlu0 %3386  ;;  %10703 = vst [vmem:[#allocation22_spill] sm:$0xff] %v9395_v47 }
 0x282   : > { %v2726_v56 = vmul.f32 1.442695, %v2650_v2  ;;  %3476 = vperm.xlu0 %6811, %v9372_v25   ;;  %v2189_v2 = vsub.f32 %v10704_v40, %v9043_v32 }
 0x283   : > { %v2461_v28 = vpop.permute.xlu1 %2460  ;;  %2540 = vperm.xlu1 %6810, %v10695_v1  }
 0x284   : > { %7064 = vpow2.f32 %v2726_v56  ;;  %v2666_v48 = vsub.f32 %v10697_v55, %v2461_v28  ;;  %v2316_v23 = vmul.f32 1.442695, %v2189_v2  ;;  %v10711_v55 = vld [vmem:[#allocation109_spill] sm:$0xff]  ;;  %v10716_v2 = vld [vmem:[#allocation114_spill] sm:$0xff] }
 0x285   : > { %7066 = vpow2.f32 %v2732_v17  ;;  %v9387_v35 = vpop.permute.xlu0 %3336  ;;  %v9399_v17 = vpop.eup %7048 }
 0x286   : > { %10700 = vst [vmem:[#allocation23_spill] sm:$0xff] %v9387_v35  ;;  %7068 = vpow2.f32 %v2760_v52  ;;  %v2758_v19 = vmul.f32 1.442695, %v2666_v48  ;;  %3466 = vperm.xlu0 %6811, %v9383_v3   ;;  %10705 = vst [vmem:[#allocation27_spill] sm:$0xff] %v9399_v17  ;;  %v2166_v52 = vsub.f32 %v10706_v49, %v8960_v42  ;;  %v2171_v42 = vsub.f32 %v10711_v55, %v9065_v13 }
 0x287   : > { %7070 = vpow2.f32 %v2762_v31  ;;  %v9392_v8 = vpop.permute.xlu1 %3311  ;;  %2620 = vperm.xlu1 %6810, %v10702_v6   ;;  %v9405_v31 = vpop.eup %7050 }
 0x288   : > { %7072 = vpow2.f32 %v2758_v19  ;;  %10708 = vst [vmem:[#allocation32_spill] sm:$0xff] %v9405_v31  ;;  %v9408_v28 = vpop.eup %7052  ;;  %v2270_v11 = vmul.f32 1.442695, %v2166_v52  ;;  %v2280_v13 = vmul.f32 1.442695, %v2171_v42  ;;  %v10717_v52 = vld [vmem:[#allocation90_spill] sm:$0xff] }
 0x289   : > { %7074 = vpow2.f32 %v2764_v4  ;;  %v9403_v56 = vpop.permute.xlu0 %3416  ;;  %10709 = vst [vmem:[#allocation29_spill] sm:$0xff] %v9408_v28  ;;  %v9413_v32 = vpop.eup %7054  ;;  %v10718_v55 = vsub.f32 %v10717_v52, %v8953_v24  ;;  %v10721_v52 = vld [vmem:[#allocation98_spill] sm:$0xff] }
 0x28a   : > { %10707 = vst [vmem:[#allocation80_spill] sm:$0xff] %v9403_v56  ;;  %3571 = vperm.xlu0 %6811, %v9399_v17   ;;  %10710 = vst [vmem:[#allocation28_spill] sm:$0xff] %v9413_v32  ;;  %7076 = vpow2.f32 %v2284_v29  ;;  %v9417_v48 = vpop.eup %7056 }
 0x28b   : > { %v9410_v62 = vpop.permute.xlu1 %3391  ;;  %3471 = vperm.xlu1 %6810, %v9390_v18   ;;  %10712 = vst [vmem:[#allocation34_spill] sm:$0xff] %v9417_v48  ;;  %7078 = vpow2.f32 %v2274_v33  ;;  %v9421_v4 = vpop.eup %7058  ;;  %v2187_v33 = vsub.f32 %v10716_v2, %v10690_v16  ;;  %v2308_v3 = vmul.f32 1.442695, %v10718_v55  ;;  %v2172_v55 = vsub.f32 %v10721_v52, %v9006_v44 }
 0x28c   : > { %10714 = vst [vmem:[#allocation31_spill] sm:$0xff] %v9421_v4  ;;  %v9424_v19 = vpop.eup %7060  ;;  %7080 = vpow2.f32 %v2316_v23 }
 0x28d   : > { %v9419_v0 = vpop.permute.xlu0 %3326  ;;  %v9429_v29 = vpop.eup %7062  ;;  %7082 = vpow2.f32 %v2270_v11 }
 0x28e   : > { %10713 = vst [vmem:[#allocation116_spill] sm:$0xff] %v9419_v0  ;;  %3561 = vperm.xlu0 %6811, %v9417_v48   ;;  %v10719_v48 = vld [vmem:[#allocation96_spill] sm:$0xff]  ;;  %7084 = vpow2.f32 %v2280_v13  ;;  %v10753_v0 = vld [vmem:[#allocation37_spill] sm:$0xff] }
 0x28f   : > { %v9426_v40 = vpop.permute.xlu1 %3301  ;;  %3461 = vperm.xlu1 %6810, %v9405_v31   ;;  %v2183_v25 = vsub.f32 %v10719_v48, %v8999_v58  ;;  %v2312_v58 = vmul.f32 1.442695, %v2187_v33  ;;  %7086 = vpow2.f32 %v2308_v3  ;;  %v2282_v3 = vmul.f32 1.442695, %v2172_v55  ;;  %v10725_v33 = vld [vmem:[#allocation102_spill] sm:$0xff] }
 0x290   : > { %10715 = vst [vmem:[#allocation33_spill] sm:$0xff] %v9426_v40 }
 0x291   : > { %v9433_v49 = vpop.eup %7064  ;;  %v9440_v17 = vpop.permute.xlu0 %3406  ;;  %v2304_v2 = vmul.f32 1.442695, %v2183_v25  ;;  %7088 = vpow2.f32 %v2312_v58 }
 0x292   : > { %10720 = vst [vmem:[#allocation30_spill] sm:$0xff] %v9440_v17  ;;  %v9442_v39 = vpop.eup %7066  ;;  %3496 = vperm.xlu0 %6811, %v9413_v32   ;;  %v3669_v23 = vpack.c.bf16 %v9424_v19, %v9433_v49 }
 0x293   : > { %v9447_v16 = vpop.eup %7068  ;;  %v9449_v42 = vpop.permute.xlu1 %3381  ;;  %3556 = vperm.xlu1 %6810, %v9395_v47   ;;  %v3670_v24 = vpack.c.bf16 %v9442_v39, %v9429_v29  ;;  %7090 = vpow2.f32 %v2304_v2  ;;  %v10730_v2 = vld [vmem:[#allocation106_spill] sm:$0xff] }
 0x294   : > { %v9454_v11 = vpop.eup %7070  ;;  %6542 = vmatprep.mubr.bf16.mxu0 %v3669_v23  ;;  %v2188_v23 = vsub.f32 %v10725_v33, %v9028_v54  ;;  %7092 = vpow2.f32 %v2282_v3  ;;  %v2170_v55 = vsub.f32 %v10730_v2, %v10695_v1  ;;  %v10735_v3 = vld [vmem:[#allocation111_spill] sm:$0xff] }
 0x295   : > { %v9456_v48 = vpop.eup %7072  ;;  %6543 = vmatmul.mubr.bf16.gmra.mxu0 %v3670_v24  ;;  %v9460_v32 = vpop.permute.xlu0 %3356 }
 0x296   : > { %10722 = vst [vmem:[#allocation108_spill] sm:$0xff] %v9460_v32  ;;  %v9462_v10 = vpop.eup %7074  ;;  %3486 = vperm.xlu0 %6811, %v9421_v4   ;;  %v3677_v47 = vpack.c.bf16 %v9447_v16, %v9456_v48 }
 0x297   : > { %v9467_v13 = vpop.permute.xlu1 %3331  ;;  %3546 = vperm.xlu1 %6810, %v9408_v28   ;;  %v3678_v25 = vpack.c.bf16 %v9462_v10, %v9454_v11  ;;  %v9472_v44 = vpop.eup %7076 }
 0x298   : > { %10723 = vst [vmem:[#allocation100_spill] sm:$0xff] %v9467_v13  ;;  %6574 = vmatprep.mubr.bf16.mxu1 %v3677_v47  ;;  %10724 = vst [vmem:[#allocation35_spill] sm:$0xff] %v9472_v44  ;;  %v9478_v52 = vpop.eup %7078  ;;  %v2314_v47 = vmul.f32 1.442695, %v2188_v23  ;;  %v2186_v23 = vsub.f32 %v10735_v3, %v10702_v6 }
 0x299   : > { %6575 = vmatmul.mubr.bf16.gmra.mxu1 %v3678_v25  ;;  %v9476_v24 = vpop.permute.xlu0 %3436  ;;  %10727 = vst [vmem:[#allocation113_spill] sm:$0xff] %v9478_v52  ;;  %v9484_v58 = vpop.eup %7080 }
 0x29a   : > { %10726 = vst [vmem:[#allocation86_spill] sm:$0xff] %v9476_v24  ;;  %3516 = vperm.xlu0 %6811, %v9472_v44   ;;  %10729 = vst [vmem:[#allocation92_spill] sm:$0xff] %v9484_v58  ;;  %v9490_v54 = vpop.eup %7082  ;;  %7094 = vpow2.f32 %v2314_v47  ;;  %v2278_v44 = vmul.f32 1.442695, %v2170_v55  ;;  %v10749_v24 = vld [vmem:[#allocation41_spill] sm:$0xff] }
 0x29b   : > { %v9481_v4 = vpop.permute.xlu1 %3411  ;;  %3491 = vperm.xlu1 %6810, %v9478_v52   ;;  %10732 = vst [vmem:[#allocation114_spill] sm:$0xff] %v9490_v54  ;;  %v9496_v33 = vpop.eup %7084 }
 0x29c   : > { %10728 = vst [vmem:[#allocation104_spill] sm:$0xff] %v9481_v4  ;;  %10734 = vst [vmem:[#allocation96_spill] sm:$0xff] %v9496_v33  ;;  %v9502_v1 = vpop.eup %7086  ;;  %7096 = vpow2.f32 %v2278_v44 }
 0x29d   : > { %v9488_v28 = vpop.permute.xlu0 %3346  ;;  %10737 = vst [vmem:[#allocation102_spill] sm:$0xff] %v9502_v1 }
 0x29e   : > { %10731 = vst [vmem:[#allocation109_spill] sm:$0xff] %v9488_v28  ;;  %3596 = vperm.xlu0 %6811, %v9484_v58   ;;  %v9508_v58 = vpop.eup %7088 }
 0x29f   : > { %v9493_v25 = vpop.permute.xlu1 %3321  ;;  %3481 = vperm.xlu1 %6810, %v9490_v54   ;;  %10739 = vst [vmem:[#allocation111_spill] sm:$0xff] %v9508_v58  ;;  %v2310_v54 = vmul.f32 1.442695, %v2186_v23 }
 0x2a0   : > { %10733 = vst [vmem:[#allocation90_spill] sm:$0xff] %v9493_v25  ;;  %v9510_v47 = vpop.eup %7090  ;;  %v10754_v25 = vld [vmem:[#allocation40_spill] sm:$0xff] }
 0x2a1   : > { %v9500_v52 = vpop.permute.xlu0 %3426  ;;  %10740 = vst [vmem:[#allocation123_spill] sm:$0xff] %v9510_v47  ;;  %7098 = vpow2.f32 %v2310_v54  ;;  %v9516_v3 = vpop.eup %7092 }
 0x2a2   : > { %10736 = vst [vmem:[#allocation98_spill] sm:$0xff] %v9500_v52  ;;  %3506 = vperm.xlu0 %6811, %v9496_v33   ;;  %10742 = vst [vmem:[#allocation125_spill] sm:$0xff] %v9516_v3 }
 0x2a3   : > { %v9505_v2 = vpop.permute.xlu1 %3401  ;;  %3576 = vperm.xlu1 %6810, %v9502_v1  }
 0x2a4   : > { %10738 = vst [vmem:[#allocation106_spill] sm:$0xff] %v9505_v2 }
 0x2a5   : > { %v2496_v31 = vpop.permute.xlu0 %2495 }
 0x2a6   : > { %3586 = vperm.xlu0 %6811, %v9508_v58  }
 0x2a7   : > { %v9513_v6 = vpop.permute.xlu1 %3351  ;;  %3566 = vperm.xlu1 %6810, %v9510_v47   ;;  %v9521_v44 = vpop.eup %7094 }
 0x2a8   : > { %10741 = vst [vmem:[#allocation124_spill] sm:$0xff] %v9513_v6  ;;  %10744 = vst [vmem:[#allocation127_spill] sm:$0xff] %v9521_v44 }
 0x2a9   : > { %v2576_v55 = vpop.permute.xlu0 %2575  ;;  %v9526_v18 = vpop.eup %7096 }
 0x2aa   : > { %10746 = vst [vmem:[#allocation129_spill] sm:$0xff] %v9526_v18  ;;  %v2689_v57 = vsub.f32 %v10755_v22, %v2576_v55 }
 0x2ab   : > { %v9518_v33 = vpop.permute.xlu1 %3431  ;;  %3511 = vperm.xlu1 %6810, %v9516_v3  }
 0x2ac   : > { %10743 = vst [vmem:[#allocation126_spill] sm:$0xff] %v9518_v33  ;;  %v10750_v33 = vld [vmem:[#allocation36_spill] sm:$0xff] }
 0x2ad   : > { %v2486_v1 = vpop.permute.xlu0 %2485 }
 0x2ae   : > { %v9531_v47 = vpop.eup %7098  ;;  %v2671_v28 = vsub.f32 %v10749_v24, %v2486_v1 }
 0x2af   : > { %v9523_v23 = vpop.permute.xlu1 %3341  ;;  %3591 = vperm.xlu1 %6810, %v9521_v44   ;;  %10748 = vst [vmem:[#allocation131_spill] sm:$0xff] %v9531_v47 }
 0x2b0   : > { %10745 = vst [vmem:[#allocation128_spill] sm:$0xff] %v9523_v23  ;;  %v10751_v23 = vld [vmem:[#allocation38_spill] sm:$0xff]  ;;  %v2768_v56 = vmul.f32 1.442695, %v2671_v28 }
 0x2b1   : > { %v2566_v58 = vpop.permute.xlu0 %2565  ;;  %v2673_v6 = vsub.f32 %v10751_v23, %v2496_v31  ;;  %v10756_v28 = vld [vmem:[#allocation42_spill] sm:$0xff]  ;;  %v10764_v23 = vld [vmem:[#allocation52_spill] sm:$0xff] }
 0x2b2   : > { %7100 = vpow2.f32 %v2768_v56  ;;  %v10759_v56 = vld [vmem:[#allocation10_spill] sm:$0xff] }
 0x2b3   : > { %v9528_v9 = vpop.permute.xlu1 %3421  ;;  %3501 = vperm.xlu1 %6810, %v9526_v18  }
 0x2b4   : > { %10747 = vst [vmem:[#allocation130_spill] sm:$0xff] %v9528_v9  ;;  %v10752_v9 = vld [vmem:[#allocation44_spill] sm:$0xff] }
 0x2b5   : > { %v2516_v54 = vpop.permute.xlu0 %2515  ;;  %v2687_v2 = vsub.f32 %v10752_v9, %v2566_v58  ;;  %v2804_v9 = vmul.f32 1.442695, %v2689_v57  ;;  %v10761_v58 = vld [vmem:[#allocation43_spill] sm:$0xff]  ;;  %v10762_v57 = vld [vmem:[#allocation46_spill] sm:$0xff] }
 0x2b7   : > { %v2491_v52 = vpop.permute.xlu1 %2490  ;;  %3581 = vperm.xlu1 %6810, %v9531_v47   ;;  %v2772_v47 = vmul.f32 1.442695, %v2673_v6  ;;  %v2800_v24 = vmul.f32 1.442695, %v2687_v2  ;;  %v10763_v6 = vld [vmem:[#allocation8_spill] sm:$0xff] }
 0x2b8   : > { %v2672_v32 = vsub.f32 %v10750_v33, %v2491_v52 }
 0x2b9   : > { %v9534_v3 = vpop.permute.xlu0 %2595 }
 0x2ba   : > { %v2770_v18 = vmul.f32 1.442695, %v2672_v32  ;;  %v10757_v32 = vld [vmem:[#allocation122_spill] sm:$0xff] }
 0x2bb   : > { %v2571_v44 = vpop.permute.xlu1 %2570 }
 0x2bc   : > { %v2688_v4 = vsub.f32 %v10753_v0, %v2571_v44  ;;  %7102 = vpow2.f32 %v2770_v18 }
 0x2bd   : > { %v2506_v17 = vpop.permute.xlu0 %2505 }
 0x2be   : > { %v2802_v33 = vmul.f32 1.442695, %v2688_v4  ;;  %v10760_v4 = vld [vmem:[#allocation49_spill] sm:$0xff] }
 0x2bf   : > { %v2481_v35 = vpop.permute.xlu1 %2480 }
 0x2c0   : > { %v2670_v13 = vsub.f32 %v10754_v25, %v2481_v35 }
 0x2c1   : > { %v2586_v40 = vpop.permute.xlu0 %2585 }
 0x2c2   : > { %v2766_v52 = vmul.f32 1.442695, %v2670_v13  ;;  %v2675_v13 = vsub.f32 %v10760_v4, %v2506_v17  ;;  %v10766_v17 = vld [vmem:[#allocation48_spill] sm:$0xff]  ;;  %v10768_v4 = vld [vmem:[#allocation19_spill] sm:$0xff] }
 0x2c3   : > { %v2561_v31 = vpop.permute.xlu1 %2560 }
 0x2c4   : > { %7104 = vpow2.f32 %v2766_v52  ;;  %v2686_v1 = vsub.f32 %v10756_v28, %v2561_v31  ;;  %v2776_v44 = vmul.f32 1.442695, %v2675_v13  ;;  %v9557_v52 = vpop.eup %7100  ;;  %v10765_v31 = vld [vmem:[#allocation45_spill] sm:$0xff] }
 0x2c5   : > { %7106 = vpow2.f32 %v2772_v47  ;;  %2962 = vadd.xlane.f32.xlu0 %v10757_v32  ;;  %v9545_v0 = vpop.permute.xlu0 %3531  ;;  %v2677_v47 = vsub.f32 %v10762_v57, %v2516_v54 }
 0x2c6   : > { %10758 = vst [vmem:[#allocation41_spill] sm:$0xff] %v9545_v0  ;;  %7108 = vpow2.f32 %v2800_v24  ;;  %v2798_v35 = vmul.f32 1.442695, %v2686_v1  ;;  %v2691_v24 = vsub.f32 %v10764_v23, %v2586_v40  ;;  %v10795_v0 = vld [vmem:[#allocation62_spill] sm:$0xff] }
 0x2c7   : > { %7110 = vpow2.f32 %v2802_v33  ;;  %v2511_v22 = vpop.permute.xlu1 %2510  ;;  %v2780_v54 = vmul.f32 1.442695, %v2677_v47 }
 0x2c8   : > { %7112 = vpow2.f32 %v2798_v35  ;;  %v2676_v25 = vsub.f32 %v10761_v58, %v2511_v22  ;;  %v10767_v22 = vld [vmem:[#allocation47_spill] sm:$0xff]  ;;  %v2808_v58 = vmul.f32 1.442695, %v2691_v24 }
 0x2c9   : > { %7114 = vpow2.f32 %v2804_v9  ;;  %2994 = vadd.xlane.f32.xlu0 %v10759_v56  ;;  %v9548_v18 = vpop.permute.xlu0 %2535  ;;  %v9560_v9 = vpop.eup %7102  ;;  %v2693_v56 = vsub.f32 %v10767_v22, %v9534_v3 }
 0x2ca   : > { %v2778_v33 = vmul.f32 1.442695, %v2676_v25  ;;  %7116 = vpow2.f32 %v2776_v44 }
 0x2cb   : > { %v2591_v2 = vpop.permute.xlu1 %2590  ;;  %v2812_v24 = vmul.f32 1.442695, %v2693_v56 }
 0x2cc   : > { %v2692_v28 = vsub.f32 %v10765_v31, %v2591_v2  ;;  %7118 = vpow2.f32 %v2778_v33  ;;  %v10770_v31 = vld [vmem:[#allocation50_spill] sm:$0xff] }
 0x2cd   : > { %2990 = vadd.xlane.f32.xlu0 %v10763_v6  ;;  %v9554_v55 = vpop.permute.xlu0 %2615 }
 0x2ce   : > { %v2810_v6 = vmul.f32 1.442695, %v2692_v28 }
 0x2cf   : > { %v2501_v1 = vpop.permute.xlu1 %2500 }
 0x2d0   : > { %v2674_v32 = vsub.f32 %v10766_v17, %v2501_v1 }
 0x2d1   : > { %v9563_v35 = vpop.eup %7104  ;;  %2960 = vadd.xlane.f32.xlu0 %v10768_v4  ;;  %v9568_v13 = vpop.permute.xlu0 %3521 }
 0x2d2   : > { %10769 = vst [vmem:[#allocation36_spill] sm:$0xff] %v9568_v13  ;;  %v9570_v40 = vpop.eup %7106  ;;  %v2774_v25 = vmul.f32 1.442695, %v2674_v32  ;;  %v3679_v2 = vpack.c.bf16 %v9557_v52, %v9563_v35 }
 0x2d3   : > { %v9574_v57 = vpop.eup %7108  ;;  %v2581_v47 = vpop.permute.xlu1 %2580  ;;  %v3680_v3 = vpack.c.bf16 %v9570_v40, %v9560_v9 }
 0x2d4   : > { %v9578_v23 = vpop.eup %7110  ;;  %7120 = vpow2.f32 %v2774_v25  ;;  %v2690_v1 = vsub.f32 %v10770_v31, %v2581_v47  ;;  %6594 = vmatprep.mubr.bf16.mxu0 %v3679_v2  ;;  %v10772_v25 = vld [vmem:[#allocation51_spill] sm:$0xff] }
 0x2d5   : > { %v9581_v44 = vpop.eup %7112  ;;  %7122 = vpow2.f32 %v2780_v54  ;;  %2970 = vadd.xlane.f32.xlu0 %v9261_v38  ;;  %6595 = vmatmul.mubr.bf16.vlgmr.msra.gmra.mxu0 %v3680_v3  ;;  %v2526_v17 = vpop.permute.xlu0 %2525  ;;  %v10771_v54 = vld [vmem:[#allocation57_spill] sm:$0xff]  ;;  %v10773_v47 = vld [vmem:[#allocation15_spill] sm:$0xff] }
 0x2d6   : > { %v9584_v33 = vpop.eup %7114  ;;  %7124 = vpow2.f32 %v2808_v58  ;;  %v2806_v28 = vmul.f32 1.442695, %v2690_v1  ;;  %v3687_v32 = vpack.c.bf16 %v9574_v57, %v9581_v44  ;;  %v2679_v56 = vsub.f32 %v10771_v54, %v2526_v17 }
 0x2d7   : > { %7126 = vpow2.f32 %v2810_v6  ;;  %v2531_v22 = vpop.permute.xlu1 %2530  ;;  %v3688_v4 = vpack.c.bf16 %v9584_v33, %v9578_v23  ;;  %v10774_v6 = vld [vmem:[#allocation54_spill] sm:$0xff] }
 0x2d8   : > { %7128 = vpow2.f32 %v2806_v28  ;;  %6626 = vmatprep.mubr.bf16.mxu1 %v3687_v32  ;;  %v2680_v58 = vsub.f32 %v10772_v25, %v2531_v22  ;;  %v2681_v3 = vsub.f32 %v10774_v6, %v9548_v18  ;;  %v2784_v1 = vmul.f32 1.442695, %v2679_v56  ;;  %v10778_v22 = vld [vmem:[#allocation14_spill] sm:$0xff]  ;;  %v10780_v6 = vld [vmem:[#allocation55_spill] sm:$0xff] }
 0x2d9   : > { %7130 = vpow2.f32 %v2812_v24  ;;  %3002 = vadd.xlane.f32.xlu0 %v9218_v53  ;;  %6627 = vmatmul.mubr.bf16.vlgmr.msra.gmra.mxu1 %v3688_v4  ;;  %v2606_v38 = vpop.permute.xlu0 %2605  ;;  %v10776_v24 = vld [vmem:[#allocation60_spill] sm:$0xff]  ;;  %v9600_v53 = vpop.eup %7116  ;;  %v10777_v4 = vld [vmem:[#allocation53_spill] sm:$0xff]  ;;  %v2697_v56 = vsub.f32 %v10780_v6, %v9554_v55  ;;  %v10783_v6 = vld [vmem:[#allocation58_spill] sm:$0xff] }
 0x2da   : > { %v2695_v28 = vsub.f32 %v10776_v24, %v2606_v38  ;;  %v2786_v32 = vmul.f32 1.442695, %v2680_v58  ;;  %v9604_v25 = vpop.eup %7118  ;;  %7132 = vpow2.f32 %v2784_v1 }
 0x2db   : > { %v2611_v2 = vpop.permute.xlu1 %2610  ;;  %2958 = vadd.xlane.f32.xlu1 %v10773_v47  ;;  %v10779_v47 = vld [vmem:[#allocation56_spill] sm:$0xff] }
 0x2dc   : > { %v2696_v17 = vsub.f32 %v10777_v4, %v2611_v2  ;;  %v2816_v2 = vmul.f32 1.442695, %v2695_v28  ;;  %7134 = vpow2.f32 %v2786_v32  ;;  %v2820_v28 = vmul.f32 1.442695, %v2697_v56 }
 0x2dd   : > { %2966 = vadd.xlane.f32.xlu0 %v9250_v61  ;;  %v9597_v31 = vpop.permute.xlu0 %3456  ;;  %v2788_v61 = vmul.f32 1.442695, %v2681_v3 }
 0x2de   : > { %10775 = vst [vmem:[#allocation38_spill] sm:$0xff] %v9597_v31 }
 0x2df   : > { %v2521_v54 = vpop.permute.xlu1 %2520  ;;  %2964 = vadd.xlane.f32.xlu1 %v10778_v22 }
 0x2e0   : > { %v2678_v13 = vsub.f32 %v10779_v47, %v2521_v54  ;;  %v2818_v54 = vmul.f32 1.442695, %v2696_v17  ;;  %v10782_v47 = vld [vmem:[#allocation9_spill] sm:$0xff] }
 0x2e1   : > { %v9607_v18 = vpop.eup %7120  ;;  %2998 = vadd.xlane.f32.xlu0 %v9220_v20  ;;  %v9612_v38 = vpop.permute.xlu0 %3446 }
 0x2e2   : > { %10781 = vst [vmem:[#allocation44_spill] sm:$0xff] %v9612_v38  ;;  %v9614_v58 = vpop.eup %7122  ;;  %v2782_v24 = vmul.f32 1.442695, %v2678_v13  ;;  %v3681_v4 = vpack.c.bf16 %v9600_v53, %v9607_v18 }
 0x2e3   : > { %v9618_v22 = vpop.eup %7124  ;;  %v2601_v3 = vpop.permute.xlu1 %2600  ;;  %2996 = vadd.xlane.f32.xlu1 %v10782_v47  ;;  %v3682_v20 = vpack.c.bf16 %v9614_v58, %v9604_v25 }
 0x2e4   : > { %v9623_v55 = vpop.eup %7126  ;;  %7136 = vpow2.f32 %v2782_v24  ;;  %v2694_v1 = vsub.f32 %v10783_v6, %v2601_v3  ;;  %6598 = vmatprep.mubr.bf16.mxu0 %v3681_v4  ;;  %v10786_v4 = vld [vmem:[#allocation11_spill] sm:$0xff] }
 0x2e5   : > { %v9626_v13 = vpop.eup %7128  ;;  %7138 = vpow2.f32 %v2788_v61  ;;  %2978 = vadd.xlane.f32.xlu0 %v9297_v30  ;;  %6599 = vmatmul.mubr.bf16.gmra.mxu0 %v3682_v20  ;;  %v9629_v32 = vpop.permute.xlu0 %3551 }
 0x2e6   : > { %10784 = vst [vmem:[#allocation37_spill] sm:$0xff] %v9629_v32  ;;  %v9631_v17 = vpop.eup %7130  ;;  %7140 = vpow2.f32 %v2816_v2  ;;  %v2814_v47 = vmul.f32 1.442695, %v2694_v1  ;;  %v3689_v38 = vpack.c.bf16 %v9618_v22, %v9626_v13 }
 0x2e7   : > { %7142 = vpow2.f32 %v2818_v54  ;;  %v9635_v24 = vpop.permute.xlu1 %3451  ;;  %2992 = vadd.xlane.f32.xlu1 %v10786_v4  ;;  %v3690_v61 = vpack.c.bf16 %v9631_v17, %v9623_v55  ;;  %v9645_v54 = vpop.eup %7132 }
 0x2e8   : > { %10785 = vst [vmem:[#allocation40_spill] sm:$0xff] %v9635_v24  ;;  %7144 = vpow2.f32 %v2814_v47  ;;  %6630 = vmatprep.mubr.bf16.mxu1 %v3689_v38  ;;  %10788 = vst [vmem:[#allocation42_spill] sm:$0xff] %v9645_v54  ;;  %v10796_v24 = vld [vmem:[#allocation61_spill] sm:$0xff] }
 0x2e9   : > { %7146 = vpow2.f32 %v2820_v28  ;;  %3010 = vadd.xlane.f32.xlu0 %v9318_v45  ;;  %6631 = vmatmul.mubr.bf16.gmra.mxu1 %v3690_v61  ;;  %v2556_v30 = vpop.permute.xlu0 %2555  ;;  %v9650_v20 = vpop.eup %7134 }
 0x2eb   : > { %v9641_v56 = vpop.permute.xlu1 %3441  ;;  %2972 = vadd.xlane.f32.xlu1 %v9254_v51 }
 0x2ec   : > { %10787 = vst [vmem:[#allocation39_spill] sm:$0xff] %v9641_v56  ;;  %v2685_v56 = vsub.f32 %v10795_v0, %v2556_v30  ;;  %v3233_v30 = vld [vmem:[#allocation4 + $0x90] sm:$0xff] }
 0x2ed   : > { %2974 = vadd.xlane.f32.xlu0 %v9302_v50  ;;  %v2636_v2 = vpop.permute.xlu0 %2635 }
 0x2ef   : > { %v9647_v3 = vpop.permute.xlu1 %3536  ;;  %3004 = vadd.xlane.f32.xlu1 %v9227_v59 }
 0x2f0   : > { %10789 = vst [vmem:[#allocation122_spill] sm:$0xff] %v9647_v3 }
 0x2f1   : > { %v9652_v38 = vpop.eup %7136  ;;  %3006 = vadd.xlane.f32.xlu0 %v9325_v63  ;;  %v9655_v45 = vpop.permute.xlu0 %3541 }
 0x2f2   : > { %10790 = vst [vmem:[#allocation10_spill] sm:$0xff] %v9655_v45  ;;  %v9657_v6 = vpop.eup %7138  ;;  %v3683_v51 = vpack.c.bf16 %v9645_v54, %v9652_v38  ;;  %v10797_v54 = vld [vmem:[#allocation67_spill] sm:$0xff] }
 0x2f3   : > { %v9661_v50 = vpop.eup %7140  ;;  %v2551_v1 = vpop.permute.xlu1 %2550  ;;  %2968 = vadd.xlane.f32.xlu1 %v9257_v37  ;;  %v3684_v59 = vpack.c.bf16 %v9657_v6, %v9650_v20 }
 0x2f4   : > { %10791 = vst [vmem:[#allocation49_spill] sm:$0xff] %v9661_v50  ;;  %v9666_v28 = vpop.eup %7142  ;;  %6602 = vmatprep.mubr.bf16.mxu0 %v3683_v51  ;;  %v10792_v51 = vld [vmem:[#allocation59_spill] sm:$0xff] }
 0x2f5   : > { %v9668_v47 = vpop.eup %7144  ;;  %2986 = vadd.xlane.f32.xlu0 %v9429_v29  ;;  %6603 = vmatmul.mubr.bf16.gmra.mxu0 %v3684_v59  ;;  %v2546_v4 = vpop.permute.xlu0 %2545  ;;  %v2684_v32 = vsub.f32 %v10792_v51, %v2551_v1  ;;  %v10793_v29 = vld [vmem:[#allocation65_spill] sm:$0xff]  ;;  %v10798_v1 = vld [vmem:[#allocation64_spill] sm:$0xff]  ;;  %v2796_v51 = vmul.f32 1.442695, %v2685_v56 }
 0x2f6   : > { %v9671_v63 = vpop.eup %7146  ;;  %v3691_v61 = vpack.c.bf16 %v9661_v50, %v9668_v47  ;;  %v2683_v59 = vsub.f32 %v10793_v29, %v2546_v4  ;;  %v10799_v29 = vld [vmem:[#allocation63_spill] sm:$0xff] }
 0x2f7   : > { %v2631_v45 = vpop.permute.xlu1 %2630  ;;  %3000 = vadd.xlane.f32.xlu1 %v9210_v26  ;;  %v3692_v37 = vpack.c.bf16 %v9671_v63, %v9666_v28  ;;  %v2794_v26 = vmul.f32 1.442695, %v2684_v32 }
 0x2f8   : > { %6634 = vmatprep.mubr.bf16.mxu1 %v3691_v61  ;;  %v2700_v50 = vsub.f32 %v10796_v24, %v2631_v45  ;;  %v2792_v61 = vmul.f32 1.442695, %v2683_v59 }
 0x2f9   : > { %3018 = vadd.xlane.f32.xlu0 %v9454_v11  ;;  %6635 = vmatmul.mubr.bf16.gmra.mxu1 %v3692_v37  ;;  %v2626_v31 = vpop.permute.xlu0 %2625  ;;  %7148 = vpow2.f32 %v2794_v26  ;;  %v3217_v26 = vld [vmem:[#allocation4 + $0x10] sm:$0xff] }
 0x2fa   : > { %v2699_v11 = vsub.f32 %v10797_v54, %v2626_v31  ;;  %7150 = vpow2.f32 %v2792_v61  ;;  %v10800_v31 = vld [vmem:[#allocation66_spill] sm:$0xff] }
 0x2fb   : > { %v9681_v3 = vpop.permute.xlu1 %3526  ;;  %2980 = vadd.xlane.f32.xlu1 %v9306_v27  ;;  %v2826_v27 = vmul.f32 1.442695, %v2700_v50 }
 0x2fc   : > { %10794 = vst [vmem:[#allocation43_spill] sm:$0xff] %v9681_v3  ;;  %v2701_v3 = vsub.f32 %v10799_v29, %v2636_v2  ;;  %v3617_v2 = vmul.f32 %v9279_v21, %v3233_v30  ;;  %v10801_v29 = vld [vmem:[#allocation121_spill] sm:$0xff] }
 0x2fd   : > { %2982 = vadd.xlane.f32.xlu0 %v9433_v49  ;;  %v2824_v49 = vmul.f32 1.442695, %v2699_v11 }
 0x2ff   : > { %v2541_v37 = vpop.permute.xlu1 %2540  ;;  %3012 = vadd.xlane.f32.xlu1 %v9331_v7  ;;  %v2828_v7 = vmul.f32 1.442695, %v2701_v3 }
 0x300   : > { %v2682_v4 = vsub.f32 %v10798_v1, %v2541_v37 }
 0x301   : > { %3014 = vadd.xlane.f32.xlu0 %v9456_v48  ;;  %v3231_v48 = vld [vmem:[#allocation4 + $0x80] sm:$0xff] }
 0x302   : > { %v2790_v0 = vmul.f32 1.442695, %v2682_v4  ;;  %v3615_v45 = vmul.f32 %v9294_v41, %v3231_v48  ;;  %v3218_v4 = vld [vmem:[#allocation4 + $0x18] sm:$0xff] }
 0x303   : > { %v2621_v32 = vpop.permute.xlu1 %2620  ;;  %2976 = vadd.xlane.f32.xlu1 %v9292_v15  ;;  %v3234_v15 = vld [vmem:[#allocation4 + $0x98] sm:$0xff] }
 0x304   : > { %7152 = vpow2.f32 %v2790_v0  ;;  %v2698_v24 = vsub.f32 %v10800_v31, %v2621_v32  ;;  %v3618_v59 = vmul.f32 %v9224_v5, %v3234_v15  ;;  %v3601_v5 = vmul.f32 %v9266_v43, %v3217_v26  ;;  %v3216_v43 = vld [vmem:[#allocation4 + $0x8] sm:$0xff] }
 0x305   : > { %7154 = vpow2.f32 %v2796_v51  ;;  %3026 = vadd.xlane.f32.xlu0 %v9560_v9  ;;  %v3232_v9 = vld [vmem:[#allocation4 + $0x88] sm:$0xff] }
 0x306   : > { %7156 = vpow2.f32 %v2826_v27  ;;  %v2822_v56 = vmul.f32 1.442695, %v2698_v24  ;;  %v9703_v61 = vpop.eup %7148  ;;  %v3616_v11 = vmul.f32 %v9244_v12, %v3232_v9  ;;  %v3602_v24 = vmul.f32 %v9205_v34, %v3218_v4  ;;  %v3235_v9 = vld [vmem:[#allocation4 + $0xa0] sm:$0xff] }
 0x307   : > { %7158 = vpow2.f32 %v2824_v49  ;;  %3008 = vadd.xlane.f32.xlu1 %v9313_v60 }
 0x308   : > { %7160 = vpow2.f32 %v2822_v56 }
 0x309   : > { %7162 = vpow2.f32 %v2828_v7  ;;  %3058 = vadd.xlane.f32.xlu0 %v9578_v23  ;;  %v3215_v23 = vld [vmem:[#allocation4] sm:$0xff]  ;;  %v9729_v7 = vpop.permute.xlu0 %3476 }
 0x30a   : > { %v6564_v54 = vpop.f32.mrf.mxu1  ;;  %v3599_v27 = vmul.f32 %v10801_v29, %v3215_v23 }
 0x30b   : > { %v4293_v3 = vadd.f32 %v6564_v54, %v3617_v2  ;;  %2988 = vadd.xlane.f32.xlu1 %v9442_v39  ;;  %v9708_v39 = vpop.eup %7150  ;;  %v3600_v2 = vmul.f32 %v9357_v36, %v3216_v43 }
 0x30c   : > { %v3922_v50 = vpop.f32.mrf.mxu1 }
 0x30d   : > { %4357 = vst.msk [vmem:[#allocation4 + $0x90] sm:$0xff] %vm658_vm0, %v4293_v3  ;;  %v4291_v60 = vadd.f32 %v3922_v50, %v3615_v45  ;;  %3022 = vadd.xlane.f32.xlu0 %v9563_v35  ;;  %v9746_v36 = vpop.permute.xlu0 %3466  ;;  %v3237_v3 = vld [vmem:[#allocation4 + $0xb0] sm:$0xff] }
 0x30e   : > { %v6565_v21 = vpop.f32.mrf.mxu1  ;;  %v3621_v50 = vmul.f32 %v9410_v62, %v3237_v3  ;;  %v3241_v3 = vld [vmem:[#allocation4 + $0xd0] sm:$0xff] }
 0x30f   : > { %4355 = vst.msk [vmem:[#allocation4 + $0x80] sm:$0xff] %vm658_vm0, %v4291_v60  ;;  %v4294_v41 = vadd.f32 %v6565_v21, %v3618_v59  ;;  %3020 = vadd.xlane.f32.xlu1 %v9462_v10  ;;  %v3619_v60 = vmul.f32 %v9449_v42, %v3235_v9  ;;  %v10806_v9 = vld [vmem:[#allocation90_spill] sm:$0xff] }
 0x310   : > { %v3925_v37 = vpop.f32.mrf.mxu1 }
 0x311   : > { %v9711_v1 = vpop.eup %7152  ;;  %4358 = vst.msk [vmem:[#allocation4 + $0x98] sm:$0xff] %vm658_vm0, %v4294_v41  ;;  %v4292_v35 = vadd.f32 %v3925_v37, %v3616_v11  ;;  %v6532_v51 = vpop.f32.mrf.mxu0  ;;  %3054 = vadd.xlane.f32.xlu0 %v9581_v44  ;;  %v3219_v37 = vld [vmem:[#allocation4 + $0x20] sm:$0xff] }
 0x312   : > { %v9715_v12 = vpop.eup %7154  ;;  %v4277_v0 = vadd.f32 %v6532_v51, %v3601_v5  ;;  %v3685_v10 = vpack.c.bf16 %v9708_v39, %v9711_v1  ;;  %v9755_v59 = vpop.permute.xlu0 %3571 }
 0x313   : > { %v9720_v49 = vpop.eup %7156  ;;  %4356 = vst.msk [vmem:[#allocation4 + $0x88] sm:$0xff] %vm658_vm0, %v4292_v35  ;;  %v3777_v32 = vpop.f32.mrf.mxu0  ;;  %2984 = vadd.xlane.f32.xlu1 %v9424_v19  ;;  %v3686_v31 = vpack.c.bf16 %v9715_v12, %v9703_v61  ;;  %v3222_v35 = vld [vmem:[#allocation4 + $0x38] sm:$0xff] }
 0x314   : > { %v9726_v44 = vpop.eup %7158  ;;  %4341 = vst.msk [vmem:[#allocation4 + $0x10] sm:$0xff] %vm658_vm0, %v4277_v0  ;;  %v4275_v30 = vadd.f32 %v3777_v32, %v3599_v27  ;;  %6606 = vmatprep.mubr.bf16.mxu0 %v3685_v10  ;;  %v3220_v0 = vld [vmem:[#allocation4 + $0x28] sm:$0xff] }
 0x315   : > { %v9732_v56 = vpop.eup %7160  ;;  %v6533_v48 = vpop.f32.mrf.mxu0  ;;  %3034 = vadd.xlane.f32.xlu0 %v9604_v25  ;;  %6607 = vmatmul.mubr.bf16.gmra.mxu0 %v3686_v31 }
 0x316   : > { %v9735_v19 = vpop.eup %7162  ;;  %4339 = vst.msk [vmem:[#allocation4] sm:$0xff] %vm658_vm0, %v4275_v30  ;;  %v4278_v15 = vadd.f32 %v6533_v48, %v3602_v24  ;;  %v3693_v34 = vpack.c.bf16 %v9726_v44, %v9732_v56  ;;  %v9766_v5 = vpop.permute.xlu0 %3561 }
 0x317   : > { %v3780_v54 = vpop.f32.mrf.mxu0  ;;  %3016 = vadd.xlane.f32.xlu1 %v9447_v16  ;;  %v3694_v45 = vpack.c.bf16 %v9735_v19, %v9720_v49  ;;  %v9751_v16 = vpop.permute.xlu1 %3471 }
 0x318   : > { %4342 = vst.msk [vmem:[#allocation4 + $0x18] sm:$0xff] %vm658_vm0, %v4278_v15  ;;  %v4276_v25 = vadd.f32 %v3780_v54, %v3600_v2  ;;  %6638 = vmatprep.mubr.bf16.mxu1 %v3693_v34  ;;  %v3225_v15 = vld [vmem:[#allocation4 + $0x50] sm:$0xff]  ;;  %v10805_v54 = vld [vmem:[#allocation100_spill] sm:$0xff] }
 0x319   : > { %3066 = vadd.xlane.f32.xlu0 %v9623_v55  ;;  %6639 = vmatmul.mubr.bf16.gmra.mxu1 %v3694_v45  ;;  %v3238_v55 = vld [vmem:[#allocation4 + $0xb8] sm:$0xff]  ;;  %v3609_v45 = vmul.f32 %v10805_v54, %v3225_v15  ;;  %v10815_v54 = vld [vmem:[#allocation74_spill] sm:$0xff] }
 0x31a   : > { %4340 = vst.msk [vmem:[#allocation4 + $0x8] sm:$0xff] %vm658_vm0, %v4276_v25  ;;  %v9779_v43 = vpop.permute.xlu0 %3496  ;;  %v3226_v25 = vld [vmem:[#allocation4 + $0x58] sm:$0xff] }
 0x31b   : > { %3028 = vadd.xlane.f32.xlu1 %v9570_v40  ;;  %v3236_v40 = vld [vmem:[#allocation4 + $0xa8] sm:$0xff]  ;;  %v9761_v11 = vpop.permute.xlu1 %3461 }
 0x31d   : > { %3030 = vadd.xlane.f32.xlu0 %v9607_v18  ;;  %v3622_v18 = vmul.f32 %v9346_v14, %v3238_v55 }
 0x31e   : > { %v9790_v34 = vpop.permute.xlu0 %3486 }
 0x31f   : > { %3060 = vadd.xlane.f32.xlu1 %v9584_v33  ;;  %v3221_v33 = vld [vmem:[#allocation4 + $0x30] sm:$0xff]  ;;  %v9774_v29 = vpop.permute.xlu1 %3556 }
 0x320   : > { %v3605_v14 = vmul.f32 %v9392_v8, %v3221_v33 }
 0x321   : > { %v6568_v26 = vpop.f32.mrf.mxu1  ;;  %3062 = vadd.xlane.f32.xlu0 %v9626_v13  ;;  %v3620_v13 = vmul.f32 %v9376_v46, %v3236_v40  ;;  %v10807_v40 = vld [vmem:[#allocation23_spill] sm:$0xff] }
 0x322   : > { %v4297_v21 = vadd.f32 %v6568_v26, %v3621_v50 }
 0x323   : > { %v3938_v23 = vpop.f32.mrf.mxu1  ;;  %3024 = vadd.xlane.f32.xlu1 %v9557_v52  ;;  %v9786_v2 = vpop.permute.xlu1 %3546 }
 0x324   : > { %4361 = vst.msk [vmem:[#allocation4 + $0xb0] sm:$0xff] %vm658_vm0, %v4297_v21  ;;  %v4295_v62 = vadd.f32 %v3938_v23, %v3619_v60  ;;  %v3239_v60 = vld [vmem:[#allocation4 + $0xc0] sm:$0xff]  ;;  %v3610_v23 = vmul.f32 %v10807_v40, %v3226_v25 }
 0x325   : > { %v6569_v41 = vpop.f32.mrf.mxu1  ;;  %3042 = vadd.xlane.f32.xlu0 %v9650_v20  ;;  %v10802_v20 = vld [vmem:[#allocation33_spill] sm:$0xff] }
 0x326   : > { %4359 = vst.msk [vmem:[#allocation4 + $0xa0] sm:$0xff] %vm658_vm0, %v4295_v62  ;;  %v4298_v42 = vadd.f32 %v6569_v41, %v3622_v18  ;;  %v3603_v46 = vmul.f32 %v10802_v20, %v3219_v37  ;;  %v9802_v62 = vpop.permute.xlu0 %3516 }
 0x327   : > { %v3941_v52 = vpop.f32.mrf.mxu1  ;;  %3056 = vadd.xlane.f32.xlu1 %v9574_v57  ;;  %v10803_v57 = vld [vmem:[#allocation24_spill] sm:$0xff]  ;;  %v9797_v55 = vpop.permute.xlu1 %3491 }
 0x328   : > { %4362 = vst.msk [vmem:[#allocation4 + $0xb8] sm:$0xff] %vm658_vm0, %v4298_v42  ;;  %v4296_v4 = vadd.f32 %v3941_v52, %v3620_v13  ;;  %v3606_v8 = vmul.f32 %v10803_v57, %v3222_v35  ;;  %v10809_v42 = vld [vmem:[#allocation116_spill] sm:$0xff]  ;;  %v10810_v52 = vld [vmem:[#allocation106_spill] sm:$0xff]  ;;  %v3240_v35 = vld [vmem:[#allocation4 + $0xc8] sm:$0xff] }
 0x329   : > { %v6536_v51 = vpop.f32.mrf.mxu0  ;;  %3074 = vadd.xlane.f32.xlu0 %v9666_v28  ;;  %v10804_v28 = vld [vmem:[#allocation75_spill] sm:$0xff] }
 0x32a   : > { %4360 = vst.msk [vmem:[#allocation4 + $0xa8] sm:$0xff] %vm658_vm0, %v4296_v4  ;;  %v4281_v27 = vadd.f32 %v6536_v51, %v3605_v14  ;;  %v3604_v24 = vmul.f32 %v10804_v28, %v3220_v0  ;;  %v3623_v14 = vmul.f32 %v10810_v52, %v3239_v60  ;;  %v2846_v60 = vld [vmem:[#allocation3 + $0x80] sm:$0xff] }
 0x32b   : > { %v3793_v10 = vpop.f32.mrf.mxu0  ;;  %3036 = vadd.xlane.f32.xlu1 %v9614_v58  ;;  %v9811_v0 = vpop.permute.xlu1 %3481 }
 0x32c   : > { %4345 = vst.msk [vmem:[#allocation4 + $0x30] sm:$0xff] %vm658_vm0, %v4281_v27  ;;  %v4279_v32 = vadd.f32 %v3793_v10, %v3603_v46  ;;  %v10811_v46 = vld [vmem:[#allocation80_spill] sm:$0xff] }
 0x32d   : > { %v6537_v31 = vpop.f32.mrf.mxu0  ;;  %3038 = vadd.xlane.f32.xlu0 %v9652_v38  ;;  %v3223_v38 = vld [vmem:[#allocation4 + $0x40] sm:$0xff] }
 0x32e   : > { %4343 = vst.msk [vmem:[#allocation4 + $0x20] sm:$0xff] %vm658_vm0, %v4279_v32  ;;  %v4282_v30 = vadd.f32 %v6537_v31, %v3606_v8  ;;  %v3607_v50 = vmul.f32 %v10806_v9, %v3223_v38  ;;  %v10812_v8 = vld [vmem:[#allocation30_spill] sm:$0xff]  ;;  %v9817_v31 = vpop.permute.xlu0 %3596 }
 0x32f   : > { %v3796_v48 = vpop.f32.mrf.mxu0  ;;  %3068 = vadd.xlane.f32.xlu1 %v9631_v17  ;;  %v3624_v32 = vmul.f32 %v10812_v8, %v3240_v35  ;;  %v3229_v9 = vld [vmem:[#allocation4 + $0x70] sm:$0xff] }
 0x330   : > { %4346 = vst.msk [vmem:[#allocation4 + $0x38] sm:$0xff] %vm658_vm0, %v4282_v30  ;;  %v4280_v58 = vadd.f32 %v3796_v48, %v3604_v24  ;;  %v9824_v30 = vpop.permute.xlu1 %3576 }
 0x331   : > { %3070 = vadd.xlane.f32.xlu0 %v9668_v47  ;;  %v3224_v47 = vld [vmem:[#allocation4 + $0x48] sm:$0xff] }
 0x332   : > { %4344 = vst.msk [vmem:[#allocation4 + $0x28] sm:$0xff] %vm658_vm0, %v4280_v58  ;;  %v3608_v37 = vmul.f32 %v10809_v42, %v3224_v47  ;;  %v9828_v48 = vpop.permute.xlu0 %3506  ;;  %v10814_v58 = vld [vmem:[#allocation49_spill] sm:$0xff] }
 0x333   : > { %3032 = vadd.xlane.f32.xlu1 %v9600_v53  ;;  %v10808_v53 = vld [vmem:[#allocation104_spill] sm:$0xff] }
 0x334   : > { %v3625_v18 = vmul.f32 %v10808_v53, %v3241_v3  ;;  %v9831_v15 = vpop.permute.xlu1 %3566  ;;  %v2848_v3 = vld [vmem:[#allocation3 + $0x90] sm:$0xff] }
 0x335   : > { %v6540_v17 = vpop.f32.mrf.mxu0  ;;  %3050 = vadd.xlane.f32.xlu0 %v9703_v61  ;;  %v3242_v61 = vld [vmem:[#allocation4 + $0xd8] sm:$0xff] }
 0x336   : > { %v4285_v26 = vadd.f32 %v6540_v17, %v3609_v45  ;;  %v3626_v27 = vmul.f32 %v10811_v46, %v3242_v61  ;;  %v9833_v38 = vpop.permute.xlu0 %3586  ;;  %v10818_v61 = vld [vmem:[#allocation79_spill] sm:$0xff]  ;;  %v10821_v46 = vld [vmem:[#allocation126_spill] sm:$0xff] }
 0x337   : > { %v3809_v21 = vpop.f32.mrf.mxu0  ;;  %3064 = vadd.xlane.f32.xlu1 %v9618_v22 }
 0x338   : > { %4349 = vst.msk [vmem:[#allocation4 + $0x50] sm:$0xff] %vm658_vm0, %v4285_v26  ;;  %v4283_v33 = vadd.f32 %v3809_v21, %v3607_v50  ;;  %v10816_v50 = vld [vmem:[#allocation76_spill] sm:$0xff] }
 0x339   : > { %v6541_v41 = vpop.f32.mrf.mxu0  ;;  %v6572_v13 = vpop.f32.mrf.mxu1  ;;  %3082 = vadd.xlane.f32.xlu0 %v9720_v49  ;;  %v2912_v26 = vmul.f32 %v10816_v50, %v2848_v3  ;;  %v3227_v21 = vld [vmem:[#allocation4 + $0x60] sm:$0xff]  ;;  %v2836_v3 = vld [vmem:[#allocation3 + $0x30] sm:$0xff] }
 0x33a   : > { %4347 = vst.msk [vmem:[#allocation4 + $0x40] sm:$0xff] %vm658_vm0, %v4283_v33  ;;  %v4286_v22 = vadd.f32 %v6541_v41, %v3610_v23  ;;  %v4301_v4 = vadd.f32 %v6572_v13, %v3625_v18  ;;  %v3230_v18 = vld [vmem:[#allocation4 + $0x78] sm:$0xff]  ;;  %v3245_v33 = vld [vmem:[#allocation4 + $0xf0] sm:$0xff]  ;;  %v2910_v41 = vmul.f32 %v10818_v61, %v2846_v60  ;;  %v10819_v13 = vld [vmem:[#allocation128_spill] sm:$0xff] }
 0x33b   : > { %v3812_v51 = vpop.f32.mrf.mxu0  ;;  %v3954_v20 = vpop.f32.mrf.mxu1  ;;  %3044 = vadd.xlane.f32.xlu1 %v9657_v6  ;;  %v3611_v42 = vmul.f32 %v10819_v13, %v3227_v21 }
 0x33c   : > { %4350 = vst.msk [vmem:[#allocation4 + $0x58] sm:$0xff] %vm658_vm0, %v4286_v22  ;;  %4365 = vst.msk [vmem:[#allocation4 + $0xd0] sm:$0xff] %vm658_vm0, %v4301_v4  ;;  %v4284_v49 = vadd.f32 %v3812_v51, %v3608_v37  ;;  %v4299_v10 = vadd.f32 %v3954_v20, %v3623_v14  ;;  %v2831_v14 = vld [vmem:[#allocation3 + $0x8] sm:$0xff]  ;;  %v3243_v4 = vld [vmem:[#allocation4 + $0xe0] sm:$0xff] }
 0x33d   : > { %v6573_v57 = vpop.f32.mrf.mxu1  ;;  %3046 = vadd.xlane.f32.xlu0 %v9711_v1  ;;  %v10813_v1 = vld [vmem:[#allocation42_spill] sm:$0xff]  ;;  %v3228_v22 = vld [vmem:[#allocation4 + $0x68] sm:$0xff]  ;;  %v10820_v51 = vld [vmem:[#allocation108_spill] sm:$0xff] }
 0x33e   : > { %4348 = vst.msk [vmem:[#allocation4 + $0x48] sm:$0xff] %vm658_vm0, %v4284_v49  ;;  %4363 = vst.msk [vmem:[#allocation4 + $0xc0] sm:$0xff] %vm658_vm0, %v4299_v10  ;;  %v4302_v6 = vadd.f32 %v6573_v57, %v3626_v27  ;;  %v3614_v20 = vmul.f32 %v10820_v51, %v3230_v18  ;;  %v3629_v27 = vmul.f32 %v10821_v46, %v3245_v33  ;;  %v3246_v57 = vld [vmem:[#allocation4 + $0xf8] sm:$0xff]  ;;  %v10826_v18 = vld [vmem:[#allocation88_spill] sm:$0xff] }
 0x33f   : > { %v3957_v28 = vpop.f32.mrf.mxu1  ;;  %3076 = vadd.xlane.f32.xlu1 %v9671_v63  ;;  %v2832_v63 = vld [vmem:[#allocation3 + $0x10] sm:$0xff]  ;;  %v2900_v33 = vmul.f32 %v10826_v18, %v2836_v3 }
 0x340   : > { %4366 = vst.msk [vmem:[#allocation4 + $0xd8] sm:$0xff] %vm658_vm0, %v4302_v6  ;;  %v4300_v24 = vadd.f32 %v3957_v28, %v3624_v32  ;;  %v2896_v45 = vmul.f32 %v10815_v54, %v2832_v63  ;;  %v10822_v6 = vld [vmem:[#allocation83_spill] sm:$0xff] }
 0x341   : > { %3078 = vadd.xlane.f32.xlu0 %v9732_v56  ;;  %v9837_v56 = vpop.permute.xlu1 %3511  ;;  %v2895_v28 = vmul.f32 %v10822_v6, %v2831_v14 }
 0x342   : > { %4364 = vst.msk [vmem:[#allocation4 + $0xc8] sm:$0xff] %vm658_vm0, %v4300_v24  ;;  %v10823_v24 = vld [vmem:[#allocation109_spill] sm:$0xff] }
 0x343   : > { %3040 = vadd.xlane.f32.xlu1 %v10813_v1  ;;  %v3612_v1 = vmul.f32 %v10823_v24, %v3228_v22 }
 0x345   : > { %v9844_v53 = vpop.permute.xlu1 %3591 }
 0x347   : > { %3072 = vadd.xlane.f32.xlu1 %v10814_v58  ;;  %v10824_v58 = vld [vmem:[#allocation130_spill] sm:$0xff] }
 0x349   : > { %v9857_v63 = vpop.permute.xlu1 %3501 }
 0x34b   : > { %3052 = vadd.xlane.f32.xlu1 %v9715_v12  ;;  %v10817_v12 = vld [vmem:[#allocation124_spill] sm:$0xff] }
 0x34c   : > { %v3613_v23 = vmul.f32 %v10817_v12, %v3229_v9 }
 0x34d   : > { %v9868_v14 = vpop.permute.xlu1 %3581 }
 0x34e   : > { %v2963_v25 = vpop.xlane.xlu0 %2962 }
 0x34f   : > { %v3088_v17 = vadd.f32 %v2963_v25, %v2896_v45  ;;  %3084 = vadd.xlane.f32.xlu1 %v9735_v19 }
 0x351   : > { %3153 = vst.msk [vmem:[#allocation3 + $0x10] sm:$0xff] %vm529_vm2, %v3088_v17  ;;  %v3244_v17 = vld [vmem:[#allocation4 + $0xe8] sm:$0xff] }
 0x352   : > { %v2995_v47 = vpop.xlane.xlu0 %2994 }
 0x353   : > { %v3104_v40 = vadd.f32 %v2995_v47, %v2912_v26  ;;  %3048 = vadd.xlane.f32.xlu1 %v9708_v39  ;;  %v10825_v47 = vld [vmem:[#allocation86_spill] sm:$0xff] }
 0x354   : > { %v3630_v60 = vmul.f32 %v10825_v47, %v3246_v57  ;;  %v2833_v57 = vld [vmem:[#allocation3 + $0x18] sm:$0xff]  ;;  %v2840_v47 = vld [vmem:[#allocation3 + $0x50] sm:$0xff] }
 0x355   : > { %3169 = vst.msk [vmem:[#allocation3 + $0x90] sm:$0xff] %vm529_vm2, %v3104_v40  ;;  %v6544_v19 = vpop.f32.mrf.mxu0 }
 0x356   : > { %v4289_v37 = vadd.f32 %v6544_v19, %v3613_v23  ;;  %v2991_v52 = vpop.xlane.xlu0 %2990  ;;  %v10827_v19 = vld [vmem:[#allocation98_spill] sm:$0xff] }
 0x357   : > { %v3102_v35 = vadd.f32 %v2991_v52, %v2910_v41  ;;  %v3825_v39 = vpop.f32.mrf.mxu0  ;;  %3080 = vadd.xlane.f32.xlu1 %v9726_v44  ;;  %v3627_v44 = vmul.f32 %v10824_v58, %v3243_v4  ;;  %v3628_v61 = vmul.f32 %v10827_v19, %v3244_v17  ;;  %v2830_v4 = vld [vmem:[#allocation3] sm:$0xff]  ;;  %v10832_v17 = vld [vmem:[#allocation97_spill] sm:$0xff] }
 0x358   : > { %v4511_v49 = vld [vmem:[#allocation3 + $0x10] sm:$0xff]  ;;  %4353 = vst.msk [vmem:[#allocation4 + $0x70] sm:$0xff] %vm658_vm0, %v4289_v37  ;;  %v4287_v10 = vadd.f32 %v3825_v39, %v3611_v42 }
 0x359   : > { %7164 = vrcp.f32 %v4511_v49  ;;  %3167 = vst.msk [vmem:[#allocation3 + $0x80] sm:$0xff] %vm529_vm2, %v3102_v35  ;;  %v6545_v8 = vpop.f32.mrf.mxu0  ;;  %v6576_v32 = vpop.f32.mrf.mxu1  ;;  %v2852_v42 = vld [vmem:[#allocation3 + $0xb0] sm:$0xff]  ;;  %v10828_v35 = vld [vmem:[#allocation91_spill] sm:$0xff] }
 0x35a   : > { %4351 = vst.msk [vmem:[#allocation4 + $0x60] sm:$0xff] %vm658_vm0, %v4287_v10  ;;  %v4290_v54 = vadd.f32 %v6545_v8, %v3614_v20  ;;  %v4305_v45 = vadd.f32 %v6576_v32, %v3629_v27  ;;  %v2961_v25 = vpop.xlane.xlu0 %2960  ;;  %v2916_v39 = vmul.f32 %v10828_v35, %v2852_v42  ;;  %v2834_v20 = vld [vmem:[#allocation3 + $0x20] sm:$0xff]  ;;  %v10830_v32 = vld [vmem:[#allocation94_spill] sm:$0xff]  ;;  %v2837_v35 = vld [vmem:[#allocation3 + $0x38] sm:$0xff] }
 0x35b   : > { %v3087_v9 = vadd.f32 %v2961_v25, %v2895_v28  ;;  %v3828_v50 = vpop.f32.mrf.mxu0  ;;  %v3970_v26 = vpop.f32.mrf.mxu1  ;;  %v10829_v27 = vld [vmem:[#allocation68_spill] sm:$0xff]  ;;  %v2898_v6 = vmul.f32 %v10830_v32, %v2834_v20  ;;  %v2849_v25 = vld [vmem:[#allocation3 + $0x98] sm:$0xff] }
 0x35c   : > { %v4822_v21 = vld [vmem:[#allocation3 + $0x90] sm:$0xff]  ;;  %4354 = vst.msk [vmem:[#allocation4 + $0x78] sm:$0xff] %vm658_vm0, %v4290_v54  ;;  %4369 = vst.msk [vmem:[#allocation4 + $0xf0] sm:$0xff] %vm658_vm0, %v4305_v45  ;;  %v4288_v40 = vadd.f32 %v3828_v50, %v3612_v1  ;;  %v4303_v12 = vadd.f32 %v3970_v26, %v3627_v44  ;;  %v2894_v49 = vmul.f32 %v10829_v27, %v2830_v4  ;;  %v2850_v1 = vld [vmem:[#allocation3 + $0xa0] sm:$0xff] }
 0x35d   : > { %7166 = vrcp.f32 %v4822_v21  ;;  %3152 = vst.msk [vmem:[#allocation3 + $0x8] sm:$0xff] %vm529_vm2, %v3087_v9  ;;  %v6577_v23 = vpop.f32.mrf.mxu1  ;;  %v10831_v44 = vld [vmem:[#allocation69_spill] sm:$0xff]  ;;  %v2914_v9 = vmul.f32 %v10832_v17, %v2850_v1  ;;  %v10833_v21 = vld [vmem:[#allocation70_spill] sm:$0xff] }
 0x35e   : > { %4352 = vst.msk [vmem:[#allocation4 + $0x68] sm:$0xff] %vm658_vm0, %v4288_v40  ;;  %4367 = vst.msk [vmem:[#allocation4 + $0xe0] sm:$0xff] %vm658_vm0, %v4303_v12  ;;  %v4306_v41 = vadd.f32 %v6577_v23, %v3630_v60  ;;  %v2971_v13 = vpop.xlane.xlu0 %2970  ;;  %v2897_v54 = vmul.f32 %v10831_v44, %v2833_v57  ;;  %v2913_v40 = vmul.f32 %v10833_v21, %v2849_v25  ;;  %v2847_v23 = vld [vmem:[#allocation3 + $0x88] sm:$0xff]  ;;  %v10838_v1 = vld [vmem:[#allocation110_spill] sm:$0xff] }
 0x35f   : > { %v3092_v37 = vadd.f32 %v2971_v13, %v2900_v33  ;;  %v3973_v52 = vpop.f32.mrf.mxu1  ;;  %v10834_v33 = vld [vmem:[#allocation101_spill] sm:$0xff]  ;;  %v2856_v13 = vld [vmem:[#allocation3 + $0xd0] sm:$0xff]  ;;  %v10840_v21 = vld [vmem:[#allocation115_spill] sm:$0xff] }
 0x360   : > { %4370 = vst.msk [vmem:[#allocation4 + $0xf8] sm:$0xff] %vm658_vm0, %v4306_v41  ;;  %v4304_v22 = vadd.f32 %v3973_v52, %v3628_v61  ;;  %v2904_v19 = vmul.f32 %v10834_v33, %v2840_v47  ;;  %v4820_v42 = vld [vmem:[#allocation3 + $0x80] sm:$0xff]  ;;  %v10835_v52 = vld [vmem:[#allocation71_spill] sm:$0xff]  ;;  %v10839_v17 = vld [vmem:[#allocation82_spill] sm:$0xff] }
 0x361   : > { %3157 = vst.msk [vmem:[#allocation3 + $0x30] sm:$0xff] %vm529_vm2, %v3092_v37  ;;  %v2835_v47 = vld [vmem:[#allocation3 + $0x28] sm:$0xff] }
 0x362   : > { %4368 = vst.msk [vmem:[#allocation4 + $0xe8] sm:$0xff] %vm658_vm0, %v4304_v22  ;;  %v3003_v51 = vpop.xlane.xlu0 %3002  ;;  %v2911_v22 = vmul.f32 %v10835_v52, %v2847_v23  ;;  %v2844_v23 = vld [vmem:[#allocation3 + $0x70] sm:$0xff] }
 0x363   : > { %v3108_v46 = vadd.f32 %v3003_v51, %v2916_v39  ;;  %v10836_v51 = vld [vmem:[#allocation105_spill] sm:$0xff] }
 0x364   : > { %v2959_v10 = vpop.xlane.xlu1 %2958  ;;  %v2920_v20 = vmul.f32 %v10836_v51, %v2856_v13  ;;  %v4510_v25 = vld [vmem:[#allocation3 + $0x8] sm:$0xff] }
 0x365   : > { %3173 = vst.msk [vmem:[#allocation3 + $0xb0] sm:$0xff] %vm529_vm2, %v3108_v46  ;;  %v3086_v8 = vadd.f32 %v2959_v10, %v2894_v49  ;;  %v2838_v49 = vld [vmem:[#allocation3 + $0x40] sm:$0xff] }
 0x366   : > { %v7165_v28 = vpop.eup %7164  ;;  %v2967_v24 = vpop.xlane.xlu0 %2966 }
 0x367   : > { %3151 = vst.msk [vmem:[#allocation3] sm:$0xff] %vm529_vm2, %v3086_v8  ;;  %v3090_v58 = vadd.f32 %v2967_v24, %v2898_v6  ;;  %4585 = vperm.xlu0 %6811, %v7165_v28   ;;  %v10837_v8 = vld [vmem:[#allocation81_spill] sm:$0xff]  ;;  %v2853_v28 = vld [vmem:[#allocation3 + $0xb8] sm:$0xff] }
 0x368   : > { %v2965_v45 = vpop.xlane.xlu1 %2964  ;;  %v4515_v10 = vld [vmem:[#allocation3 + $0x30] sm:$0xff]  ;;  %v2901_v32 = vmul.f32 %v10837_v8, %v2837_v35 }
 0x369   : > { %3155 = vst.msk [vmem:[#allocation3 + $0x20] sm:$0xff] %vm529_vm2, %v3090_v58  ;;  %v3089_v3 = vadd.f32 %v2965_v45, %v2897_v54  ;;  %v2902_v58 = vmul.f32 %v10838_v1, %v2838_v49  ;;  %v2854_v45 = vld [vmem:[#allocation3 + $0xc0] sm:$0xff] }
 0x36a   : > { %v7167_v50 = vpop.eup %7166  ;;  %v2999_v26 = vpop.xlane.xlu0 %2998 }
 0x36b   : > { %3154 = vst.msk [vmem:[#allocation3 + $0x18] sm:$0xff] %vm529_vm2, %v3089_v3  ;;  %v3106_v60 = vadd.f32 %v2999_v26, %v2914_v9  ;;  %4897 = vperm.xlu0 %6811, %v7167_v50   ;;  %v2917_v9 = vmul.f32 %v10839_v17, %v2853_v28  ;;  %v10844_v28 = vld [vmem:[#allocation118_spill] sm:$0xff] }
 0x36c   : > { %v2997_v12 = vpop.xlane.xlu1 %2996  ;;  %v4826_v50 = vld [vmem:[#allocation3 + $0xb0] sm:$0xff] }
 0x36d   : > { %3171 = vst.msk [vmem:[#allocation3 + $0xa0] sm:$0xff] %vm529_vm2, %v3106_v60  ;;  %v3105_v18 = vadd.f32 %v2997_v12, %v2913_v40  ;;  %v2918_v40 = vmul.f32 %v10840_v21, %v2854_v45 }
 0x36e   : > { %v4509_v61 = vld [vmem:[#allocation3] sm:$0xff]  ;;  %v2979_v41 = vpop.xlane.xlu0 %2978 }
 0x36f   : > { %7168 = vrcp.f32 %v4509_v61  ;;  %3170 = vst.msk [vmem:[#allocation3 + $0x98] sm:$0xff] %vm529_vm2, %v3105_v18  ;;  %v3096_v37 = vadd.f32 %v2979_v41, %v2904_v19  ;;  %v10841_v19 = vld [vmem:[#allocation84_spill] sm:$0xff] }
 0x370   : > { %v2993_v4 = vpop.xlane.xlu1 %2992  ;;  %7170 = vrcp.f32 %v4820_v42  ;;  %v4513_v18 = vld [vmem:[#allocation3 + $0x20] sm:$0xff]  ;;  %v2899_v61 = vmul.f32 %v10841_v19, %v2835_v47 }
 0x371   : > { %3161 = vst.msk [vmem:[#allocation3 + $0x50] sm:$0xff] %vm529_vm2, %v3096_v37  ;;  %v3103_v39 = vadd.f32 %v2993_v4, %v2911_v22  ;;  %v2851_v37 = vld [vmem:[#allocation3 + $0xa8] sm:$0xff] }
 0x372   : > { %v4512_v46 = vld [vmem:[#allocation3 + $0x18] sm:$0xff]  ;;  %v3011_v27 = vpop.xlane.xlu0 %3010  ;;  %v10842_v22 = vld [vmem:[#allocation117_spill] sm:$0xff] }
 0x373   : > { %7172 = vrcp.f32 %v4512_v46  ;;  %3168 = vst.msk [vmem:[#allocation3 + $0x88] sm:$0xff] %vm529_vm2, %v3103_v39  ;;  %v3112_v57 = vadd.f32 %v3011_v27, %v2920_v20  ;;  %v2908_v4 = vmul.f32 %v10842_v22, %v2844_v23  ;;  %v2860_v39 = vld [vmem:[#allocation3 + $0xf0] sm:$0xff]  ;;  %v10843_v27 = vld [vmem:[#allocation85_spill] sm:$0xff]  ;;  %v4677_v23 = vld [vmem:[%s10352_s5] sm:$0xf] }
 0x374   : > { %v2973_v6 = vpop.xlane.xlu1 %2972  ;;  %7174 = vrcp.f32 %v4515_v10  ;;  %v4824_v20 = vld [vmem:[#allocation3 + $0xa0] sm:$0xff]  ;;  %v2915_v49 = vmul.f32 %v10843_v27, %v2851_v37  ;;  %6746 = vmatprep.subr.msk.bf16.mxu0 %vm4702_vm3, %v4677_v23  ;;  %v2839_v22 = vld [vmem:[#allocation3 + $0x48] sm:$0xff] }
 0x375   : > { %3177 = vst.msk [vmem:[#allocation3 + $0xd0] sm:$0xff] %vm529_vm2, %v3112_v57  ;;  %v3093_v24 = vadd.f32 %v2973_v6, %v2901_v32  ;;  %v2841_v32 = vld [vmem:[#allocation3 + $0x58] sm:$0xff] }
 0x376   : > { %v4823_v44 = vld [vmem:[#allocation3 + $0x98] sm:$0xff]  ;;  %v2975_v54 = vpop.xlane.xlu0 %2974 }
 0x377   : > { %7176 = vrcp.f32 %v4823_v44  ;;  %3158 = vst.msk [vmem:[#allocation3 + $0x38] sm:$0xff] %vm529_vm2, %v3093_v24  ;;  %v3094_v3 = vadd.f32 %v2975_v54, %v2902_v58  ;;  %v2924_v24 = vmul.f32 %v10844_v28, %v2860_v39  ;;  %v2842_v58 = vld [vmem:[#allocation3 + $0x60] sm:$0xff] }
 0x378   : > { %v3005_v26 = vpop.xlane.xlu1 %3004  ;;  %7178 = vrcp.f32 %v4510_v25  ;;  %v4519_v54 = vld [vmem:[#allocation3 + $0x50] sm:$0xff]  ;;  %v10845_v25 = vld [vmem:[#allocation87_spill] sm:$0xff] }
 0x379   : > { %3159 = vst.msk [vmem:[#allocation3 + $0x40] sm:$0xff] %vm529_vm2, %v3094_v3  ;;  %v3109_v60 = vadd.f32 %v3005_v26, %v2917_v9  ;;  %7180 = vrcp.f32 %v4826_v50  ;;  %v2905_v3 = vmul.f32 %v10845_v25, %v2841_v32  ;;  %v2857_v26 = vld [vmem:[#allocation3 + $0xd8] sm:$0xff]  ;;  %v2880_v25 = vld [vmem:[#allocation3 + $0x190] sm:$0xff] }
 0x37a   : > { %v3007_v12 = vpop.xlane.xlu0 %3006  ;;  %v4821_v13 = vld [vmem:[#allocation3 + $0x88] sm:$0xff]  ;;  %7182 = vrcp.f32 %v4513_v18 }
 0x37b   : > { %3174 = vst.msk [vmem:[#allocation3 + $0xb8] sm:$0xff] %vm529_vm2, %v3109_v60  ;;  %v3110_v33 = vadd.f32 %v3007_v12, %v2918_v40  ;;  %7184 = vrcp.f32 %v4821_v13  ;;  %v10846_v60 = vld [vmem:[#allocation119_spill] sm:$0xff]  ;;  %v2858_v12 = vld [vmem:[#allocation3 + $0xe0] sm:$0xff]  ;;  %v4704_v13 = vsel %vm4702_vm3, %v4677_v23, 0 }
 0x37c   : > { %v7169_v41 = vpop.eup %7168  ;;  %v2969_v42 = vpop.xlane.xlu1 %2968  ;;  %7186 = vrcp.f32 %v4824_v20  ;;  %v2906_v21 = vmul.f32 %v10846_v60, %v2842_v58  ;;  %6643 = vmatpush3.bf16.msra.mxu0 %v4704_v13  ;;  %v2864_v20 = vld [vmem:[#allocation3 + $0x110] sm:$0xff]  ;;  %v3247_v13 = vld [vmem:[#allocation4 + $0x100] sm:$0xff] }
 0x37d   : > { %3175 = vst.msk [vmem:[#allocation3 + $0xc0] sm:$0xff] %vm529_vm2, %v3110_v33  ;;  %v3091_v52 = vadd.f32 %v2969_v42, %v2899_v61  ;;  %4575 = vperm.xlu0 %6811, %v7169_v41   ;;  %v7171_v51 = vpop.eup %7170  ;;  %v4830_v33 = vld [vmem:[#allocation3 + $0xd0] sm:$0xff]  ;;  %v10847_v61 = vld [vmem:[#allocation89_spill] sm:$0xff] }
 0x37e   : > { %v2987_v35 = vpop.xlane.xlu0 %2986  ;;  %v4516_v57 = vld [vmem:[#allocation3 + $0x38] sm:$0xff]  ;;  %v2921_v41 = vmul.f32 %v10847_v61, %v2857_v26  ;;  %v2862_v61 = vld [vmem:[#allocation3 + $0x100] sm:$0xff] }
 0x37f   : > { %3156 = vst.msk [vmem:[#allocation3 + $0x28] sm:$0xff] %vm529_vm2, %v3091_v52  ;;  %v3100_v46 = vadd.f32 %v2987_v35, %v2908_v4  ;;  %7188 = vrcp.f32 %v4516_v57  ;;  %v10848_v35 = vld [vmem:[#allocation120_spill] sm:$0xff]  ;;  %v10849_v57 = vld [vmem:[#allocation93_spill] sm:$0xff] }
 0x380   : > { %v7173_v10 = vpop.eup %7172  ;;  %v3001_v8 = vpop.xlane.xlu1 %3000  ;;  %7190 = vrcp.f32 %v4519_v54  ;;  %v2922_v39 = vmul.f32 %v10848_v35, %v2858_v12  ;;  %v3249_v12 = vld [vmem:[#allocation4 + $0x110] sm:$0xff]  ;;  %v10854_v35 = vld [vmem:[#allocation40_spill] sm:$0xff] }
 0x381   : > { %3165 = vst.msk [vmem:[#allocation3 + $0x70] sm:$0xff] %vm529_vm2, %v3100_v46  ;;  %v3107_v6 = vadd.f32 %v3001_v8, %v2915_v49  ;;  %4590 = vperm.xlu1 %6810, %v7173_v10   ;;  %4887 = vperm.xlu0 %6811, %v7171_v51   ;;  %v7175_v44 = vpop.eup %7174  ;;  %v6143_v46 = vld [vmem:[%s10352_s5 + $0x4] sm:$0xf]  ;;  %v2903_v8 = vmul.f32 %v10849_v57, %v2839_v22 }
 0x382   : > { %v3019_v1 = vpop.xlane.xlu0 %3018  ;;  %v4827_v9 = vld [vmem:[#allocation3 + $0xb8] sm:$0xff]  ;;  %v4517_v49 = vld [vmem:[#allocation3 + $0x40] sm:$0xff]  ;;  %6747 = vmatprep.subr.msk.bf16.mxu1 %vm4702_vm3, %v6143_v46  ;;  %v5016_v32 = vsel %vm4702_vm3, %v6143_v46, 0 }
 0x383   : > { %3172 = vst.msk [vmem:[#allocation3 + $0xa8] sm:$0xff] %vm529_vm2, %v3107_v6  ;;  %v3116_v45 = vadd.f32 %v3019_v1, %v2924_v24  ;;  %7192 = vrcp.f32 %v4827_v9  ;;  %v2855_v1 = vld [vmem:[#allocation3 + $0xc8] sm:$0xff]  ;;  %6661 = vmatpush3.bf16.msra.mxu1 %v5016_v32  ;;  %v2861_v46 = vld [vmem:[#allocation3 + $0xf8] sm:$0xff] }
 0x384   : > { %v7177_v17 = vpop.eup %7176  ;;  %v2981_v50 = vpop.xlane.xlu1 %2980  ;;  %7194 = vrcp.f32 %v4830_v33 }
 0x385   : > { %3181 = vst.msk [vmem:[#allocation3 + $0xf0] sm:$0xff] %vm529_vm2, %v3116_v45  ;;  %v3097_v47 = vadd.f32 %v2981_v50, %v2905_v3  ;;  %4902 = vperm.xlu1 %6810, %v7177_v17   ;;  %4605 = vperm.xlu0 %6811, %v7175_v44   ;;  %v7179_v18 = vpop.eup %7178  ;;  %v10850_v44 = vld [vmem:[#allocation13_spill] sm:$0xff]  ;;  %v4828_v17 = vld [vmem:[#allocation3 + $0xc0] sm:$0xff]  ;;  %v10851_v50 = vld [vmem:[#allocation95_spill] sm:$0xff] }
 0x386   : > { %v2983_v40 = vpop.xlane.xlu0 %2982  ;;  %v7181_v42 = vpop.eup %7180  ;;  %v4514_v37 = vld [vmem:[#allocation3 + $0x28] sm:$0xff]  ;;  %v2928_v54 = vmul.f32 %v10850_v44, %v2864_v20  ;;  %v2919_v26 = vmul.f32 %v10851_v50, %v2855_v1  ;;  %v2878_v44 = vld [vmem:[#allocation3 + $0x180] sm:$0xff] }
 0x387   : > { %3162 = vst.msk [vmem:[#allocation3 + $0x58] sm:$0xff] %vm529_vm2, %v3097_v47  ;;  %v3098_v19 = vadd.f32 %v2983_v40, %v2906_v21  ;;  %v7183_v27 = vpop.eup %7182  ;;  %7196 = vrcp.f32 %v4514_v37  ;;  %v2845_v40 = vld [vmem:[#allocation3 + $0x78] sm:$0xff] }
 0x388   : > { %v3013_v52 = vpop.xlane.xlu1 %3012  ;;  %v7185_v6 = vpop.eup %7184  ;;  %7198 = vrcp.f32 %v4517_v49  ;;  %v3250_v49 = vld [vmem:[#allocation4 + $0x118] sm:$0xff] }
 0x389   : > { %3163 = vst.msk [vmem:[#allocation3 + $0x60] sm:$0xff] %vm529_vm2, %v3098_v19  ;;  %v3113_v4 = vadd.f32 %v3013_v52, %v2921_v41  ;;  %4580 = vperm.xlu1 %6810, %v7179_v18   ;;  %4917 = vperm.xlu0 %6811, %v7181_v42   ;;  %v7187_v3 = vpop.eup %7186  ;;  %v10852_v18 = vld [vmem:[#allocation18_spill] sm:$0xff]  ;;  %v10853_v52 = vld [vmem:[#allocation99_spill] sm:$0xff] }
 0x38a   : > { %v3015_v51 = vpop.xlane.xlu0 %3014  ;;  %v4825_v28 = vld [vmem:[#allocation3 + $0xa8] sm:$0xff]  ;;  %v2944_v33 = vmul.f32 %v10852_v18, %v2880_v25  ;;  %v4523_v42 = vld [vmem:[#allocation3 + $0x70] sm:$0xff]  ;;  %v2909_v22 = vmul.f32 %v10853_v52, %v2845_v40 }
 0x38b   : > { %3178 = vst.msk [vmem:[#allocation3 + $0xd8] sm:$0xff] %vm529_vm2, %v3113_v4  ;;  %v3114_v10 = vadd.f32 %v3015_v51, %v2922_v39  ;;  %7200 = vrcp.f32 %v4825_v28  ;;  %v3633_v39 = vmul.f32 %v10854_v35, %v3249_v12  ;;  %v10856_v28 = vld [vmem:[#allocation39_spill] sm:$0xff]  ;;  %v10861_v52 = vld [vmem:[#allocation17_spill] sm:$0xff] }
 0x38c   : > { %v2977_v24 = vpop.xlane.xlu1 %2976  ;;  %v7189_v47 = vpop.eup %7188  ;;  %7202 = vrcp.f32 %v4828_v17  ;;  %v4834_v25 = vld [vmem:[#allocation3 + $0xf0] sm:$0xff] }
 0x38d   : > { %3179 = vst.msk [vmem:[#allocation3 + $0xe0] sm:$0xff] %vm529_vm2, %v3114_v10  ;;  %v3095_v58 = vadd.f32 %v2977_v24, %v2903_v8  ;;  %4892 = vperm.xlu1 %6810, %v7185_v6   ;;  %4595 = vperm.xlu0 %6811, %v7183_v27   ;;  %v7191_v41 = vpop.eup %7190  ;;  %v3265_v27 = vld [vmem:[#allocation4 + $0x190] sm:$0xff]  ;;  %v10855_v8 = vld [vmem:[#allocation72_spill] sm:$0xff]  ;;  %v3631_v24 = vmul.f32 %v10856_v28, %v3247_v13 }
 0x38e   : > { %v3027_v45 = vpop.xlane.xlu0 %3026  ;;  %v4520_v60 = vld [vmem:[#allocation3 + $0x58] sm:$0xff]  ;;  %v2926_v32 = vmul.f32 %v10855_v8, %v2862_v61  ;;  %v3263_v6 = vld [vmem:[#allocation4 + $0x180] sm:$0xff] }
 0x38f   : > { %3160 = vst.msk [vmem:[#allocation3 + $0x48] sm:$0xff] %vm529_vm2, %v3095_v58  ;;  %v3120_v9 = vadd.f32 %v3027_v45, %v2928_v54  ;;  %7204 = vrcp.f32 %v4520_v60  ;;  %v3248_v45 = vld [vmem:[#allocation4 + $0x108] sm:$0xff] }
 0x390   : > { %v3009_v21 = vpop.xlane.xlu1 %3008  ;;  %v7193_v4 = vpop.eup %7192  ;;  %7206 = vrcp.f32 %v4523_v42 }
 0x391   : > { %3185 = vst.msk [vmem:[#allocation3 + $0x110] sm:$0xff] %vm529_vm2, %v3120_v9  ;;  %v3111_v23 = vadd.f32 %v3009_v21, %v2919_v26  ;;  %4610 = vperm.xlu1 %6810, %v7189_v47   ;;  %4907 = vperm.xlu0 %6811, %v7187_v3   ;;  %v7195_v54 = vpop.eup %7194  ;;  %v10857_v9 = vld [vmem:[#allocation103_spill] sm:$0xff]  ;;  %v10858_v47 = vld [vmem:[#allocation41_spill] sm:$0xff]  ;;  %v10859_v21 = vld [vmem:[#allocation38_spill] sm:$0xff] }
 0x392   : > { %v3059_v19 = vpop.xlane.xlu0 %3058  ;;  %v4831_v51 = vld [vmem:[#allocation3 + $0xd8] sm:$0xff]  ;;  %v2925_v50 = vmul.f32 %v10857_v9, %v2861_v46  ;;  %v3649_v60 = vmul.f32 %v10858_v47, %v3265_v27  ;;  %v3634_v40 = vmul.f32 %v10859_v21, %v3250_v49  ;;  %v2868_v46 = vld [vmem:[#allocation3 + $0x130] sm:$0xff]  ;;  %v3264_v49 = vld [vmem:[#allocation4 + $0x188] sm:$0xff] }
 0x393   : > { %3176 = vst.msk [vmem:[#allocation3 + $0xc8] sm:$0xff] %vm529_vm2, %v3111_v23  ;;  %v3136_v37 = vadd.f32 %v3059_v19, %v2944_v33  ;;  %7208 = vrcp.f32 %v4831_v51  ;;  %v2843_v33 = vld [vmem:[#allocation3 + $0x68] sm:$0xff]  ;;  %v10860_v19 = vld [vmem:[#allocation36_spill] sm:$0xff]  ;;  %v10866_v47 = vld [vmem:[#allocation43_spill] sm:$0xff] }
 0x394   : > { %v2989_v20 = vpop.xlane.xlu1 %2988  ;;  %v7197_v26 = vpop.eup %7196  ;;  %v3647_v61 = vmul.f32 %v10860_v19, %v3263_v6  ;;  %7210 = vrcp.f32 %v4834_v25  ;;  %v10863_v6 = vld [vmem:[#allocation107_spill] sm:$0xff] }
 0x395   : > { %3201 = vst.msk [vmem:[#allocation3 + $0x190] sm:$0xff] %vm529_vm2, %v3136_v37  ;;  %v3101_v10 = vadd.f32 %v2989_v20, %v2909_v22  ;;  %v6596_v57 = vpop.f32.mrf.mxu0  ;;  %4922 = vperm.xlu1 %6810, %v7193_v4   ;;  %4625 = vperm.xlu0 %6811, %v7191_v41   ;;  %v3266_v41 = vld [vmem:[#allocation4 + $0x198] sm:$0xff]  ;;  %v2942_v22 = vmul.f32 %v10861_v52, %v2878_v44  ;;  %v10862_v4 = vld [vmem:[#allocation44_spill] sm:$0xff]  ;;  %v7199_v27 = vpop.eup %7198 }
 0x396   : > { %v4309_v1 = vadd.f32 %v6596_v57, %v3633_v39  ;;  %v3023_v58 = vpop.xlane.xlu0 %3022  ;;  %v4518_v12 = vld [vmem:[#allocation3 + $0x48] sm:$0xff]  ;;  %v3632_v35 = vmul.f32 %v10862_v4, %v3248_v45  ;;  %v2907_v28 = vmul.f32 %v10863_v6, %v2843_v33  ;;  %v3253_v4 = vld [vmem:[#allocation4 + $0x130] sm:$0xff] }
 0x397   : > { %3166 = vst.msk [vmem:[#allocation3 + $0x78] sm:$0xff] %vm529_vm2, %v3101_v10  ;;  %v3118_v3 = vadd.f32 %v3023_v58, %v2926_v32  ;;  %v4067_v17 = vpop.f32.mrf.mxu0  ;;  %v4521_v10 = vld [vmem:[#allocation3 + $0x60] sm:$0xff]  ;;  %7212 = vrcp.f32 %v4518_v12  ;;  %v2884_v12 = vld [vmem:[#allocation3 + $0x1b0] sm:$0xff] }
 0x398   : > { %4373 = vst.msk [vmem:[#allocation4 + $0x110] sm:$0xff] %vm658_vm0, %v4309_v1  ;;  %v4307_v23 = vadd.f32 %v4067_v17, %v3631_v24  ;;  %v3021_v18 = vpop.xlane.xlu1 %3020  ;;  %v7201_v24 = vpop.eup %7200  ;;  %v10864_v1 = vld [vmem:[#allocation122_spill] sm:$0xff]  ;;  %7214 = vrcp.f32 %v4521_v10 }
 0x399   : > { %3183 = vst.msk [vmem:[#allocation3 + $0x100] sm:$0xff] %vm529_vm2, %v3118_v3  ;;  %v3117_v13 = vadd.f32 %v3021_v18, %v2925_v50  ;;  %v6597_v42 = vpop.f32.mrf.mxu0  ;;  %v6628_v37 = vpop.f32.mrf.mxu1  ;;  %4600 = vperm.xlu1 %6810, %v7197_v26   ;;  %4937 = vperm.xlu0 %6811, %v7195_v54   ;;  %v3650_v58 = vmul.f32 %v10864_v1, %v3266_v41  ;;  %v2859_v3 = vld [vmem:[#allocation3 + $0xe8] sm:$0xff]  ;;  %v4832_v18 = vld [vmem:[#allocation3 + $0xe0] sm:$0xff]  ;;  %v5134_v10 = vld [vmem:[#allocation3 + $0x110] sm:$0xff] }
 0x39a   : > { %4371 = vst.msk [vmem:[#allocation4 + $0x100] sm:$0xff] %vm658_vm0, %v4307_v23  ;;  %v4310_v39 = vadd.f32 %v6597_v42, %v3634_v40  ;;  %v4325_v51 = vadd.f32 %v6628_v37, %v3649_v60  ;;  %v3055_v20 = vpop.xlane.xlu0 %3054  ;;  %v4829_v44 = vld [vmem:[#allocation3 + $0xc8] sm:$0xff]  ;;  %v3648_v60 = vmul.f32 %v10866_v47, %v3264_v49  ;;  %v7203_v23 = vpop.eup %7202  ;;  %v3251_v49 = vld [vmem:[#allocation4 + $0x120] sm:$0xff] }
 0x39b   : > { %3182 = vst.msk [vmem:[#allocation3 + $0xf8] sm:$0xff] %vm529_vm2, %v3117_v13  ;;  %v3134_v57 = vadd.f32 %v3055_v20, %v2942_v22  ;;  %v4070_v8 = vpop.f32.mrf.mxu0  ;;  %v4212_v32 = vpop.f32.mrf.mxu1  ;;  %v10865_v50 = vld [vmem:[#allocation25_spill] sm:$0xff]  ;;  %7216 = vrcp.f32 %v4829_v44  ;;  %v2865_v22 = vld [vmem:[#allocation3 + $0x118] sm:$0xff]  ;;  %v3269_v44 = vld [vmem:[#allocation4 + $0x1b0] sm:$0xff] }
 0x39c   : > { %4374 = vst.msk [vmem:[#allocation4 + $0x118] sm:$0xff] %vm658_vm0, %v4310_v39  ;;  %4389 = vst.msk [vmem:[#allocation4 + $0x190] sm:$0xff] %vm658_vm0, %v4325_v51  ;;  %v4308_v54 = vadd.f32 %v4070_v8, %v3632_v35  ;;  %v4323_v45 = vadd.f32 %v4212_v32, %v3647_v61  ;;  %v2985_v25 = vpop.xlane.xlu1 %2984  ;;  %v2932_v26 = vmul.f32 %v10865_v50, %v2868_v46  ;;  %v10867_v61 = vld [vmem:[#allocation112_spill] sm:$0xff]  ;;  %v7205_v13 = vpop.eup %7204  ;;  %v10868_v39 = vld [vmem:[#allocation78_spill] sm:$0xff]  ;;  %7218 = vrcp.f32 %v4832_v18 }
 0x39d   : > { %3199 = vst.msk [vmem:[#allocation3 + $0x180] sm:$0xff] %vm529_vm2, %v3134_v57  ;;  %v3099_v17 = vadd.f32 %v2985_v25, %v2907_v28  ;;  %v6629_v9 = vpop.f32.mrf.mxu1  ;;  %4912 = vperm.xlu1 %6810, %v7201_v24   ;;  %4615 = vperm.xlu0 %6811, %v7199_v27   ;;  %v2923_v41 = vmul.f32 %v10867_v61, %v2859_v3  ;;  %v2866_v46 = vld [vmem:[#allocation3 + $0x120] sm:$0xff]  ;;  %v7207_v27 = vpop.eup %7206  ;;  %v10869_v8 = vld [vmem:[#allocation73_spill] sm:$0xff] }
 0x39e   : > { %4372 = vst.msk [vmem:[#allocation4 + $0x108] sm:$0xff] %vm658_vm0, %v4308_v54  ;;  %4387 = vst.msk [vmem:[#allocation4 + $0x180] sm:$0xff] %vm658_vm0, %v4323_v45  ;;  %v4326_v21 = vadd.f32 %v6629_v9, %v3650_v58  ;;  %v3035_v40 = vpop.xlane.xlu0 %3034  ;;  %v4524_v42 = vld [vmem:[#allocation3 + $0x78] sm:$0xff]  ;;  %v2948_v51 = vmul.f32 %v10868_v39, %v2884_v12  ;;  %v2929_v32 = vmul.f32 %v10869_v8, %v2865_v22  ;;  %v10870_v3 = vld [vmem:[#allocation32_spill] sm:$0xff] }
 0x39f   : > { %3164 = vst.msk [vmem:[#allocation3 + $0x68] sm:$0xff] %vm529_vm2, %v3099_v17  ;;  %v3124_v33 = vadd.f32 %v3035_v40, %v2932_v26  ;;  %v4215_v19 = vpop.f32.mrf.mxu1  ;;  %7220 = vrcp.f32 %v4524_v42  ;;  %v3637_v28 = vmul.f32 %v9751_v16, %v3253_v4  ;;  %v2881_v58 = vld [vmem:[#allocation3 + $0x198] sm:$0xff]  ;;  %v2930_v17 = vmul.f32 %v10870_v3, %v2866_v46  ;;  %v3267_v9 = vld [vmem:[#allocation4 + $0x1a0] sm:$0xff]  ;;  %v5446_v40 = vld [vmem:[#allocation3 + $0x190] sm:$0xff] }
 0x3a0   : > { %4390 = vst.msk [vmem:[#allocation4 + $0x198] sm:$0xff] %vm658_vm0, %v4326_v21  ;;  %v4324_v37 = vadd.f32 %v4215_v19, %v3648_v60  ;;  %v3017_v52 = vpop.xlane.xlu1 %3016  ;;  %v7209_v6 = vpop.eup %7208  ;;  %v3254_v54 = vld [vmem:[#allocation4 + $0x138] sm:$0xff]  ;;  %v3635_v50 = vmul.f32 %v9761_v11, %v3251_v49  ;;  %7222 = vrcp.f32 %v5134_v10  ;;  %v2882_v16 = vld [vmem:[#allocation3 + $0x1a0] sm:$0xff]  ;;  %v3252_v21 = vld [vmem:[#allocation4 + $0x128] sm:$0xff] }
 0x3a1   : > { %3189 = vst.msk [vmem:[#allocation3 + $0x130] sm:$0xff] %vm529_vm2, %v3124_v33  ;;  %v3115_v35 = vadd.f32 %v3017_v52, %v2923_v41  ;;  %4630 = vperm.xlu1 %6810, %v7205_v13   ;;  %4927 = vperm.xlu0 %6811, %v7203_v23   ;;  %v7211_v60 = vpop.eup %7210  ;;  %v10871_v18 = vld [vmem:[#allocation16_spill] sm:$0xff]  ;;  %v10872_v61 = vld [vmem:[#allocation37_spill] sm:$0xff]  ;;  %v3638_v13 = vmul.f32 %v9729_v7, %v3254_v54  ;;  %v10873_v22 = vld [vmem:[#allocation10_spill] sm:$0xff] }
 0x3a2   : > { %4388 = vst.msk [vmem:[#allocation4 + $0x188] sm:$0xff] %vm658_vm0, %v4324_v37  ;;  %v3067_v20 = vpop.xlane.xlu0 %3066  ;;  %v4835_v24 = vld [vmem:[#allocation3 + $0xf8] sm:$0xff]  ;;  %v2945_v33 = vmul.f32 %v10871_v18, %v2881_v58  ;;  %v3653_v41 = vmul.f32 %v10872_v61, %v3269_v44  ;;  %v2863_v52 = vld [vmem:[#allocation3 + $0x108] sm:$0xff]  ;;  %v3651_v4 = vmul.f32 %v10873_v22, %v3267_v9  ;;  %v3636_v7 = vmul.f32 %v9746_v36, %v3252_v21  ;;  %v2872_v8 = vld [vmem:[#allocation3 + $0x150] sm:$0xff] }
 0x3a3   : > { %3180 = vst.msk [vmem:[#allocation3 + $0xe8] sm:$0xff] %vm529_vm2, %v3115_v35  ;;  %v3140_v57 = vadd.f32 %v3067_v20, %v2948_v51  ;;  %7224 = vrcp.f32 %v4835_v24  ;;  %v3270_v35 = vld [vmem:[#allocation4 + $0x1b8] sm:$0xff]  ;;  %v10874_v46 = vld [vmem:[#allocation77_spill] sm:$0xff]  ;;  %v10875_v44 = vld [vmem:[#allocation12_spill] sm:$0xff] }
 0x3a4   : > { %v3029_v1 = vpop.xlane.xlu1 %3028  ;;  %v7213_v19 = vpop.eup %7212  ;;  %7226 = vrcp.f32 %v5446_v40  ;;  %v2927_v54 = vmul.f32 %v10875_v44, %v2863_v52  ;;  %v3654_v36 = vmul.f32 %v9774_v29, %v3270_v35  ;;  %v5444_v18 = vld [vmem:[#allocation3 + $0x180] sm:$0xff]  ;;  %v10877_v61 = vld [vmem:[#allocation21_spill] sm:$0xff]  ;;  %v3257_v52 = vld [vmem:[#allocation4 + $0x150] sm:$0xff] }
 0x3a5   : > { %3205 = vst.msk [vmem:[#allocation3 + $0x1b0] sm:$0xff] %vm529_vm2, %v3140_v57  ;;  %v3121_v45 = vadd.f32 %v3029_v1, %v2929_v32  ;;  %v6600_v25 = vpop.f32.mrf.mxu0  ;;  %4942 = vperm.xlu1 %6810, %v7209_v6   ;;  %4645 = vperm.xlu0 %6811, %v7207_v27   ;;  %v2946_v27 = vmul.f32 %v10874_v46, %v2882_v16  ;;  %v7215_v32 = vpop.eup %7214  ;;  %v3268_v6 = vld [vmem:[#allocation4 + $0x1a8] sm:$0xff]  ;;  %v3255_v46 = vld [vmem:[#allocation4 + $0x140] sm:$0xff] }
 0x3a6   : > { %v4313_v26 = vadd.f32 %v6600_v25, %v3637_v28  ;;  %v3031_v47 = vpop.xlane.xlu0 %3030  ;;  %v4522_v11 = vld [vmem:[#allocation3 + $0x68] sm:$0xff]  ;;  %v5132_v28 = vld [vmem:[#allocation3 + $0x100] sm:$0xff]  ;;  %v3652_v21 = vmul.f32 %v9786_v2, %v3268_v6 }
 0x3a7   : > { %3186 = vst.msk [vmem:[#allocation3 + $0x118] sm:$0xff] %vm529_vm2, %v3121_v45  ;;  %v3122_v12 = vadd.f32 %v3031_v47, %v2930_v17  ;;  %v4083_v23 = vpop.f32.mrf.mxu0  ;;  %7228 = vrcp.f32 %v4522_v11  ;;  %v10876_v16 = vld [vmem:[#allocation113_spill] sm:$0xff] }
 0x3a8   : > { %4377 = vst.msk [vmem:[#allocation4 + $0x130] sm:$0xff] %vm658_vm0, %v4313_v26  ;;  %v4311_v42 = vadd.f32 %v4083_v23, %v3635_v50  ;;  %v3061_v37 = vpop.xlane.xlu1 %3060  ;;  %v7217_v45 = vpop.eup %7216  ;;  %v2879_v50 = vld [vmem:[#allocation3 + $0x188] sm:$0xff]  ;;  %7230 = vrcp.f32 %v5132_v28  ;;  %v2885_v28 = vld [vmem:[#allocation3 + $0x1b8] sm:$0xff] }
 0x3a9   : > { %3187 = vst.msk [vmem:[#allocation3 + $0x120] sm:$0xff] %vm529_vm2, %v3122_v12  ;;  %v3137_v39 = vadd.f32 %v3061_v37, %v2945_v33  ;;  %v6601_v51 = vpop.f32.mrf.mxu0  ;;  %v6632_v20 = vpop.f32.mrf.mxu1  ;;  %4620 = vperm.xlu1 %6810, %v7213_v19   ;;  %4957 = vperm.xlu0 %6811, %v7211_v60   ;;  %v2936_v60 = vmul.f32 %v10876_v16, %v2872_v8  ;;  %v2888_v12 = vld [vmem:[#allocation3 + $0x1d0] sm:$0xff]  ;;  %v2869_v37 = vld [vmem:[#allocation3 + $0x138] sm:$0xff] }
 0x3aa   : > { %4375 = vst.msk [vmem:[#allocation4 + $0x120] sm:$0xff] %vm658_vm0, %v4311_v42  ;;  %v4314_v49 = vadd.f32 %v6601_v51, %v3638_v13  ;;  %v4329_v10 = vadd.f32 %v6632_v20, %v3653_v41  ;;  %v3063_v57 = vpop.xlane.xlu0 %3062  ;;  %v4833_v25 = vld [vmem:[#allocation3 + $0xe8] sm:$0xff]  ;;  %v7219_v23 = vpop.eup %7218  ;;  %v2943_v41 = vmul.f32 %v10877_v61, %v2879_v50  ;;  %v2870_v51 = vld [vmem:[#allocation3 + $0x140] sm:$0xff]  ;;  %v3641_v8 = vmul.f32 %v9797_v55, %v3257_v52  ;;  %v3274_v61 = vld [vmem:[#allocation4 + $0x1d8] sm:$0xff] }
 0x3ab   : > { %3202 = vst.msk [vmem:[#allocation3 + $0x198] sm:$0xff] %vm529_vm2, %v3137_v39  ;;  %v3138_v24 = vadd.f32 %v3063_v57, %v2946_v27  ;;  %v4086_v1 = vpop.f32.mrf.mxu0  ;;  %v4228_v58 = vpop.f32.mrf.mxu1  ;;  %7232 = vrcp.f32 %v4833_v25  ;;  %v5138_v27 = vld [vmem:[#allocation3 + $0x130] sm:$0xff]  ;;  %v3639_v25 = vmul.f32 %v9811_v0, %v3255_v46  ;;  %v2886_v55 = vld [vmem:[#allocation3 + $0x1c0] sm:$0xff]  ;;  %v3256_v50 = vld [vmem:[#allocation4 + $0x148] sm:$0xff] }
 0x3ac   : > { %4378 = vst.msk [vmem:[#allocation4 + $0x138] sm:$0xff] %vm658_vm0, %v4314_v49  ;;  %4393 = vst.msk [vmem:[#allocation4 + $0x1b0] sm:$0xff] %vm658_vm0, %v4329_v10  ;;  %v4312_v3 = vadd.f32 %v4086_v1, %v3636_v7  ;;  %v4327_v17 = vadd.f32 %v4228_v58, %v3651_v4  ;;  %v3025_v9 = vpop.xlane.xlu1 %3024  ;;  %v7221_v13 = vpop.eup %7220  ;;  %v10878_v4 = vld [vmem:[#allocation27_spill] sm:$0xff]  ;;  %7234 = vrcp.f32 %v5444_v18  ;;  %v10879_v49 = vld [vmem:[#allocation20_spill] sm:$0xff] }
 0x3ad   : > { %3203 = vst.msk [vmem:[#allocation3 + $0x1a0] sm:$0xff] %vm529_vm2, %v3138_v24  ;;  %v3119_v26 = vadd.f32 %v3025_v9, %v2927_v54  ;;  %v6633_v47 = vpop.f32.mrf.mxu1  ;;  %4932 = vperm.xlu1 %6810, %v7217_v45   ;;  %4635 = vperm.xlu0 %6811, %v7215_v32   ;;  %v2952_v35 = vmul.f32 %v10878_v4, %v2888_v12  ;;  %v7223_v20 = vpop.eup %7222  ;;  %v3273_v24 = vld [vmem:[#allocation4 + $0x1d0] sm:$0xff]  ;;  %v3258_v1 = vld [vmem:[#allocation4 + $0x158] sm:$0xff]  ;;  %v3272_v4 = vld [vmem:[#allocation4 + $0x1c8] sm:$0xff] }
 0x3ae   : > { %4376 = vst.msk [vmem:[#allocation4 + $0x128] sm:$0xff] %vm658_vm0, %v4312_v3  ;;  %4391 = vst.msk [vmem:[#allocation4 + $0x1a0] sm:$0xff] %vm658_vm0, %v4327_v17  ;;  %v4330_v29 = vadd.f32 %v6633_v47, %v3654_v36  ;;  %v3043_v40 = vpop.xlane.xlu0 %3042  ;;  %v5135_v11 = vld [vmem:[#allocation3 + $0x118] sm:$0xff]  ;;  %v2933_v10 = vmul.f32 %v10879_v49, %v2869_v37  ;;  %v10880_v54 = vld [vmem:[#allocation114_spill] sm:$0xff]  ;;  %v3642_v12 = vmul.f32 %v9779_v43, %v3258_v1 }
 0x3af   : > { %3184 = vst.msk [vmem:[#allocation3 + $0x108] sm:$0xff] %vm529_vm2, %v3119_v26  ;;  %v3128_v33 = vadd.f32 %v3043_v40, %v2936_v60  ;;  %v4231_v19 = vpop.f32.mrf.mxu1  ;;  %7236 = vrcp.f32 %v5135_v11  ;;  %v2934_v45 = vmul.f32 %v10880_v54, %v2870_v51  ;;  %v3271_v36 = vld [vmem:[#allocation4 + $0x1c0] sm:$0xff]  ;;  %v5450_v26 = vld [vmem:[#allocation3 + $0x1b0] sm:$0xff]  ;;  %v3657_v40 = vmul.f32 %v9755_v59, %v3273_v24  ;;  %v10884_v24 = vld [vmem:[#allocation125_spill] sm:$0xff] }
 0x3b0   : > { %4394 = vst.msk [vmem:[#allocation4 + $0x1b8] sm:$0xff] %vm658_vm0, %v4330_v29  ;;  %v4328_v2 = vadd.f32 %v4231_v19, %v3652_v21  ;;  %v3057_v42 = vpop.xlane.xlu1 %3056  ;;  %v7225_v57 = vpop.eup %7224  ;;  %7238 = vrcp.f32 %v5138_v27  ;;  %v10881_v60 = vld [vmem:[#allocation22_spill] sm:$0xff]  ;;  %v3655_v19 = vmul.f32 %v9766_v5, %v3271_v36  ;;  %v3640_v43 = vmul.f32 %v9790_v34, %v3256_v50 }
 0x3b1   : > { %3193 = vst.msk [vmem:[#allocation3 + $0x150] sm:$0xff] %vm529_vm2, %v3128_v33  ;;  %v3135_v22 = vadd.f32 %v3057_v42, %v2943_v41  ;;  %4650 = vperm.xlu1 %6810, %v7221_v13   ;;  %4947 = vperm.xlu0 %6811, %v7219_v23   ;;  %v7227_v9 = vpop.eup %7226  ;;  %v2949_v21 = vmul.f32 %v10881_v60, %v2885_v28  ;;  %v2867_v33 = vld [vmem:[#allocation3 + $0x128] sm:$0xff]  ;;  %v10883_v46 = vld [vmem:[#allocation26_spill] sm:$0xff]  ;;  %v10886_v60 = vld [vmem:[#allocation127_spill] sm:$0xff] }
 0x3b2   : > { %4392 = vst.msk [vmem:[#allocation4 + $0x1a8] sm:$0xff] %vm658_vm0, %v4328_v2  ;;  %v3075_v39 = vpop.xlane.xlu0 %3074  ;;  %v5447_v32 = vld [vmem:[#allocation3 + $0x198] sm:$0xff]  ;;  %v10882_v2 = vld [vmem:[#allocation34_spill] sm:$0xff]  ;;  %v2931_v27 = vmul.f32 %v10883_v46, %v2867_v33  ;;  %v3658_v34 = vmul.f32 %v9824_v30, %v3274_v61  ;;  %v6152_v33 = vld [vmem:[%s10352_s5 + $0x8] sm:$0xf] }
 0x3b3   : > { %3200 = vst.msk [vmem:[#allocation3 + $0x188] sm:$0xff] %vm529_vm2, %v3135_v22  ;;  %v3144_v7 = vadd.f32 %v3075_v39, %v2952_v35  ;;  %7240 = vrcp.f32 %v5447_v32  ;;  %v2950_v59 = vmul.f32 %v10882_v2, %v2886_v55  ;;  %v2876_v22 = vld [vmem:[#allocation3 + $0x170] sm:$0xff]  ;;  %v5136_v35 = vld [vmem:[#allocation3 + $0x120] sm:$0xff]  ;;  %v2883_v32 = vld [vmem:[#allocation3 + $0x1a8] sm:$0xff]  ;;  %6748 = vmatprep.subr.msk.bf16.mxu0 %vm4702_vm3, %v6152_v33  ;;  %v10037_v2 = vsel %vm4702_vm3, %v6152_v33, 0 }
 0x3b4   : > { %v3037_v6 = vpop.xlane.xlu1 %3036  ;;  %v7229_v29 = vpop.eup %7228  ;;  %7242 = vrcp.f32 %v5450_v26  ;;  %v2940_v1 = vmul.f32 %v10884_v24, %v2876_v22  ;;  %v2892_v54 = vld [vmem:[#allocation3 + $0x1f0] sm:$0xff]  ;;  %v5448_v36 = vld [vmem:[#allocation3 + $0x1a0] sm:$0xff] }
 0x3b5   : > { %3209 = vst.msk [vmem:[#allocation3 + $0x1d0] sm:$0xff] %vm529_vm2, %v3144_v7  ;;  %v3125_v58 = vadd.f32 %v3037_v6, %v2933_v10  ;;  %v6604_v44 = vpop.f32.mrf.mxu0  ;;  %4962 = vperm.xlu1 %6810, %v7225_v57   ;;  %5209 = vperm.xlu0 %6811, %v7223_v20   ;;  %v7231_v5 = vpop.eup %7230 }
 0x3b6   : > { %v4317_v3 = vadd.f32 %v6604_v44, %v3641_v8  ;;  %v3039_v17 = vpop.xlane.xlu0 %3038  ;;  %v5133_v0 = vld [vmem:[#allocation3 + $0x108] sm:$0xff] }
 0x3b7   : > { %3190 = vst.msk [vmem:[#allocation3 + $0x138] sm:$0xff] %vm529_vm2, %v3125_v58  ;;  %v3126_v47 = vadd.f32 %v3039_v17, %v2934_v45  ;;  %v4099_v16 = vpop.f32.mrf.mxu0  ;;  %7244 = vrcp.f32 %v5133_v0  ;;  %v3656_v58 = vmul.f32 %v9831_v15, %v3272_v4  ;;  %v10885_v17 = vld [vmem:[#allocation29_spill] sm:$0xff]  ;;  %v10889_v4 = vld [vmem:[#allocation102_spill] sm:$0xff] }
 0x3b8   : > { %4381 = vst.msk [vmem:[#allocation4 + $0x150] sm:$0xff] %vm658_vm0, %v4317_v3  ;;  %v4315_v23 = vadd.f32 %v4099_v16, %v3639_v25  ;;  %v3069_v18 = vpop.xlane.xlu1 %3068  ;;  %v7233_v7 = vpop.eup %7232  ;;  %7246 = vrcp.f32 %v5136_v35  ;;  %v2947_v55 = vmul.f32 %v10885_v17, %v2883_v32 }
 0x3b9   : > { %3191 = vst.msk [vmem:[#allocation3 + $0x140] sm:$0xff] %vm529_vm2, %v3126_v47  ;;  %v3141_v41 = vadd.f32 %v3069_v18, %v2949_v21  ;;  %v6605_v13 = vpop.f32.mrf.mxu0  ;;  %v6636_v11 = vpop.f32.mrf.mxu1  ;;  %4640 = vperm.xlu1 %6810, %v7229_v29   ;;  %5521 = vperm.xlu0 %6811, %v7227_v9   ;;  %v2873_v47 = vld [vmem:[#allocation3 + $0x158] sm:$0xff]  ;;  %v2956_v21 = vmul.f32 %v10886_v60, %v2892_v54 }
 0x3ba   : > { %4379 = vst.msk [vmem:[#allocation4 + $0x140] sm:$0xff] %vm658_vm0, %v4315_v23  ;;  %v4318_v42 = vadd.f32 %v6605_v13, %v3642_v12  ;;  %v4333_v37 = vadd.f32 %v6636_v11, %v3657_v40  ;;  %v3071_v52 = vpop.xlane.xlu0 %3070  ;;  %v5445_v49 = vld [vmem:[#allocation3 + $0x188] sm:$0xff]  ;;  %v7235_v45 = vpop.eup %7234  ;;  %v2874_v40 = vld [vmem:[#allocation3 + $0x160] sm:$0xff]  ;;  %v2889_v11 = vld [vmem:[#allocation3 + $0x1d8] sm:$0xff] }
 0x3bb   : > { %3206 = vst.msk [vmem:[#allocation3 + $0x1b8] sm:$0xff] %vm529_vm2, %v3141_v41  ;;  %v3142_v39 = vadd.f32 %v3071_v52, %v2950_v59  ;;  %v4102_v51 = vpop.f32.mrf.mxu0  ;;  %v4244_v20 = vpop.f32.mrf.mxu1  ;;  %7248 = vrcp.f32 %v5445_v49  ;;  %v10887_v23 = vld [vmem:[#allocation28_spill] sm:$0xff]  ;;  %v2953_v35 = vmul.f32 %v10889_v4, %v2889_v11  ;;  %v2875_v4 = vld [vmem:[#allocation3 + $0x168] sm:$0xff] }
 0x3bc   : > { %4382 = vst.msk [vmem:[#allocation4 + $0x158] sm:$0xff] %vm658_vm0, %v4318_v42  ;;  %4397 = vst.msk [vmem:[#allocation4 + $0x1d0] sm:$0xff] %vm658_vm0, %v4333_v37  ;;  %v4316_v10 = vadd.f32 %v4102_v51, %v3640_v43  ;;  %v4331_v57 = vadd.f32 %v4244_v20, %v3655_v19  ;;  %v3033_v8 = vpop.xlane.xlu1 %3032  ;;  %v7237_v9 = vpop.eup %7236  ;;  %7250 = vrcp.f32 %v5448_v36  ;;  %v2937_v18 = vmul.f32 %v10887_v23, %v2873_v47  ;;  %v6161_v19 = vld [vmem:[%s10352_s5 + $0xc] sm:$0xf]  ;;  %v2890_v52 = vld [vmem:[#allocation3 + $0x1e0] sm:$0xff] }
 0x3bd   : > { %3207 = vst.msk [vmem:[#allocation3 + $0x1c0] sm:$0xff] %vm529_vm2, %v3142_v39  ;;  %v3123_v6 = vadd.f32 %v3033_v8, %v2931_v27  ;;  %v6637_v28 = vpop.f32.mrf.mxu1  ;;  %4952 = vperm.xlu1 %6810, %v7233_v7   ;;  %5199 = vperm.xlu0 %6811, %v7231_v5   ;;  %v7239_v12 = vpop.eup %7238  ;;  %v10888_v43 = vld [vmem:[#allocation129_spill] sm:$0xff]  ;;  %v10045_v39 = vsel %vm4702_vm3, %v6161_v19, 0  ;;  %v10892_v36 = vld [vmem:[#allocation123_spill] sm:$0xff]  ;;  %v5454_v47 = vld [vmem:[#allocation3 + $0x1d0] sm:$0xff] }
 0x3be   : > { %4380 = vst.msk [vmem:[#allocation4 + $0x148] sm:$0xff] %vm658_vm0, %v4316_v10  ;;  %4395 = vst.msk [vmem:[#allocation4 + $0x1c0] sm:$0xff] %vm658_vm0, %v4331_v57  ;;  %v4334_v30 = vadd.f32 %v6637_v28, %v3658_v34  ;;  %v3051_v44 = vpop.xlane.xlu0 %3050  ;;  %v5139_v50 = vld [vmem:[#allocation3 + $0x138] sm:$0xff]  ;;  %6749 = vmatprep.subr.msk.bf16.mxu1 %vm4702_vm3, %v6161_v19  ;;  %v2938_v42 = vmul.f32 %v10888_v43, %v2874_v40  ;;  %v2871_v27 = vld [vmem:[#allocation3 + $0x148] sm:$0xff] }
 0x3bf   : > { %3188 = vst.msk [vmem:[#allocation3 + $0x128] sm:$0xff] %vm529_vm2, %v3123_v6  ;;  %v3132_v25 = vadd.f32 %v3051_v44, %v2940_v1  ;;  %v4247_v3 = vpop.f32.mrf.mxu1  ;;  %7252 = vrcp.f32 %v5139_v50  ;;  %v10890_v34 = vld [vmem:[#allocation131_spill] sm:$0xff]  ;;  %v3277_v23 = vld [vmem:[#allocation4 + $0x1f0] sm:$0xff]  ;;  %v3260_v19 = vld [vmem:[#allocation4 + $0x168] sm:$0xff] }
 0x3c0   : > { %4398 = vst.msk [vmem:[#allocation4 + $0x1d8] sm:$0xff] %vm658_vm0, %v4334_v30  ;;  %v4332_v15 = vadd.f32 %v4247_v3, %v3656_v58  ;;  %v3065_v26 = vpop.xlane.xlu1 %3064  ;;  %v7241_v61 = vpop.eup %7240  ;;  %v2954_v49 = vmul.f32 %v10890_v34, %v2890_v52  ;;  %v10891_v6 = vld [vmem:[#allocation31_spill] sm:$0xff]  ;;  %v2887_v58 = vld [vmem:[#allocation3 + $0x1c8] sm:$0xff]  ;;  %v3275_v11 = vld [vmem:[#allocation4 + $0x1e0] sm:$0xff] }
 0x3c1   : > { %3197 = vst.msk [vmem:[#allocation3 + $0x170] sm:$0xff] %vm529_vm2, %v3132_v25  ;;  %v3139_v16 = vadd.f32 %v3065_v26, %v2947_v55  ;;  %5214 = vperm.xlu1 %6810, %v7237_v9   ;;  %5511 = vperm.xlu0 %6811, %v7235_v45   ;;  %v7243_v22 = vpop.eup %7242  ;;  %v2935_v28 = vmul.f32 %v10891_v6, %v2871_v27  ;;  %v5142_v45 = vld [vmem:[#allocation3 + $0x150] sm:$0xff]  ;;  %v2877_v55 = vld [vmem:[#allocation3 + $0x178] sm:$0xff]  ;;  %v3259_v26 = vld [vmem:[#allocation4 + $0x160] sm:$0xff] }
 0x3c2   : > { %4396 = vst.msk [vmem:[#allocation4 + $0x1c8] sm:$0xff] %vm658_vm0, %v4332_v15  ;;  %v3083_v29 = vpop.xlane.xlu0 %3082  ;;  %v5451_v41 = vld [vmem:[#allocation3 + $0x1b8] sm:$0xff]  ;;  %v2951_v25 = vmul.f32 %v10892_v36, %v2887_v58  ;;  %v3261_v9 = vld [vmem:[#allocation4 + $0x170] sm:$0xff] }
 0x3c3   : > { %3204 = vst.msk [vmem:[#allocation3 + $0x1a8] sm:$0xff] %vm529_vm2, %v3139_v16  ;;  %v3148_v0 = vadd.f32 %v3083_v29, %v2956_v21  ;;  %7254 = vrcp.f32 %v5451_v41  ;;  %v10893_v16 = vld [vmem:[#allocation35_spill] sm:$0xff]  ;;  %v3645_v29 = vmul.f32 %v9837_v56, %v3261_v9  ;;  %v10894_v56 = vld [vmem:[#allocation92_spill] sm:$0xff] }
 0x3c4   : > { %v3045_v13 = vpop.xlane.xlu1 %3044  ;;  %v7245_v51 = vpop.eup %7244  ;;  %v2941_v60 = vmul.f32 %v10893_v16, %v2877_v55 }
 0x3c5   : > { %3213 = vst.msk [vmem:[#allocation3 + $0x1f0] sm:$0xff] %vm529_vm2, %v3148_v0  ;;  %v3129_v59 = vadd.f32 %v3045_v13, %v2937_v18  ;;  %5526 = vperm.xlu1 %6810, %v7241_v61   ;;  %5229 = vperm.xlu0 %6811, %v7239_v12   ;;  %v7247_v57 = vpop.eup %7246  ;;  %v2893_v12 = vld [vmem:[#allocation3 + $0x1f8] sm:$0xff]  ;;  %v3643_v61 = vmul.f32 %v9857_v63, %v3259_v26 }
 0x3c6   : > { %v3047_v37 = vpop.xlane.xlu0 %3046  ;;  %v5137_v20 = vld [vmem:[#allocation3 + $0x128] sm:$0xff]  ;;  %v3262_v0 = vld [vmem:[#allocation4 + $0x178] sm:$0xff] }
 0x3c7   : > { %3194 = vst.msk [vmem:[#allocation3 + $0x158] sm:$0xff] %vm529_vm2, %v3129_v59  ;;  %v3130_v5 = vadd.f32 %v3047_v37, %v2938_v42  ;;  %7256 = vrcp.f32 %v5137_v20  ;;  %v5140_v59 = vld [vmem:[#allocation3 + $0x140] sm:$0xff]  ;;  %v2957_v42 = vmul.f32 %v10894_v56, %v2893_v12  ;;  %v3646_v52 = vmul.f32 %v9802_v62, %v3262_v0 }
 0x3c8   : > { %v3077_v46 = vpop.xlane.xlu1 %3076  ;;  %v7249_v24 = vpop.eup %7248 }
 0x3c9   : > { %3195 = vst.msk [vmem:[#allocation3 + $0x160] sm:$0xff] %vm529_vm2, %v3130_v5  ;;  %v3145_v7 = vadd.f32 %v3077_v46, %v2953_v35  ;;  %5204 = vperm.xlu1 %6810, %v7245_v51   ;;  %5541 = vperm.xlu0 %6811, %v7243_v22   ;;  %v7251_v54 = vpop.eup %7250  ;;  %v3661_v22 = vmul.f32 %v9844_v53, %v3277_v23  ;;  %v3278_v35 = vld [vmem:[#allocation4 + $0x1f8] sm:$0xff] }
 0x3ca   : > { %v3079_v10 = vpop.xlane.xlu0 %3078  ;;  %v5449_v8 = vld [vmem:[#allocation3 + $0x1a8] sm:$0xff]  ;;  %v3644_v51 = vmul.f32 %v9828_v48, %v3260_v19 }
 0x3cb   : > { %3210 = vst.msk [vmem:[#allocation3 + $0x1d8] sm:$0xff] %vm529_vm2, %v3145_v7  ;;  %v3146_v32 = vadd.f32 %v3079_v10, %v2954_v49  ;;  %7258 = vrcp.f32 %v5449_v8  ;;  %v3659_v7 = vmul.f32 %v9868_v14, %v3275_v11  ;;  %v3276_v10 = vld [vmem:[#allocation4 + $0x1e8] sm:$0xff] }
 0x3cc   : > { %v3041_v1 = vpop.xlane.xlu1 %3040  ;;  %v7253_v3 = vpop.eup %7252 }
 0x3cd   : > { %3211 = vst.msk [vmem:[#allocation3 + $0x1e0] sm:$0xff] %vm529_vm2, %v3146_v32  ;;  %v3127_v30 = vadd.f32 %v3041_v1, %v2935_v28  ;;  %5516 = vperm.xlu1 %6810, %v7249_v24   ;;  %5219 = vperm.xlu0 %6811, %v7247_v57   ;;  %v5452_v57 = vld [vmem:[#allocation3 + $0x1c0] sm:$0xff]  ;;  %v3662_v24 = vmul.f32 %v9817_v31, %v3278_v35  ;;  %v4560_v35 = vld [vmem:[#allocation4 + $0x18] sm:$0xff] }
 0x3ce   : > { %v5143_v44 = vld [vmem:[#allocation3 + $0x158] sm:$0xff]  ;;  %v10895_v32 = vld [vmem:[#allocation96_spill] sm:$0xff] }
 0x3cf   : > { %7260 = vrcp.f32 %v5143_v44  ;;  %3192 = vst.msk [vmem:[#allocation3 + $0x148] sm:$0xff] %vm529_vm2, %v3127_v30  ;;  %v2939_v6 = vmul.f32 %v10895_v32, %v2875_v4  ;;  %v2891_v30 = vld [vmem:[#allocation3 + $0x1e8] sm:$0xff] }
 0x3d0   : > { %v3073_v17 = vpop.xlane.xlu1 %3072  ;;  %7262 = vrcp.f32 %v5142_v45  ;;  %v7255_v21 = vpop.eup %7254  ;;  %v3660_v45 = vmul.f32 %v9833_v38, %v3276_v10  ;;  %v5144_v16 = vld [vmem:[#allocation3 + $0x160] sm:$0xff]  ;;  %v4872_v10 = vld [vmem:[#allocation4 + $0x98] sm:$0xff] }
 0x3d1   : > { %v3143_v50 = vadd.f32 %v3073_v17, %v2951_v25  ;;  %5234 = vperm.xlu1 %6810, %v7253_v3   ;;  %5531 = vperm.xlu0 %6811, %v7251_v54   ;;  %v10896_v17 = vld [vmem:[#allocation111_spill] sm:$0xff] }
 0x3d2   : > { %v5455_v15 = vld [vmem:[#allocation3 + $0x1d8] sm:$0xff]  ;;  %v2955_v55 = vmul.f32 %v10896_v17, %v2891_v30  ;;  %v4561_v17 = vld [vmem:[#allocation4 + $0x20] sm:$0xff] }
 0x3d3   : > { %7264 = vrcp.f32 %v5455_v15  ;;  %3208 = vst.msk [vmem:[#allocation3 + $0x1c8] sm:$0xff] %vm529_vm2, %v3143_v50  ;;  %v5146_v50 = vld [vmem:[#allocation3 + $0x170] sm:$0xff] }
 0x3d4   : > { %v3053_v40 = vpop.xlane.xlu1 %3052  ;;  %7266 = vrcp.f32 %v5454_v47  ;;  %v7257_v37 = vpop.eup %7256 }
 0x3d5   : > { %v3133_v18 = vadd.f32 %v3053_v40, %v2941_v60  ;;  %v6608_v33 = vpop.f32.mrf.mxu0  ;;  %5546 = vperm.xlu1 %6810, %v7255_v21   ;;  %v5456_v40 = vld [vmem:[#allocation3 + $0x1e0] sm:$0xff] }
 0x3d6   : > { %v5141_v41 = vld [vmem:[#allocation3 + $0x148] sm:$0xff]  ;;  %v4321_v13 = vadd.f32 %v6608_v33, %v3645_v29 }
 0x3d7   : > { %7268 = vrcp.f32 %v5141_v41  ;;  %3198 = vst.msk [vmem:[#allocation3 + $0x178] sm:$0xff] %vm529_vm2, %v3133_v18  ;;  %v4115_v43 = vpop.f32.mrf.mxu0  ;;  %v5458_v18 = vld [vmem:[#allocation3 + $0x1f0] sm:$0xff] }
 0x3d8   : > { %4385 = vst.msk [vmem:[#allocation4 + $0x170] sm:$0xff] %vm658_vm0, %v4321_v13  ;;  %v4319_v5 = vadd.f32 %v4115_v43, %v3643_v61  ;;  %v3085_v63 = vpop.xlane.xlu1 %3084  ;;  %7270 = vrcp.f32 %v5140_v59  ;;  %v7259_v49 = vpop.eup %7258 }
 0x3d9   : > { %v3149_v20 = vadd.f32 %v3085_v63, %v2957_v42  ;;  %v6609_v46 = vpop.f32.mrf.mxu0  ;;  %v6640_v27 = vpop.f32.mrf.mxu1  ;;  %5224 = vperm.xlu1 %6810, %v7257_v37  }
 0x3da   : > { %v5453_v34 = vld [vmem:[#allocation3 + $0x1c8] sm:$0xff]  ;;  %4383 = vst.msk [vmem:[#allocation4 + $0x160] sm:$0xff] %vm658_vm0, %v4319_v5  ;;  %v4322_v62 = vadd.f32 %v6609_v46, %v3646_v52  ;;  %v4337_v53 = vadd.f32 %v6640_v27, %v3661_v22 }
 0x3db   : > { %7272 = vrcp.f32 %v5453_v34  ;;  %3214 = vst.msk [vmem:[#allocation3 + $0x1f8] sm:$0xff] %vm529_vm2, %v3149_v20  ;;  %v4118_v8 = vpop.f32.mrf.mxu0  ;;  %v4260_v48 = vpop.f32.mrf.mxu1  ;;  %v4558_v46 = vld [vmem:[#allocation4 + $0x8] sm:$0xff]  ;;  %v4559_v34 = vld [vmem:[#allocation4 + $0x10] sm:$0xff] }
 0x3dc   : > { %v7261_v28 = vpop.eup %7260  ;;  %4386 = vst.msk [vmem:[#allocation4 + $0x178] sm:$0xff] %vm658_vm0, %v4322_v62  ;;  %4401 = vst.msk [vmem:[#allocation4 + $0x1f0] sm:$0xff] %vm658_vm0, %v4337_v53  ;;  %v4320_v14 = vadd.f32 %v4118_v8, %v3644_v51  ;;  %v4335_v1 = vadd.f32 %v4260_v48, %v3659_v7  ;;  %v3049_v58 = vpop.xlane.xlu1 %3048  ;;  %7274 = vrcp.f32 %v5452_v57  ;;  %v4557_v51 = vld [vmem:[#allocation4] sm:$0xff] }
 0x3dd   : > { %v3131_v44 = vadd.f32 %v3049_v58, %v2939_v6  ;;  %v6641_v54 = vpop.f32.mrf.mxu1  ;;  %5536 = vperm.xlu1 %6810, %v7259_v49   ;;  %5254 = vperm.xlu0 %6811, %v7261_v28   ;;  %v7263_v25 = vpop.eup %7262  ;;  %v4869_v48 = vld [vmem:[#allocation4 + $0x80] sm:$0xff]  ;;  %v4870_v6 = vld [vmem:[#allocation4 + $0x88] sm:$0xff] }
 0x3de   : > { %v5147_v36 = vld [vmem:[#allocation3 + $0x178] sm:$0xff]  ;;  %4384 = vst.msk [vmem:[#allocation4 + $0x168] sm:$0xff] %vm658_vm0, %v4320_v14  ;;  %4399 = vst.msk [vmem:[#allocation4 + $0x1e0] sm:$0xff] %vm658_vm0, %v4335_v1  ;;  %v4338_v31 = vadd.f32 %v6641_v54, %v3662_v24  ;;  %v4871_v14 = vld [vmem:[#allocation4 + $0x90] sm:$0xff] }
 0x3df   : > { %7276 = vrcp.f32 %v5147_v36  ;;  %3196 = vst.msk [vmem:[#allocation3 + $0x168] sm:$0xff] %vm529_vm2, %v3131_v44  ;;  %v4263_v3 = vpop.f32.mrf.mxu1 }
 0x3e0   : > { %v7265_v9 = vpop.eup %7264  ;;  %4402 = vst.msk [vmem:[#allocation4 + $0x1f8] sm:$0xff] %vm658_vm0, %v4338_v31  ;;  %v4336_v15 = vadd.f32 %v4263_v3, %v3660_v45  ;;  %v3081_v38 = vpop.xlane.xlu1 %3080  ;;  %7278 = vrcp.f32 %v5146_v50  ;;  %v4564_v3 = vld [vmem:[#allocation4 + $0x38] sm:$0xff] }
 0x3e1   : > { %v3147_v26 = vadd.f32 %v3081_v38, %v2955_v55  ;;  %5566 = vperm.xlu0 %6811, %v7265_v9   ;;  %5249 = vperm.xlu1 %6810, %v7263_v25   ;;  %v7267_v47 = vpop.eup %7266  ;;  %7280 = vrcp.f32 %v5144_v16  ;;  %v4562_v9 = vld [vmem:[#allocation4 + $0x28] sm:$0xff]  ;;  %v4563_v38 = vld [vmem:[#allocation4 + $0x30] sm:$0xff]  ;;  %v4876_v16 = vld [vmem:[#allocation4 + $0xb8] sm:$0xff] }
 0x3e2   : > { %4400 = vst.msk [vmem:[#allocation4 + $0x1e8] sm:$0xff] %vm658_vm0, %v4336_v15  ;;  %v5459_v19 = vld [vmem:[#allocation3 + $0x1f8] sm:$0xff]  ;;  %v4586_v61 = vpop.permute.xlu0 %4585 }
 0x3e3   : > { %3212 = vst.msk [vmem:[#allocation3 + $0x1e8] sm:$0xff] %vm529_vm2, %v3147_v26  ;;  %v4655_v49 = vmul.f32 %v4586_v61, %v4559_v34 }
 0x3e4   : > { %v7269_v60 = vpop.eup %7268 }
 0x3e5   : > { %5244 = vperm.xlu0 %6811, %v7269_v60   ;;  %5561 = vperm.xlu1 %6810, %v7267_v47   ;;  %v7271_v29 = vpop.eup %7270 }
 0x3e6   : > { %v5145_v21 = vld [vmem:[#allocation3 + $0x168] sm:$0xff]  ;;  %v4898_v59 = vpop.permute.xlu0 %4897 }
 0x3e7   : > { %7282 = vrcp.f32 %v5145_v21  ;;  %v4967_v30 = vmul.f32 %v4898_v59, %v4871_v14 }
 0x3e8   : > { %v7273_v12 = vpop.eup %7272  ;;  %7284 = vrcp.f32 %v5456_v40 }
 0x3e9   : > { %5556 = vperm.xlu0 %6811, %v7273_v12   ;;  %5239 = vperm.xlu1 %6810, %v7271_v29   ;;  %v7275_v23 = vpop.eup %7274  ;;  %v4873_v29 = vld [vmem:[#allocation4 + $0xa0] sm:$0xff]  ;;  %v4874_v12 = vld [vmem:[#allocation4 + $0xa8] sm:$0xff] }
 0x3ea   : > { %v5457_v0 = vld [vmem:[#allocation3 + $0x1e8] sm:$0xff] }
 0x3eb   : > { %7286 = vrcp.f32 %v5457_v0 }
 0x3ec   : > { %v7277_v33 = vpop.eup %7276  ;;  %7288 = vrcp.f32 %v5458_v18 }
 0x3ed   : > { %5274 = vperm.xlu0 %6811, %v7277_v33   ;;  %5551 = vperm.xlu1 %6810, %v7275_v23   ;;  %7290 = vrcp.f32 %v5459_v19  ;;  %v7279_v41 = vpop.eup %7278  ;;  %v4875_v23 = vld [vmem:[#allocation4 + $0xb0] sm:$0xff] }
 0x3ee   : > { %v7281_v13 = vpop.eup %7280 }
 0x3f1   : > { %5269 = vperm.xlu1 %6810, %v7279_v41  }
 0x3f4   : > { %v7283_v11 = vpop.eup %7282 }
 0x3f5   : > { %5264 = vperm.xlu0 %6811, %v7283_v11   ;;  %5259 = vperm.xlu1 %6810, %v7281_v13   ;;  %v7285_v43 = vpop.eup %7284 }
 0x3f8   : > { %v7287_v56 = vpop.eup %7286  ;;  %v4576_v42 = vpop.permute.xlu0 %4575 }
 0x3f9   : > { %5576 = vperm.xlu0 %6811, %v7287_v56   ;;  %5571 = vperm.xlu1 %6810, %v7285_v43   ;;  %v7289_v37 = vpop.eup %7288  ;;  %v4653_v62 = vmul.f32 %v4576_v42, %v4557_v51  ;;  %v4568_v56 = vld [vmem:[#allocation4 + $0x58] sm:$0xff]  ;;  %v4565_v42 = vld [vmem:[#allocation4 + $0x40] sm:$0xff] }
 0x3fa   : > { %v7291_v52 = vpop.eup %7290 }
 0x3fc   : > { %v4591_v22 = vpop.permute.xlu1 %4590  ;;  %v4888_v5 = vpop.permute.xlu0 %4887 }
 0x3fd   : > { %5586 = vperm.xlu0 %6811, %v7291_v52   ;;  %5581 = vperm.xlu1 %6810, %v7289_v37   ;;  %v4656_v20 = vmul.f32 %v4591_v22, %v4560_v35  ;;  %v4965_v1 = vmul.f32 %v4888_v5, %v4869_v48  ;;  %v4566_v52 = vld [vmem:[#allocation4 + $0x48] sm:$0xff] }
 0x3ff   : > { %v4670_v8 = vpack.c.bf16 %v4656_v20, %v4655_v49  ;;  %v4880_v20 = vld [vmem:[#allocation4 + $0xd8] sm:$0xff] }
 0x400   : > { %v4903_v63 = vpop.permute.xlu1 %4902  ;;  %v4606_v4 = vpop.permute.xlu0 %4605 }
 0x401   : > { %v4968_v32 = vmul.f32 %v4903_v63, %v4872_v10  ;;  %v4659_v47 = vmul.f32 %v4606_v4, %v4563_v38  ;;  %v4567_v63 = vld [vmem:[#allocation4 + $0x50] sm:$0xff] }
 0x402   : > { %v4879_v10 = vld [vmem:[#allocation4 + $0xd0] sm:$0xff] }
 0x403   : > { %v4982_v54 = vpack.c.bf16 %v4968_v32, %v4967_v30  ;;  %v4569_v30 = vld [vmem:[#allocation4 + $0x60] sm:$0xff] }
 0x404   : > { %v4581_v27 = vpop.permute.xlu1 %4580  ;;  %v4918_v7 = vpop.permute.xlu0 %4917 }
 0x405   : > { %v4654_v53 = vmul.f32 %v4581_v27, %v4558_v46  ;;  %v4971_v19 = vmul.f32 %v4918_v7, %v4875_v23  ;;  %v4877_v7 = vld [vmem:[#allocation4 + $0xc0] sm:$0xff] }
 0x407   : > { %v4669_v57 = vpack.c.bf16 %v4654_v53, %v4653_v62  ;;  %v4878_v62 = vld [vmem:[#allocation4 + $0xc8] sm:$0xff] }
 0x408   : > { %v4893_v28 = vpop.permute.xlu1 %4892  ;;  %v4596_v24 = vpop.permute.xlu0 %4595 }
 0x409   : > { %v4966_v58 = vmul.f32 %v4893_v28, %v4870_v6  ;;  %6644 = vmatprep.mubr.msk.bf16.mxu0 %vm658_vm0, %v4669_v57  ;;  %v4657_v26 = vmul.f32 %v4596_v24, %v4561_v17 }
 0x40a   : > { %6645 = vmatmul.mubr.msk.bf16.vlgmr.msra.gmra.mxu0 %vm658_vm0, %v4670_v8 }
 0x40b   : > { %v4981_v44 = vpack.c.bf16 %v4966_v58, %v4965_v1  ;;  %6679 = vmatpush3.bf16.msra.mxu0 %v10037_v2  ;;  %v4572_v58 = vld [vmem:[#allocation4 + $0x78] sm:$0xff] }
 0x40c   : > { %v4611_v45 = vpop.permute.xlu1 %4610  ;;  %v4908_v36 = vpop.permute.xlu0 %4907 }
 0x40d   : > { %6662 = vmatprep.mubr.msk.bf16.mxu1 %vm658_vm0, %v4981_v44  ;;  %v4660_v55 = vmul.f32 %v4611_v45, %v4564_v3  ;;  %v4969_v18 = vmul.f32 %v4908_v36, %v4873_v29 }
 0x40e   : > { %6663 = vmatmul.mubr.msk.bf16.vlgmr.msra.gmra.mxu1 %vm658_vm0, %v4982_v54  ;;  %v4570_v54 = vld [vmem:[#allocation4 + $0x68] sm:$0xff] }
 0x40f   : > { %6697 = vmatpush3.bf16.msra.mxu1 %v10045_v39  ;;  %v4672_v21 = vpack.c.bf16 %v4660_v55, %v4659_v47  ;;  %v4884_v55 = vld [vmem:[#allocation4 + $0xf8] sm:$0xff] }
 0x410   : > { %v4923_v31 = vpop.permute.xlu1 %4922  ;;  %v4626_v25 = vpop.permute.xlu0 %4625 }
 0x411   : > { %v4972_v40 = vmul.f32 %v4923_v31, %v4876_v16  ;;  %v4663_v51 = vmul.f32 %v4626_v25, %v4567_v63  ;;  %v4571_v31 = vld [vmem:[#allocation4 + $0x70] sm:$0xff] }
 0x412   : > { %v4883_v16 = vld [vmem:[#allocation4 + $0xf0] sm:$0xff] }
 0x413   : > { %v4984_v41 = vpack.c.bf16 %v4972_v40, %v4971_v19  ;;  %v5181_v19 = vld [vmem:[#allocation4 + $0x100] sm:$0xff] }
 0x414   : > { %v4601_v50 = vpop.permute.xlu1 %4600  ;;  %v4938_v15 = vpop.permute.xlu0 %4937 }
 0x415   : > { %v4658_v2 = vmul.f32 %v4601_v50, %v4562_v9  ;;  %v4975_v48 = vmul.f32 %v4938_v15, %v4879_v10  ;;  %v4881_v15 = vld [vmem:[#allocation4 + $0xe0] sm:$0xff]  ;;  %v5188_v10 = vld [vmem:[#allocation4 + $0x138] sm:$0xff] }
 0x417   : > { %v4671_v60 = vpack.c.bf16 %v4658_v2, %v4657_v26  ;;  %v4882_v26 = vld [vmem:[#allocation4 + $0xe8] sm:$0xff] }
 0x418   : > { %v4913_v0 = vpop.permute.xlu1 %4912  ;;  %v4616_v39 = vpop.permute.xlu0 %4615 }
 0x419   : > { %v4970_v33 = vmul.f32 %v4913_v0, %v4874_v12  ;;  %6648 = vmatprep.mubr.msk.bf16.mxu0 %vm658_vm0, %v4671_v60  ;;  %v4661_v4 = vmul.f32 %v4616_v39, %v4565_v42  ;;  %v5496_v42 = vld [vmem:[#allocation4 + $0x198] sm:$0xff] }
 0x41a   : > { %6649 = vmatmul.mubr.msk.bf16.gmra.mxu0 %vm658_vm0, %v4672_v21 }
 0x41b   : > { %v4983_v61 = vpack.c.bf16 %v4970_v33, %v4969_v18  ;;  %v5184_v33 = vld [vmem:[#allocation4 + $0x118] sm:$0xff] }
 0x41c   : > { %v4631_v13 = vpop.permute.xlu1 %4630  ;;  %v4928_v11 = vpop.permute.xlu0 %4927 }
 0x41d   : > { %6666 = vmatprep.mubr.msk.bf16.mxu1 %vm658_vm0, %v4983_v61  ;;  %v4664_v37 = vmul.f32 %v4631_v13, %v4568_v56  ;;  %v4973_v57 = vmul.f32 %v4928_v11, %v4877_v7  ;;  %v5183_v11 = vld [vmem:[#allocation4 + $0x110] sm:$0xff] }
 0x41e   : > { %6667 = vmatmul.mubr.msk.bf16.gmra.mxu1 %vm658_vm0, %v4984_v41  ;;  %v5182_v41 = vld [vmem:[#allocation4 + $0x108] sm:$0xff] }
 0x41f   : > { %v4674_v27 = vpack.c.bf16 %v4664_v37, %v4663_v51  ;;  %v5495_v51 = vld [vmem:[#allocation4 + $0x190] sm:$0xff] }
 0x420   : > { %v4943_v59 = vpop.permute.xlu1 %4942  ;;  %v4646_v43 = vpop.permute.xlu0 %4645 }
 0x421   : > { %v4976_v34 = vmul.f32 %v4943_v59, %v4880_v20  ;;  %v4667_v17 = vmul.f32 %v4646_v43, %v4571_v31 }
 0x423   : > { %v4986_v6 = vpack.c.bf16 %v4976_v34, %v4975_v48 }
 0x424   : > { %v4621_v22 = vpop.permute.xlu1 %4620  ;;  %v4958_v5 = vpop.permute.xlu0 %4957 }
 0x425   : > { %v4662_v35 = vmul.f32 %v4621_v22, %v4566_v52  ;;  %v4979_v29 = vmul.f32 %v4958_v5, %v4883_v16  ;;  %v5493_v22 = vld [vmem:[#allocation4 + $0x180] sm:$0xff]  ;;  %v5191_v16 = vld [vmem:[#allocation4 + $0x150] sm:$0xff] }
 0x427   : > { %v4673_v46 = vpack.c.bf16 %v4662_v35, %v4661_v4  ;;  %v5494_v4 = vld [vmem:[#allocation4 + $0x188] sm:$0xff] }
 0x428   : > { %v4933_v53 = vpop.permute.xlu1 %4932  ;;  %v4636_v49 = vpop.permute.xlu0 %4635 }
 0x429   : > { %v4974_v8 = vmul.f32 %v4933_v53, %v4878_v62  ;;  %6652 = vmatprep.mubr.msk.bf16.mxu0 %vm658_vm0, %v4673_v46  ;;  %v4665_v25 = vmul.f32 %v4636_v49, %v4569_v30 }
 0x42a   : > { %6653 = vmatmul.mubr.msk.bf16.gmra.mxu0 %vm658_vm0, %v4674_v27 }
 0x42b   : > { %v4985_v32 = vpack.c.bf16 %v4974_v8, %v4973_v57  ;;  %v5185_v57 = vld [vmem:[#allocation4 + $0x120] sm:$0xff] }
 0x42c   : > { %v4651_v28 = vpop.permute.xlu1 %4650  ;;  %v4948_v24 = vpop.permute.xlu0 %4947 }
 0x42d   : > { %6670 = vmatprep.mubr.msk.bf16.mxu1 %vm658_vm0, %v4985_v32  ;;  %v4668_v44 = vmul.f32 %v4651_v28, %v4572_v58  ;;  %v4977_v60 = vmul.f32 %v4948_v24, %v4881_v15  ;;  %v5186_v32 = vld [vmem:[#allocation4 + $0x128] sm:$0xff]  ;;  %v5187_v28 = vld [vmem:[#allocation4 + $0x130] sm:$0xff]  ;;  %v5500_v58 = vld [vmem:[#allocation4 + $0x1b8] sm:$0xff] }
 0x42e   : > { %6671 = vmatmul.mubr.msk.bf16.gmra.mxu1 %vm658_vm0, %v4986_v6 }
 0x42f   : > { %v4676_v50 = vpack.c.bf16 %v4668_v44, %v4667_v17 }
 0x430   : > { %v4963_v14 = vpop.permute.xlu1 %4962  ;;  %v5210_v1 = vpop.permute.xlu0 %5209 }
 0x431   : > { %v4980_v38 = vmul.f32 %v4963_v14, %v4884_v55  ;;  %v5279_v56 = vmul.f32 %v5210_v1, %v5183_v11  ;;  %v5501_v11 = vld [vmem:[#allocation4 + $0x1c0] sm:$0xff] }
 0x433   : > { %v4988_v12 = vpack.c.bf16 %v4980_v38, %v4979_v29  ;;  %v5189_v29 = vld [vmem:[#allocation4 + $0x140] sm:$0xff] }
 0x434   : > { %v4641_v45 = vpop.permute.xlu1 %4640  ;;  %v5522_v36 = vpop.permute.xlu0 %5521 }
 0x435   : > { %v4666_v3 = vmul.f32 %v4641_v45, %v4570_v54  ;;  %v5591_v27 = vmul.f32 %v5522_v36, %v5495_v51  ;;  %v5497_v54 = vld [vmem:[#allocation4 + $0x1a0] sm:$0xff]  ;;  %v5498_v36 = vld [vmem:[#allocation4 + $0x1a8] sm:$0xff] }
 0x436   : > { %v5193_v51 = vld [vmem:[#allocation4 + $0x160] sm:$0xff] }
 0x437   : > { %v4675_v9 = vpack.c.bf16 %v4666_v3, %v4665_v25  ;;  %v5499_v3 = vld [vmem:[#allocation4 + $0x1b0] sm:$0xff] }
 0x438   : > { %v4953_v2 = vpop.permute.xlu1 %4952  ;;  %v5200_v47 = vpop.permute.xlu0 %5199 }
 0x439   : > { %v4978_v21 = vmul.f32 %v4953_v2, %v4882_v26  ;;  %6656 = vmatprep.mubr.msk.bf16.mxu0 %vm658_vm0, %v4675_v9  ;;  %v5277_v59 = vmul.f32 %v5200_v47, %v5181_v19 }
 0x43a   : > { %6657 = vmatmul.mubr.msk.bf16.gmra.mxu0 %vm658_vm0, %v4676_v50 }
 0x43b   : > { %v4987_v40 = vpack.c.bf16 %v4978_v21, %v4977_v60  ;;  %v5190_v21 = vld [vmem:[#allocation4 + $0x148] sm:$0xff] }
 0x43c   : > { %v5215_v0 = vpop.permute.xlu1 %5214  ;;  %v5512_v39 = vpop.permute.xlu0 %5511 }
 0x43d   : > { %6674 = vmatprep.mubr.msk.bf16.mxu1 %vm658_vm0, %v4987_v40  ;;  %v5280_v61 = vmul.f32 %v5215_v0, %v5184_v33  ;;  %v5589_v20 = vmul.f32 %v5512_v39, %v5493_v22  ;;  %v5503_v33 = vld [vmem:[#allocation4 + $0x1d0] sm:$0xff] }
 0x43e   : > { %6675 = vmatmul.mubr.msk.bf16.gmra.mxu1 %vm658_vm0, %v4988_v12  ;;  %v5192_v12 = vld [vmem:[#allocation4 + $0x158] sm:$0xff] }
 0x43f   : > { %v5294_v52 = vpack.c.bf16 %v5280_v61, %v5279_v56 }
 0x440   : > { %v5527_v23 = vpop.permute.xlu1 %5526  ;;  %v5230_v18 = vpop.permute.xlu0 %5229 }
 0x441   : > { %v5592_v5 = vmul.f32 %v5527_v23, %v5496_v42  ;;  %v5283_v1 = vmul.f32 %v5230_v18, %v5187_v28 }
 0x443   : > { %v5606_v34 = vpack.c.bf16 %v5592_v5, %v5591_v27 }
 0x444   : > { %v5205_v13 = vpop.permute.xlu1 %5204  ;;  %v5542_v63 = vpop.permute.xlu0 %5541 }
 0x445   : > { %v5278_v43 = vmul.f32 %v5205_v13, %v5182_v41  ;;  %v5595_v9 = vmul.f32 %v5542_v63, %v5499_v3  ;;  %v5502_v13 = vld [vmem:[#allocation4 + $0x1c8] sm:$0xff] }
 0x447   : > { %v5293_v37 = vpack.c.bf16 %v5278_v43, %v5277_v59  ;;  %v5504_v43 = vld [vmem:[#allocation4 + $0x1d8] sm:$0xff] }
 0x448   : > { %v5517_v35 = vpop.permute.xlu1 %5516  ;;  %v5220_v53 = vpop.permute.xlu0 %5219 }
 0x449   : > { %v5590_v46 = vmul.f32 %v5517_v35, %v5494_v4  ;;  %6680 = vmatprep.mubr.msk.bf16.mxu0 %vm658_vm0, %v5293_v37  ;;  %v5281_v24 = vmul.f32 %v5220_v53, %v5185_v57  ;;  %v5195_v4 = vld [vmem:[#allocation4 + $0x170] sm:$0xff]  ;;  %v5505_v57 = vld [vmem:[#allocation4 + $0x1e0] sm:$0xff] }
 0x44a   : > { %6681 = vmatmul.mubr.msk.bf16.vlgmr.msra.gmra.mxu0 %vm658_vm0, %v5294_v52 }
 0x44b   : > { %v5605_v7 = vpack.c.bf16 %v5590_v46, %v5589_v20  ;;  %v5194_v46 = vld [vmem:[#allocation4 + $0x168] sm:$0xff] }
 0x44c   : > { %v5235_v62 = vpop.permute.xlu1 %5234  ;;  %v5532_v48 = vpop.permute.xlu0 %5531 }
 0x44d   : > { %6698 = vmatprep.mubr.msk.bf16.mxu1 %vm658_vm0, %v5605_v7  ;;  %v5284_v8 = vmul.f32 %v5235_v62, %v5188_v10  ;;  %v5593_v17 = vmul.f32 %v5532_v48, %v5497_v54  ;;  %v5196_v7 = vld [vmem:[#allocation4 + $0x178] sm:$0xff]  ;;  %v5506_v48 = vld [vmem:[#allocation4 + $0x1e8] sm:$0xff] }
 0x44e   : > { %6699 = vmatmul.mubr.msk.bf16.vlgmr.msra.gmra.mxu1 %vm658_vm0, %v5606_v34 }
 0x44f   : > { %v5296_v44 = vpack.c.bf16 %v5284_v8, %v5283_v1 }
 0x450   : > { %v5547_v49 = vpop.permute.xlu1 %5546 }
 0x451   : > { %v5596_v45 = vmul.f32 %v5547_v49, %v5500_v58  ;;  %v5508_v58 = vld [vmem:[#allocation4 + $0x1f8] sm:$0xff] }
 0x453   : > { %v5608_v15 = vpack.c.bf16 %v5596_v45, %v5595_v9 }
 0x454   : > { %v5225_v6 = vpop.permute.xlu1 %5224 }
 0x455   : > { %v5282_v14 = vmul.f32 %v5225_v6, %v5186_v32 }
 0x457   : > { %v5295_v30 = vpack.c.bf16 %v5282_v14, %v5281_v24  ;;  %v5507_v14 = vld [vmem:[#allocation4 + $0x1f0] sm:$0xff] }
 0x458   : > { %v5537_v31 = vpop.permute.xlu1 %5536  ;;  %v5255_v25 = vpop.permute.xlu0 %5254 }
 0x459   : > { %v5594_v55 = vmul.f32 %v5537_v31, %v5498_v36  ;;  %6684 = vmatprep.mubr.msk.bf16.mxu0 %vm658_vm0, %v5295_v30  ;;  %v5288_v23 = vmul.f32 %v5255_v25, %v5192_v12 }
 0x45a   : > { %6685 = vmatmul.mubr.msk.bf16.gmra.mxu0 %vm658_vm0, %v5296_v44 }
 0x45b   : > { %v5607_v50 = vpack.c.bf16 %v5594_v55, %v5593_v17 }
 0x45c   : > { %v5250_v38 = vpop.permute.xlu1 %5249  ;;  %v5567_v26 = vpop.permute.xlu0 %5566 }
 0x45d   : > { %6702 = vmatprep.mubr.msk.bf16.mxu1 %vm658_vm0, %v5607_v50  ;;  %v5287_v60 = vmul.f32 %v5250_v38, %v5191_v16  ;;  %v5600_v37 = vmul.f32 %v5567_v26, %v5504_v43 }
 0x45e   : > { %6703 = vmatmul.mubr.msk.bf16.gmra.mxu1 %vm658_vm0, %v5608_v15 }
 0x45f   : > { %v5298_v61 = vpack.c.bf16 %v5288_v23, %v5287_v60 }
 0x460   : > { %v5562_v2 = vpop.permute.xlu1 %5561  ;;  %v5245_v47 = vpop.permute.xlu0 %5244 }
 0x461   : > { %v5286_v0 = vmul.f32 %v5245_v47, %v5190_v21  ;;  %v5599_v41 = vmul.f32 %v5562_v2, %v5503_v33 }
 0x463   : > { %v5610_v22 = vpack.c.bf16 %v5600_v37, %v5599_v41  ;;  %v4473_v37 = vld [vmem:[%s10151_s29 + $0x18] sm:$0xff] }
 0x464   : > { %v5240_v40 = vpop.permute.xlu1 %5239  ;;  %v5557_v18 = vpop.permute.xlu0 %5556 }
 0x465   : > { %v5285_v39 = vmul.f32 %v5240_v40, %v5189_v29  ;;  %v5598_v56 = vmul.f32 %v5557_v18, %v5502_v13  ;;  %v4472_v13 = vld [vmem:[%s10151_s29 + $0x10] sm:$0xff] }
 0x467   : > { %v5297_v19 = vpack.c.bf16 %v5286_v0, %v5285_v39 }
 0x468   : > { %v5552_v59 = vpop.permute.xlu1 %5551  ;;  %v5275_v5 = vpop.permute.xlu0 %5274 }
 0x469   : > { %v5597_v42 = vmul.f32 %v5552_v59, %v5501_v11  ;;  %6688 = vmatprep.mubr.msk.bf16.mxu0 %vm658_vm0, %v5297_v19  ;;  %v5292_v53 = vmul.f32 %v5275_v5, %v5196_v7  ;;  %v10161_v11 = vld [vmem:[%s10353_s6] ss:$0 sm:$0xff] }
 0x46a   : > { %6689 = vmatmul.mubr.msk.bf16.gmra.mxu0 %vm658_vm0, %v5298_v61  ;;  %v4470_v59 = vld [vmem:[%s10151_s29] sm:$0xff] }
 0x46b   : > { %v5609_v52 = vpack.c.bf16 %v5598_v56, %v5597_v42  ;;  %v4495_v42 = vadd.f32 %v10161_v11, %v4472_v13 }
 0x46c   : > { %v5270_v63 = vpop.permute.xlu1 %5269 }
 0x46d   : > { %6706 = vmatprep.mubr.msk.bf16.mxu1 %vm658_vm0, %v5609_v52  ;;  %v5291_v35 = vmul.f32 %v5270_v63, %v5195_v4  ;;  %v4493_v52 = vadd.f32 %v10161_v11, %v4470_v59 }
 0x46e   : > { %6707 = vmatmul.mubr.msk.bf16.gmra.mxu1 %vm658_vm0, %v5610_v22  ;;  %v4471_v22 = vld [vmem:[%s10151_s29 + $0x8] sm:$0xff] }
 0x46f   : > { %v5300_v10 = vpack.c.bf16 %v5292_v53, %v5291_v35  ;;  %v4496_v35 = vadd.f32 %v10161_v11, %v4473_v37  ;;  %v4477_v37 = vld [vmem:[%s10151_s29 + $0x38] sm:$0xff] }
 0x470   : > { %v5260_v20 = vpop.permute.xlu1 %5259  ;;  %v5265_v27 = vpop.permute.xlu0 %5264 }
 0x471   : > { %v5289_v34 = vmul.f32 %v5260_v20, %v5193_v51  ;;  %v5290_v62 = vmul.f32 %v5265_v27, %v5194_v46  ;;  %v4494_v27 = vadd.f32 %v10161_v11, %v4471_v22 }
 0x473   : > { %v5299_v49 = vpack.c.bf16 %v5290_v62, %v5289_v34 }
 0x474   : > { %v5572_v8 = vpop.permute.xlu1 %5571  ;;  %v5577_v32 = vpop.permute.xlu0 %5576 }
 0x475   : > { %v5601_v6 = vmul.f32 %v5572_v8, %v5505_v57  ;;  %v5602_v28 = vmul.f32 %v5577_v32, %v5506_v48  ;;  %6692 = vmatprep.mubr.msk.bf16.mxu0 %vm658_vm0, %v5299_v49  ;;  %v10184_v8 = vld [vmem:[%s10354_s7] ss:$0 sm:$0xff] }
 0x476   : > { %6693 = vmatmul.mubr.msk.bf16.gmra.mxu0 %vm658_vm0, %v5300_v10 }
 0x477   : > { %v5611_v24 = vpack.c.bf16 %v5602_v28, %v5601_v6 }
 0x478   : > { %v5582_v1 = vpop.permute.xlu1 %5581  ;;  %v5587_v30 = vpop.permute.xlu0 %5586 }
 0x479   : > { %v5603_v44 = vmul.f32 %v5582_v1, %v5507_v14  ;;  %v5604_v54 = vmul.f32 %v5587_v30, %v5508_v58  ;;  %6710 = vmatprep.mubr.msk.bf16.mxu1 %vm658_vm0, %v5611_v24  ;;  %v10191_v24 = vld [vmem:[%s10355_s8] ss:$0 sm:$0xff] }
 0x47b   : > { %v5612_v45 = vpack.c.bf16 %v5604_v54, %v5603_v44 }
 0x47d   : > { %6711 = vmatmul.mubr.msk.bf16.gmra.mxu1 %vm658_vm0, %v5612_v45  ;;  %v4476_v45 = vld [vmem:[%s10151_s29 + $0x30] sm:$0xff] }
 0x47e   : > { %v4499_v13 = vadd.f32 %v10161_v11, %v4476_v45 }
 0x4ca   : > { %v6646_v36 = vpop.f32.mrf.mxu0 }
 0x4cb   : > { %v4805_v4 = vadd.f32 %v6646_v36, %v4495_v42 }
 0x4cc   : > { %v4740_v31 = vpop.f32.mrf.mxu0 }
 0x4cd   : > { %v4803_v20 = vadd.f32 %v4740_v31, %v4493_v52 }
 0x4ce   : > { %v6664_v25 = vpop.f32.mrf.mxu1  ;;  %v6647_v3 = vpop.f32.mrf.mxu0 }
 0x4cf   : > { %v5117_v46 = vadd.f32 %v6664_v25, %v4805_v4  ;;  %v4806_v62 = vadd.f32 %v6647_v3, %v4496_v35  ;;  %v4475_v35 = vld [vmem:[%s10151_s29 + $0x28] sm:$0xff] }
 0x4d0   : > { %v5052_v17 = vpop.f32.mrf.mxu1  ;;  %v4743_v55 = vpop.f32.mrf.mxu0 }
 0x4d1   : > { %v5115_v53 = vadd.f32 %v5052_v17, %v4803_v20  ;;  %v4804_v48 = vadd.f32 %v4743_v55, %v4494_v27  ;;  %v4474_v55 = vld [vmem:[%s10151_s29 + $0x20] sm:$0xff]  ;;  %v4500_v20 = vadd.f32 %v10161_v11, %v4477_v37 }
 0x4d2   : > { %v6665_v9 = vpop.f32.mrf.mxu1  ;;  %v4497_v52 = vadd.f32 %v10161_v11, %v4474_v55 }
 0x4d3   : > { %v5118_v32 = vadd.f32 %v6665_v9, %v4806_v62 }
 0x4d4   : > { %v5055_v15 = vpop.f32.mrf.mxu1 }
 0x4d5   : > { %v5116_v58 = vadd.f32 %v5055_v15, %v4804_v48 }
 0x4da   : > { %v10113_v50 = vpop.f32.mrf.mxu0 }
 0x4dc   : > { %v10115_v38 = vpop.f32.mrf.mxu0 }
 0x4de   : > { %v10117_v26 = vpop.f32.mrf.mxu1  ;;  %v10119_v2 = vpop.f32.mrf.mxu0 }
 0x4e0   : > { %v10121_v47 = vpop.f32.mrf.mxu1  ;;  %v10123_v16 = vpop.f32.mrf.mxu0 }
 0x4e2   : > { %v10125_v60 = vpop.f32.mrf.mxu1 }
 0x4e4   : > { %v10129_v29 = vpop.f32.mrf.mxu1 }
 0x4ea   : > { %v10127_v21 = vpop.f32.mrf.mxu0 }
 0x4ec   : > { %v10131_v40 = vpop.f32.mrf.mxu0 }
 0x4ee   : > { %v10133_v12 = vpop.f32.mrf.mxu1  ;;  %v10135_v0 = vpop.f32.mrf.mxu0 }
 0x4f0   : > { %v10137_v39 = vpop.f32.mrf.mxu1  ;;  %v10139_v23 = vpop.f32.mrf.mxu0 }
 0x4f2   : > { %v10141_v18 = vpop.f32.mrf.mxu1 }
 0x4f4   : > { %v10146_v19 = vpop.f32.mrf.mxu1 }
 0x4fa   : > { %v10144_v33 = vpop.f32.mrf.mxu0 }
 0x4fc   : > { %v10153_v61 = vpop.f32.mrf.mxu0 }
 0x4fe   : > { %v10155_v41 = vpop.f32.mrf.mxu1  ;;  %v10164_v43 = vpop.f32.mrf.mxu0 }
 0x500   : > { %v10166_v56 = vpop.f32.mrf.mxu1  ;;  %v10172_v5 = vpop.f32.mrf.mxu0 }
 0x502   : > { %v10174_v63 = vpop.f32.mrf.mxu1 }
 0x504   : > { %v10178_v7 = vpop.f32.mrf.mxu1 }
 0x50a   : > { %v6682_v51 = vpop.f32.mrf.mxu0 }
 0x50b   : > { %v5429_v49 = vadd.f32 %v6682_v51, %v5117_v46  ;;  %v4809_v51 = vadd.f32 %v10113_v50, %v4499_v13 }
 0x50c   : > { %v5364_v34 = vpop.f32.mrf.mxu0 }
 0x50d   : > { %v5427_v6 = vadd.f32 %v5364_v34, %v5115_v53  ;;  %v4807_v34 = vadd.f32 %v10115_v38, %v4497_v52  ;;  %v5121_v62 = vadd.f32 %v10117_v26, %v4809_v51  ;;  %v4498_v53 = vadd.f32 %v10161_v11, %v4475_v35 }
 0x50e   : > { %v6683_v10 = vpop.f32.mrf.mxu0  ;;  %v6700_v57 = vpop.f32.mrf.mxu1 }
 0x50f   : > { %v5741_v28 = vadd.f32 %v6700_v57, %v5429_v49  ;;  %v5430_v30 = vadd.f32 %v6683_v10, %v5118_v32  ;;  %v4810_v10 = vadd.f32 %v10119_v2, %v4500_v20  ;;  %v5119_v57 = vadd.f32 %v10121_v47, %v4807_v34 }
 0x510   : > { %v5367_v14 = vpop.f32.mrf.mxu0  ;;  %v5676_v1 = vpop.f32.mrf.mxu1 }
 0x511   : > { %v5764_v44 = vmul.f32 %v10184_v8, %v5741_v28  ;;  %v5739_v54 = vadd.f32 %v5676_v1, %v5427_v6  ;;  %v5428_v25 = vadd.f32 %v5367_v14, %v5116_v58  ;;  %v4808_v6 = vadd.f32 %v10123_v16, %v4498_v53 }
 0x512   : > { %v6701_v36 = vpop.f32.mrf.mxu1  ;;  %v5122_v28 = vadd.f32 %v10125_v60, %v4810_v10 }
 0x513   : > { %v5787_v31 = vadd.f32 %v10191_v24, %v5764_v44  ;;  %v5762_v3 = vmul.f32 %v10184_v8, %v5739_v54  ;;  %v5742_v17 = vadd.f32 %v6701_v36, %v5430_v30  ;;  %v5120_v58 = vadd.f32 %v10129_v29, %v4808_v6  ;;  %v4480_v44 = vld [vmem:[%s10151_s29 + $0x50] sm:$0xff] }
 0x514   : > { %v5679_v9 = vpop.f32.mrf.mxu1  ;;  %v4503_v29 = vadd.f32 %v10161_v11, %v4480_v44 }
 0x515   : > { %5803 = vst [vmem:[%s10199_s28 + $0x10] sm:$0xff] %v5787_v31  ;;  %v5785_v15 = vadd.f32 %v10191_v24, %v5762_v3  ;;  %v5765_v59 = vmul.f32 %v10184_v8, %v5742_v17  ;;  %v5740_v42 = vadd.f32 %v5679_v9, %v5428_v25  ;;  %v4478_v31 = vld [vmem:[%s10151_s29 + $0x40] sm:$0xff]  ;;  %v4481_v9 = vld [vmem:[%s10151_s29 + $0x58] sm:$0xff] }
 0x516   : > { %v4501_v13 = vadd.f32 %v10161_v11, %v4478_v31  ;;  %v4813_v37 = vadd.f32 %v10127_v21, %v4503_v29  ;;  %v4504_v52 = vadd.f32 %v10161_v11, %v4481_v9 }
 0x517   : > { %5801 = vst [vmem:[%s10199_s28] sm:$0xff] %v5785_v15  ;;  %v5788_v22 = vadd.f32 %v10191_v24, %v5765_v59  ;;  %v5763_v4 = vmul.f32 %v10184_v8, %v5740_v42  ;;  %v4479_v42 = vld [vmem:[%s10151_s29 + $0x48] sm:$0xff] }
 0x518   : > { %v4811_v35 = vadd.f32 %v10131_v40, %v4501_v13  ;;  %v5125_v51 = vadd.f32 %v10133_v12, %v4813_v37  ;;  %v4502_v20 = vadd.f32 %v10161_v11, %v4479_v42 }
 0x519   : > { %5804 = vst [vmem:[%s10199_s28 + $0x18] sm:$0xff] %v5788_v22  ;;  %v5786_v46 = vadd.f32 %v10191_v24, %v5763_v4 }
 0x51a   : > { %v6686_v27 = vpop.f32.mrf.mxu0  ;;  %v5123_v34 = vadd.f32 %v10137_v39, %v4811_v35 }
 0x51b   : > { %5802 = vst [vmem:[%s10199_s28 + $0x8] sm:$0xff] %v5786_v46  ;;  %v5433_v50 = vadd.f32 %v6686_v27, %v5121_v62  ;;  %v4814_v27 = vadd.f32 %v10135_v0, %v4504_v52 }
 0x51c   : > { %v5380_v49 = vpop.f32.mrf.mxu0 }
 0x51d   : > { %v5431_v38 = vadd.f32 %v5380_v49, %v5119_v57  ;;  %v4812_v49 = vadd.f32 %v10139_v23, %v4502_v20  ;;  %v5126_v10 = vadd.f32 %v10141_v18, %v4814_v27 }
 0x51e   : > { %v6687_v48 = vpop.f32.mrf.mxu0  ;;  %v6704_v32 = vpop.f32.mrf.mxu1 }
 0x51f   : > { %v5745_v14 = vadd.f32 %v6704_v32, %v5433_v50  ;;  %v5434_v30 = vadd.f32 %v6687_v48, %v5122_v28  ;;  %v5124_v48 = vadd.f32 %v10146_v19, %v4812_v49  ;;  %v4484_v32 = vld [vmem:[%s10151_s29 + $0x70] sm:$0xff]  ;;  %v4485_v19 = vld [vmem:[%s10151_s29 + $0x78] sm:$0xff] }
 0x520   : > { %v5383_v26 = vpop.f32.mrf.mxu0  ;;  %v5692_v1 = vpop.f32.mrf.mxu1  ;;  %v4508_v31 = vadd.f32 %v10161_v11, %v4485_v19 }
 0x521   : > { %v5768_v2 = vmul.f32 %v10184_v8, %v5745_v14  ;;  %v5743_v47 = vadd.f32 %v5692_v1, %v5431_v38  ;;  %v5432_v45 = vadd.f32 %v5383_v26, %v5120_v58  ;;  %v4482_v38 = vld [vmem:[%s10151_s29 + $0x60] sm:$0xff]  ;;  %v4507_v1 = vadd.f32 %v10161_v11, %v4484_v32 }
 0x522   : > { %v6705_v54 = vpop.f32.mrf.mxu1  ;;  %v4505_v44 = vadd.f32 %v10161_v11, %v4482_v38  ;;  %v4818_v13 = vadd.f32 %v10164_v43, %v4508_v31 }
 0x523   : > { %v5791_v16 = vadd.f32 %v10191_v24, %v5768_v2  ;;  %v5766_v60 = vmul.f32 %v10184_v8, %v5743_v47  ;;  %v5746_v36 = vadd.f32 %v6705_v54, %v5434_v30 }
 0x524   : > { %v5695_v25 = vpop.f32.mrf.mxu1  ;;  %v5130_v37 = vadd.f32 %v10174_v63, %v4818_v13 }
 0x525   : > { %5807 = vst [vmem:[%s10199_s28 + $0x30] sm:$0xff] %v5791_v16  ;;  %v5789_v3 = vadd.f32 %v10191_v24, %v5766_v60  ;;  %v5769_v17 = vmul.f32 %v10184_v8, %v5746_v36  ;;  %v5744_v55 = vadd.f32 %v5695_v25, %v5432_v45  ;;  %v4483_v16 = vld [vmem:[%s10151_s29 + $0x68] sm:$0xff]  ;;  %v4817_v36 = vadd.f32 %v10144_v33, %v4507_v1  ;;  %s5833_s29 = sshll.u32 %s10199_s28, 4  ;;  %s10295_s29 = int_to_ptr.vmem [resolvable:$true] %s5833_s29 }
 0x526   : > { %s7292_s20 = scalar_lea.vmem %s10295_s29, 2048  ;;  %p7299_p1 = scmp.lt.s32.totalorder %s10295_s29, %s7297_s26 }
 0x527   : > { %5805 = vst [vmem:[%s10199_s28 + $0x20] sm:$0xff] %v5789_v3  ;;  %v5792_v15 = vadd.f32 %v10191_v24, %v5769_v17  ;;  %v5767_v59 = vmul.f32 %v10184_v8, %v5744_v55  ;;  %v4815_v3 = vadd.f32 %v10153_v61, %v4505_v44  ;;  %v5129_v17 = vadd.f32 %v10155_v41, %v4817_v36  ;;  %p7293_p12 = scmp.ne.s32.totalorder %s10295_s29, %s7292_s20  ;;  %p7300_p2 = scmp.lt.s32.totalorder %s7298_s27, %s7292_s20 }
 0x528   : > { %v4506_v55 = vadd.f32 %v10161_v11, %v4483_v16 }
 0x529   : > { %5808 = vst [vmem:[%s10199_s28 + $0x38] sm:$0xff] %v5792_v15  ;;  %v5790_v22 = vadd.f32 %v10191_v24, %v5767_v59  ;;  %v5127_v15 = vadd.f32 %v10166_v56, %v4815_v3  ;;  %p7294_p13 = pnand %p7293_p12, %p7466_p4  ;;  %p7301_p3 = por %p7300_p2, %p7299_p1 }
 0x52a   : > { %v6690_v4 = vpop.f32.mrf.mxu0  ;;  %v4816_v42 = vadd.f32 %v10172_v5, %v4506_v55 }
 0x52b   : > { %5806 = vst [vmem:[%s10199_s28 + $0x28] sm:$0xff] %v5790_v22  ;;  %v5437_v21 = vadd.f32 %v6690_v4, %v5125_v51  ;;  %p7295_p0 = pneg %p7294_p13 }
 0x52c   : > { %v5396_v46 = vpop.f32.mrf.mxu0  ;;  %v5128_v11 = vadd.f32 %v10178_v7, %v4816_v42 }
 0x52d   : > { %v5435_v40 = vadd.f32 %v5396_v46, %v5123_v34  ;;  %p7302_p5 = pnand %p7301_p3, %p7295_p0 }
 0x52e   : > { %v6691_v62 = vpop.f32.mrf.mxu0  ;;  %v6708_v53 = vpop.f32.mrf.mxu1 }
 0x52f   : > { %v5749_v57 = vadd.f32 %v6708_v53, %v5437_v21  ;;  %v5438_v0 = vadd.f32 %v6691_v62, %v5126_v10 }
 0x530   : > { %v5399_v12 = vpop.f32.mrf.mxu0  ;;  %v5708_v50 = vpop.f32.mrf.mxu1 }
 0x531   : > { %v5772_v39 = vmul.f32 %v10184_v8, %v5749_v57  ;;  %v5747_v6 = vadd.f32 %v5708_v50, %v5435_v40  ;;  %v5436_v18 = vadd.f32 %v5399_v12, %v5124_v48 }
 0x532   : > { %v6709_v28 = vpop.f32.mrf.mxu1 }
 0x533   : > { %v5795_v23 = vadd.f32 %v10191_v24, %v5772_v39  ;;  %v5770_v14 = vmul.f32 %v10184_v8, %v5747_v6  ;;  %v5750_v26 = vadd.f32 %v6709_v28, %v5438_v0 }
 0x534   : > { %v5711_v58 = vpop.f32.mrf.mxu1 }
 0x535   : > { %5811 = vst [vmem:[%s10199_s28 + $0x50] sm:$0xff] %v5795_v23  ;;  %v5793_v30 = vadd.f32 %v10191_v24, %v5770_v14  ;;  %v5773_v2 = vmul.f32 %v10184_v8, %v5750_v26  ;;  %v5748_v47 = vadd.f32 %v5711_v58, %v5436_v18 }
 0x536   : > { %v6694_v54 = vpop.f32.mrf.mxu0 }
 0x537   : > { %5809 = vst [vmem:[%s10199_s28 + $0x40] sm:$0xff] %v5793_v30  ;;  %v5796_v45 = vadd.f32 %v10191_v24, %v5773_v2  ;;  %v5771_v60 = vmul.f32 %v10184_v8, %v5748_v47  ;;  %v5441_v59 = vadd.f32 %v6694_v54, %v5129_v17 }
 0x538   : > { %v5412_v25 = vpop.f32.mrf.mxu0 }
 0x539   : > { %5812 = vst [vmem:[%s10199_s28 + $0x58] sm:$0xff] %v5796_v45  ;;  %v5794_v29 = vadd.f32 %v10191_v24, %v5771_v60  ;;  %v5439_v52 = vadd.f32 %v5412_v25, %v5127_v15 }
 0x53a   : > { %v6695_v9 = vpop.f32.mrf.mxu0 }
 0x53b   : > { %5810 = vst [vmem:[%s10199_s28 + $0x48] sm:$0xff] %v5794_v29  ;;  %v5442_v4 = vadd.f32 %v6695_v9, %v5130_v37 }
 0x53c   : > { %v5415_v61 = vpop.f32.mrf.mxu0 }
 0x53d   : > { %v6712_v33 = vpop.f32.mrf.mxu1  ;;  %v5440_v51 = vadd.f32 %v5415_v61, %v5128_v11 }
 0x53e   : > { %v5753_v22 = vadd.f32 %v6712_v33, %v5441_v59 }
 0x53f   : > { %v5724_v41 = vpop.f32.mrf.mxu1 }
 0x540   : > { %v5776_v43 = vmul.f32 %v10184_v8, %v5753_v22  ;;  %v5751_v56 = vadd.f32 %v5724_v41, %v5439_v52 }
 0x541   : > { %v6713_v35 = vpop.f32.mrf.mxu1 }
 0x542   : > { %v5799_v5 = vadd.f32 %v10191_v24, %v5776_v43  ;;  %v5774_v63 = vmul.f32 %v10184_v8, %v5751_v56  ;;  %v5754_v20 = vadd.f32 %v6713_v35, %v5442_v4 }
 0x543   : > { %v5727_v46 = vpop.f32.mrf.mxu1 }
 0x544   : > { %5815 = vst [vmem:[%s10199_s28 + $0x70] sm:$0xff] %v5799_v5  ;;  %v5797_v27 = vadd.f32 %v10191_v24, %v5774_v63  ;;  %v5777_v7 = vmul.f32 %v10184_v8, %v5754_v20  ;;  %v5752_v34 = vadd.f32 %v5727_v46, %v5440_v51 }
 0x546   : > { %5813 = vst [vmem:[%s10199_s28 + $0x60] sm:$0xff] %v5797_v27  ;;  %v5800_v21 = vadd.f32 %v10191_v24, %v5777_v7  ;;  %v5775_v62 = vmul.f32 %v10184_v8, %v5752_v34 }
 0x548   : > { %5816 = vst [vmem:[%s10199_s28 + $0x78] sm:$0xff] %v5800_v21  ;;  %v5798_v53 = vadd.f32 %v10191_v24, %v5775_v62 }
 0x54a   : > { %5814 = vst [vmem:[%s10199_s28 + $0x68] sm:$0xff] %v5798_v53 }
 0x54b   : > { %7305 = shalt.err (!%p7302_p5)
}
 0x54c   : > { %s7306_s16 = scalar_lea.hbm %s10293_s18, 2048  ;;  %s7310_s15 = scalar_lea.hbm %s10356_s9, 4096 }
 0x54d   : > { %p7307_p6 = scmp.ne.s32.totalorder %s10293_s18, %s7306_s16  ;;  %p7311_p10 = scmp.lt.s32.totalorder %s10293_s18, %s10356_s9 }
 0x54e   : > { %p7312_p11 = scmp.lt.s32.totalorder %s7310_s15, %s7306_s16 }
 0x54f   : > { %p7308_p7 = pnand %p7307_p6, %p7466_p4 }
 0x550   : > { %p7313_p12 = por %p7312_p11, %p7311_p10 }
 0x551   : > { %p7309_p9 = pneg %p7308_p7 }
 0x553   : > { %p7314_p13 = pnand %p7313_p12, %p7309_p9 }
 0x555   : > { %7317 = shalt.err (!%p7314_p13)
}
 0x556   : > { %s7374_s20 = smov 128   ;;  %s7375_s26 = smov 8  }
 0x557   : > { %6750 = dma.vmem_to_hbm [thread:$0]  (%p7466_p4), %s10295_s29, 2048, %s10293_s18, %s10302_s12, %s7374_s20, %s7374_s20, %s7375_s26  }
 0x558 PF: > { %p6756_p0 = scmp.ge.s32.totalorder %s7368_s14, 2  ;;  %s5848_s27 = sand.u32 1, %s7348_s30  }
 0x559   : > { %s5849_s16 = scalar_lea.sflag [#allocation6], %s5848_s27 }
 0x55a   : > { %p6753_p1 = pnand %p6756_p0, %p7473_p8 }
 0x55c   : > { %p6754_p2 = pneg %p6753_p1 }
 0x55e   : > { %7343 = dma.done.wait (%p6754_p2), %s5849_s16, 2048  }
 0x55f   : > { %7345 = vsyncadd (%p6754_p2), %s5849_s16, 4294965248  ;;  %s22_s14 = sadd.s32 1, %s7368_s14   ;;  %s10897_s30 = smov %s7352_s10 }
 0x560   : > { %p19_p3 = scmp.ge.s32.totalorder %s22_s14, 4   ;;  %s10898_s10 = smov %s7356_s11 }
 0x561   : > { %s10899_s11 = smov %s7479_s22  ;;  %s10900_s12 = smov %s7364_s13 }
 0x562   : > { %s10901_s13 = smov %s10903_s17  ;;  %21 = sbr.rel (!%p19_p3) target bundleno = 4 (0x4), region = 120 }
 0x567   :  { %5854 = vsyncpa [#allocation6], 1 }
 0x568   :  { %5856 = vsyncpa [#allocation6 + $0x1], 1 }

</bundles_post_ra>
